<compile_context>
chip_gen: v6e
topology: v6e:2x2x1
jax: 0.10.0
libtpu: 0.0.40
codegen_flags: <defaults>
</compile_context>

<pallas_src>
import functools

import jax
import jax.numpy as jnp
from jax import lax
from jax.experimental import pallas as pl
from jax.experimental.pallas import tpu as pltpu


# ----------------------------- fused Pallas kernel -----------------------------

def _fused_attention_kernel(x_ref, wqkv_ref, bqkv_ref, wup_ref, bup_ref,
                            gamma_ref, beta_ref, wp_ref, bp_ref,
                            out_ref, attn_ref, *,
                            num_heads, head_dim, scale, H, W, eps):
    """One grid step == one batch element.  Everything stays in VMEM."""
    N = x_ref.shape[1]
    C = x_ref.shape[2]

    xb = x_ref[0].astype(jnp.float32)                               # (N, C)

    # ---- fused q + kv projection: one (N,C) x (C,3C) matmul --------------------
    qkv = (jnp.dot(xb, wqkv_ref[...].astype(jnp.float32),
                   preferred_element_type=jnp.float32)
           + bqkv_ref[...].astype(jnp.float32))                     # (N, 3C)
    q = qkv[:, :C]
    k = qkv[:, C:2 * C]
    v = qkv[:, 2 * C:]                                              # (N, C) each

    # ---- multi-head attention: all heads processed in this grid step -----------
    ctx_cols = []
    for h in range(num_heads):
        sl = slice(h * head_dim, (h + 1) * head_dim)
        qh, kh, vh = q[:, sl], k[:, sl], v[:, sl]                   # (N, hd)
        # q @ k^T without materializing a transposed K tile.
        s = lax.dot_general(qh, kh, (((1,), (1,)), ((), ())),
                            preferred_element_type=jnp.float32) * scale   # (N, N)
        m = jnp.max(s, axis=-1, keepdims=True)
        p = jnp.exp(s - m)
        l = jnp.sum(p, axis=-1, keepdims=True)
        attn_h = p / l                                              # exact softmax
        attn_ref[0, h] = attn_h.astype(attn_ref.dtype)
        ctx_cols.append(jnp.dot(attn_h, vh, preferred_element_type=jnp.float32))
    # (attn @ v).transpose(1,2).reshape(B,N,C)  ==  per-head columns side by side
    x_attn = jnp.concatenate(ctx_cols, axis=-1)                     # (N, C)

    # ---- depthwise 3x3 conv on identity -----------------------------------------
    # identity = v.transpose(-1,-2).reshape(B,C,H,W) in the reference is exactly the
    # (N, C) tensor `v` viewed channels-last as (H, W, C).  The 3x3 / stride 1 /
    # pad 1 depthwise conv is computed in the flat (N, C) layout with sublane rolls
    # and boundary masks (no pad buffer, no reshape, no transposes).
    w_up = wup_ref[...].astype(jnp.float32)                         # (9, C) taps
    n_idx = lax.broadcasted_iota(jnp.int32, (N, 1), 0)
    x_pos = n_idx % W
    acc = jnp.zeros((N, C), jnp.float32)
    for dy in (-1, 0, 1):
        for dx in (-1, 0, 1):
            shift = dy * W + dx
            tap = (dy + 1) * 3 + (dx + 1)
            valid = ((x_pos + dx >= 0) & (x_pos + dx < W)
                     & (n_idx + shift >= 0) & (n_idx + shift < N))
            src = v if shift == 0 else pltpu.roll(v, (-shift) % N, 0)
            acc = acc + jnp.where(valid, src, 0.0) * w_up[tap:tap + 1]
    conv = acc + bup_ref[...].astype(jnp.float32)                   # (N, C)

    # ---- LayerNorm(identity) + residual add + output projection -----------------
    mean = jnp.mean(conv, axis=-1, keepdims=True)
    var = jnp.mean(jnp.square(conv - mean), axis=-1, keepdims=True)
    ln = (conv - mean) * lax.rsqrt(var + eps)
    ln = ln * gamma_ref[...].astype(jnp.float32) + beta_ref[...].astype(jnp.float32)

    y = x_attn + ln
    out = (jnp.dot(y, wp_ref[...].astype(jnp.float32),
                   preferred_element_type=jnp.float32)
           + bp_ref[...].astype(jnp.float32))
    out_ref[0] = out.astype(out_ref.dtype)


# ----------------------------- module forward -----------------------------

@functools.partial(jax.jit, static_argnames=("H", "W", "num_heads", "sr_ratio"))
def attention_with_restrict_forward(x, H, W, params, num_heads=8, sr_ratio=1):
    # TODO(synk): sr_ratio > 1 branch (strided depthwise `sr` conv + sr_norm and
    # PixelShuffle(sr_ratio)) not implemented; default sr_ratio=1 path only.
    assert sr_ratio == 1
    B, N, C = x.shape
    assert C % num_heads == 0 and N == H * W
    hd = C // num_heads
    scale = hd ** (-0.5)

    # Merge the q and kv projection weights once (folded into the jit graph).
    wqkv = jnp.concatenate([params["wq"], params["wkv"]], axis=1)       # (C, 3C)
    bqkv = jnp.concatenate([params["bq"], params["bkv"]]).reshape(1, 3 * C)

    kernel = functools.partial(_fused_attention_kernel,
                               num_heads=num_heads, head_dim=hd, scale=scale,
                               H=H, W=W, eps=1e-6)

    out, attn = pl.pallas_call(
        kernel,
        out_shape=(jax.ShapeDtypeStruct((B, N, C), x.dtype),
                   jax.ShapeDtypeStruct((B, num_heads, N, N), jnp.float32)),
        grid_spec=pltpu.PrefetchScalarGridSpec(
            num_scalar_prefetch=0,
            grid=(B,),
            in_specs=[
                pl.BlockSpec((1, N, C), lambda b: (b, 0, 0)),           # x
                pl.BlockSpec((C, 3 * C), lambda b: (0, 0)),             # wqkv
                pl.BlockSpec((1, 3 * C), lambda b: (0, 0)),             # bqkv
                pl.BlockSpec((9, C), lambda b: (0, 0)),                 # w_up (3x3 taps)
                pl.BlockSpec((1, C), lambda b: (0, 0)),                 # b_up
                pl.BlockSpec((1, C), lambda b: (0, 0)),                 # gamma
                pl.BlockSpec((1, C), lambda b: (0, 0)),                 # beta
                pl.BlockSpec((C, C), lambda b: (0, 0)),                 # wp
                pl.BlockSpec((1, C), lambda b: (0, 0)),                 # bp
            ],
            out_specs=(
                pl.BlockSpec((1, N, C), lambda b: (b, 0, 0)),
                pl.BlockSpec((1, num_heads, N, N), lambda b: (b, 0, 0, 0)),
            )),
        compiler_params=pltpu.CompilerParams(
            dimension_semantics=("parallel",)),
    )(x, wqkv, bqkv, params["w_up"], params["b_up"].reshape(1, C),
      params["gamma"].reshape(1, C), params["beta"].reshape(1, C),
      params["wp"], params["bp"].reshape(1, C))

    attn_vector = attn.reshape(B, 1, num_heads * N * N)   # contiguous -> free reshape
    return out, attn_vector


# ----------------------------- pure-JAX reference -----------------------------

def reference_forward(x, H, W, params, num_heads=8):
    B, N, C = x.shape
    hd = C // num_heads
    scale = hd ** (-0.5)
    q = x @ params["wq"] + params["bq"]
    kvl = x @ params["wkv"] + params["bkv"]
    q = q.reshape(B, N, num_heads, hd).transpose(0, 2, 1, 3)
    kv = kvl.reshape(B, N, 2, num_heads, hd).transpose(2, 0, 3, 1, 4)
    k, v = kv[0], kv[1]
    s = jnp.einsum("bhnd,bhmd->bhnm", q, k) * scale
    attn = jax.nn.softmax(s, axis=-1)
    attn_vector = attn.reshape(B, 1, num_heads * N * N)
    x_attn = jnp.einsum("bhnm,bhmd->bhnd", attn, v).transpose(0, 2, 1, 3).reshape(B, N, C)
    identity = jnp.swapaxes(v, -1, -2).reshape(B, C, H, W)
    idn_nhwc = jnp.transpose(identity, (0, 2, 3, 1))
    rhs = params["w_up"].reshape(3, 3, 1, C)                     # HWIO, groups=C
    conv = jax.lax.conv_general_dilated(
        idn_nhwc, rhs, window_strides=(1, 1), padding="SAME",
        dimension_numbers=("NHWC", "HWIO", "NHWC"),
        feature_group_count=C) + params["b_up"]
    identity_seq = conv.reshape(B, N, C)
    mean = jnp.mean(identity_seq, axis=-1, keepdims=True)
    var = jnp.mean(jnp.square(identity_seq - mean), axis=-1, keepdims=True)
    ln = (identity_seq - mean) / jnp.sqrt(var + 1e-6)
    ln = ln * params["gamma"] + params["beta"]
    out = (x_attn + ln) @ params["wp"] + params["bp"]
    return out, attn_vector


# ----------------------------- main -----------------------------

if __name__ == "__main__":
    B, C, H, W = 2, 32, 8, 8
    num_heads = 8
    N = H * W

    key = jax.random.PRNGKey(0)
    ks = jax.random.split(key, 11)

    def nrm(k, shape, s=0.1):
        return s * jax.random.normal(k, shape, jnp.float32)

    params = dict(
        wq=nrm(ks[0], (C, C)),            bq=nrm(ks[1], (C,)),
        wkv=nrm(ks[2], (C, 2 * C)),       bkv=nrm(ks[3], (2 * C,)),
        w_up=nrm(ks[4], (9, C)),          b_up=nrm(ks[5], (C,)),   # depthwise 3x3 taps
        gamma=1.0 + nrm(ks[6], (C,)),     beta=nrm(ks[7], (C,)),   # up_norm LayerNorm
        wp=nrm(ks[8], (C, C)),            bp=nrm(ks[9], (C,)),     # proj Linear
    )
    x = jax.random.normal(ks[10], (B, N, C), jnp.float32)

    out, attn_vec = attention_with_restrict_forward(x, H, W, params, num_heads)
    jax.block_until_ready((out, attn_vec))

    ref_out, ref_attn_vec = reference_forward(x, H, W, params, num_heads)
    assert out.shape == (B, N, C)
    assert attn_vec.shape == (B, 1, num_heads * N * N)
    assert jnp.allclose(out, ref_out, rtol=1e-4, atol=1e-4), \
        float(jnp.max(jnp.abs(out - ref_out)))
    assert jnp.allclose(attn_vec, ref_attn_vec, rtol=1e-4, atol=1e-5), \
        float(jnp.max(jnp.abs(attn_vec - ref_attn_vec)))
    print("KERNEL_OK")
</pallas_src>

<mosaic_0001>
module attributes {stable_mosaic.version = 11 : i64} {
  func.func @_fused_attention_kernel(%arg0: i32, %arg1: memref<1x64x32xf32, #tpu.memory_space<vmem>>, %arg2: memref<32x96xf32, #tpu.memory_space<vmem>>, %arg3: memref<1x96xf32, #tpu.memory_space<vmem>>, %arg4: memref<9x32xf32, #tpu.memory_space<vmem>>, %arg5: memref<1x32xf32, #tpu.memory_space<vmem>>, %arg6: memref<1x32xf32, #tpu.memory_space<vmem>>, %arg7: memref<1x32xf32, #tpu.memory_space<vmem>>, %arg8: memref<32x32xf32, #tpu.memory_space<vmem>>, %arg9: memref<1x32xf32, #tpu.memory_space<vmem>>, %arg10: memref<1x64x32xf32, #tpu.memory_space<vmem>>, %arg11: memref<1x8x64x64xf32, #tpu.memory_space<vmem>>) attributes {dimension_semantics = [#tpu.dimension_semantics<parallel>], iteration_bounds = array<i64: 2>, scalar_prefetch = 0 : i64, scratch_operands = 0 : i64, tpu.core_type = #tpu.core_type<tc>, window_params = [{transform_indices = @transform_0, window_bounds = array<i64: 1, 64, 32>}, {pipeline_mode = #tpu.pipeline_mode<synchronous>, transform_indices = @transform_1, window_bounds = array<i64: 32, 96>}, {pipeline_mode = #tpu.pipeline_mode<synchronous>, transform_indices = @transform_2, window_bounds = array<i64: 1, 96>}, {pipeline_mode = #tpu.pipeline_mode<synchronous>, transform_indices = @transform_3, window_bounds = array<i64: 9, 32>}, {pipeline_mode = #tpu.pipeline_mode<synchronous>, transform_indices = @transform_4, window_bounds = array<i64: 1, 32>}, {pipeline_mode = #tpu.pipeline_mode<synchronous>, transform_indices = @transform_5, window_bounds = array<i64: 1, 32>}, {pipeline_mode = #tpu.pipeline_mode<synchronous>, transform_indices = @transform_6, window_bounds = array<i64: 1, 32>}, {pipeline_mode = #tpu.pipeline_mode<synchronous>, transform_indices = @transform_7, window_bounds = array<i64: 32, 32>}, {pipeline_mode = #tpu.pipeline_mode<synchronous>, transform_indices = @transform_8, window_bounds = array<i64: 1, 32>}, {transform_indices = @transform_9, window_bounds = array<i64: 1, 64, 32>}, {transform_indices = @transform_10, window_bounds = array<i64: 1, 8, 64, 64>}]} {
    %c0 = arith.constant 0 : index
    %c0_0 = arith.constant 0 : index
    %c0_1 = arith.constant 0 : index
    %0 = vector.load %arg1[%c0, %c0_0, %c0_1] : memref<1x64x32xf32, #tpu.memory_space<vmem>>, vector<1x64x32xf32>
    %1 = vector.shape_cast %0 : vector<1x64x32xf32> to vector<64x32xf32>
    %c0_2 = arith.constant 0 : index
    %c0_3 = arith.constant 0 : index
    %2 = vector.load %arg2[%c0_2, %c0_3] : memref<32x96xf32, #tpu.memory_space<vmem>>, vector<32x96xf32>
    %cst = arith.constant dense<0.000000e+00> : vector<64x96xf32>
    %3 = tpu.matmul %1, %2, %cst {dimension_numbers = #tpu.dot_dimension_numbers<[1], [0], [0], [1], [0, 0, 1, 1], [], []>} : vector<64x32xf32>, vector<32x96xf32>, vector<64x96xf32> -> vector<64x96xf32>
    %c0_4 = arith.constant 0 : index
    %c0_5 = arith.constant 0 : index
    %4 = vector.load %arg3[%c0_4, %c0_5] : memref<1x96xf32, #tpu.memory_space<vmem>>, vector<1x96xf32>
    %5 = vector.broadcast %4 : vector<1x96xf32> to vector<64x96xf32>
    %6 = arith.addf %3, %5 : vector<64x96xf32>
    %7 = vector.extract_strided_slice %6 {offsets = [0, 0], sizes = [64, 32], strides = [1, 1]} : vector<64x96xf32> to vector<64x32xf32>
    %8 = vector.extract_strided_slice %6 {offsets = [0, 32], sizes = [64, 32], strides = [1, 1]} : vector<64x96xf32> to vector<64x32xf32>
    %9 = vector.extract_strided_slice %6 {offsets = [0, 64], sizes = [64, 32], strides = [1, 1]} : vector<64x96xf32> to vector<64x32xf32>
    %10 = vector.extract_strided_slice %7 {offsets = [0, 0], sizes = [64, 4], strides = [1, 1]} : vector<64x32xf32> to vector<64x4xf32>
    %11 = vector.extract_strided_slice %8 {offsets = [0, 0], sizes = [64, 4], strides = [1, 1]} : vector<64x32xf32> to vector<64x4xf32>
    %12 = vector.extract_strided_slice %9 {offsets = [0, 0], sizes = [64, 4], strides = [1, 1]} : vector<64x32xf32> to vector<64x4xf32>
    %cst_6 = arith.constant dense<0.000000e+00> : vector<64x64xf32>
    %13 = tpu.matmul %10, %11, %cst_6 {dimension_numbers = #tpu.dot_dimension_numbers<[1], [1], [0], [0], [0, 0, 1, 0], [], []>} : vector<64x4xf32>, vector<64x4xf32>, vector<64x64xf32> -> vector<64x64xf32>
    %cst_7 = arith.constant 5.000000e-01 : f32
    %14 = vector.broadcast %cst_7 : f32 to vector<64x64xf32>
    %15 = arith.mulf %13, %14 : vector<64x64xf32>
    %cst_8 = arith.constant dense<0xFF800000> : vector<64xf32>
    %16 = vector.multi_reduction <maximumf>, %15, %cst_8 [1] : vector<64x64xf32> to vector<64xf32>
    %17 = vector.shape_cast %16 : vector<64xf32> to vector<64x1xf32>
    %18 = vector.broadcast %17 : vector<64x1xf32> to vector<64x64xf32>
    %19 = arith.subf %15, %18 : vector<64x64xf32>
    %20 = math.exp %19 : vector<64x64xf32>
    %cst_9 = arith.constant dense<0.000000e+00> : vector<64xf32>
    %21 = vector.multi_reduction <add>, %20, %cst_9 [1] : vector<64x64xf32> to vector<64xf32>
    %22 = vector.shape_cast %21 : vector<64xf32> to vector<64x1xf32>
    %23 = vector.broadcast %22 : vector<64x1xf32> to vector<64x64xf32>
    %24 = arith.divf %20, %23 : vector<64x64xf32>
    %c0_10 = arith.constant 0 : index
    %c0_11 = arith.constant 0 : index
    %c0_12 = arith.constant 0 : index
    %c0_13 = arith.constant 0 : index
    %25 = vector.load %arg11[%c0_10, %c0_11, %c0_12, %c0_13] : memref<1x8x64x64xf32, #tpu.memory_space<vmem>>, vector<1x1x64x64xf32>
    %26 = vector.shape_cast %25 : vector<1x1x64x64xf32> to vector<64x64xf32>
    %27 = vector.shape_cast %24 : vector<64x64xf32> to vector<1x1x64x64xf32>
    tpu.vector_store %arg11[%c0_10, %c0_11, %c0_12, %c0_13], %27 {strides = array<i32>} : memref<1x8x64x64xf32, #tpu.memory_space<vmem>>, vector<1x1x64x64xf32>,
    %cst_14 = arith.constant dense<0.000000e+00> : vector<64x4xf32>
    %28 = tpu.matmul %24, %12, %cst_14 {dimension_numbers = #tpu.dot_dimension_numbers<[1], [0], [0], [1], [0, 0, 1, 1], [], []>} : vector<64x64xf32>, vector<64x4xf32>, vector<64x4xf32> -> vector<64x4xf32>
    %29 = vector.extract_strided_slice %7 {offsets = [0, 4], sizes = [64, 4], strides = [1, 1]} : vector<64x32xf32> to vector<64x4xf32>
    %30 = vector.extract_strided_slice %8 {offsets = [0, 4], sizes = [64, 4], strides = [1, 1]} : vector<64x32xf32> to vector<64x4xf32>
    %31 = vector.extract_strided_slice %9 {offsets = [0, 4], sizes = [64, 4], strides = [1, 1]} : vector<64x32xf32> to vector<64x4xf32>
    %cst_15 = arith.constant dense<0.000000e+00> : vector<64x64xf32>
    %32 = tpu.matmul %29, %30, %cst_15 {dimension_numbers = #tpu.dot_dimension_numbers<[1], [1], [0], [0], [0, 0, 1, 0], [], []>} : vector<64x4xf32>, vector<64x4xf32>, vector<64x64xf32> -> vector<64x64xf32>
    %cst_16 = arith.constant 5.000000e-01 : f32
    %33 = vector.broadcast %cst_16 : f32 to vector<64x64xf32>
    %34 = arith.mulf %32, %33 : vector<64x64xf32>
    %cst_17 = arith.constant dense<0xFF800000> : vector<64xf32>
    %35 = vector.multi_reduction <maximumf>, %34, %cst_17 [1] : vector<64x64xf32> to vector<64xf32>
    %36 = vector.shape_cast %35 : vector<64xf32> to vector<64x1xf32>
    %37 = vector.broadcast %36 : vector<64x1xf32> to vector<64x64xf32>
    %38 = arith.subf %34, %37 : vector<64x64xf32>
    %39 = math.exp %38 : vector<64x64xf32>
    %cst_18 = arith.constant dense<0.000000e+00> : vector<64xf32>
    %40 = vector.multi_reduction <add>, %39, %cst_18 [1] : vector<64x64xf32> to vector<64xf32>
    %41 = vector.shape_cast %40 : vector<64xf32> to vector<64x1xf32>
    %42 = vector.broadcast %41 : vector<64x1xf32> to vector<64x64xf32>
    %43 = arith.divf %39, %42 : vector<64x64xf32>
    %c0_19 = arith.constant 0 : index
    %c1 = arith.constant 1 : index
    %c0_20 = arith.constant 0 : index
    %c0_21 = arith.constant 0 : index
    %44 = vector.load %arg11[%c0_19, %c1, %c0_20, %c0_21] : memref<1x8x64x64xf32, #tpu.memory_space<vmem>>, vector<1x1x64x64xf32>
    %45 = vector.shape_cast %44 : vector<1x1x64x64xf32> to vector<64x64xf32>
    %46 = vector.shape_cast %43 : vector<64x64xf32> to vector<1x1x64x64xf32>
    tpu.vector_store %arg11[%c0_19, %c1, %c0_20, %c0_21], %46 {strides = array<i32>} : memref<1x8x64x64xf32, #tpu.memory_space<vmem>>, vector<1x1x64x64xf32>,
    %cst_22 = arith.constant dense<0.000000e+00> : vector<64x4xf32>
    %47 = tpu.matmul %43, %31, %cst_22 {dimension_numbers = #tpu.dot_dimension_numbers<[1], [0], [0], [1], [0, 0, 1, 1], [], []>} : vector<64x64xf32>, vector<64x4xf32>, vector<64x4xf32> -> vector<64x4xf32>
    %48 = vector.extract_strided_slice %7 {offsets = [0, 8], sizes = [64, 4], strides = [1, 1]} : vector<64x32xf32> to vector<64x4xf32>
    %49 = vector.extract_strided_slice %8 {offsets = [0, 8], sizes = [64, 4], strides = [1, 1]} : vector<64x32xf32> to vector<64x4xf32>
    %50 = vector.extract_strided_slice %9 {offsets = [0, 8], sizes = [64, 4], strides = [1, 1]} : vector<64x32xf32> to vector<64x4xf32>
    %cst_23 = arith.constant dense<0.000000e+00> : vector<64x64xf32>
    %51 = tpu.matmul %48, %49, %cst_23 {dimension_numbers = #tpu.dot_dimension_numbers<[1], [1], [0], [0], [0, 0, 1, 0], [], []>} : vector<64x4xf32>, vector<64x4xf32>, vector<64x64xf32> -> vector<64x64xf32>
    %cst_24 = arith.constant 5.000000e-01 : f32
    %52 = vector.broadcast %cst_24 : f32 to vector<64x64xf32>
    %53 = arith.mulf %51, %52 : vector<64x64xf32>
    %cst_25 = arith.constant dense<0xFF800000> : vector<64xf32>
    %54 = vector.multi_reduction <maximumf>, %53, %cst_25 [1] : vector<64x64xf32> to vector<64xf32>
    %55 = vector.shape_cast %54 : vector<64xf32> to vector<64x1xf32>
    %56 = vector.broadcast %55 : vector<64x1xf32> to vector<64x64xf32>
    %57 = arith.subf %53, %56 : vector<64x64xf32>
    %58 = math.exp %57 : vector<64x64xf32>
    %cst_26 = arith.constant dense<0.000000e+00> : vector<64xf32>
    %59 = vector.multi_reduction <add>, %58, %cst_26 [1] : vector<64x64xf32> to vector<64xf32>
    %60 = vector.shape_cast %59 : vector<64xf32> to vector<64x1xf32>
    %61 = vector.broadcast %60 : vector<64x1xf32> to vector<64x64xf32>
    %62 = arith.divf %58, %61 : vector<64x64xf32>
    %c0_27 = arith.constant 0 : index
    %c2 = arith.constant 2 : index
    %c0_28 = arith.constant 0 : index
    %c0_29 = arith.constant 0 : index
    %63 = vector.load %arg11[%c0_27, %c2, %c0_28, %c0_29] : memref<1x8x64x64xf32, #tpu.memory_space<vmem>>, vector<1x1x64x64xf32>
    %64 = vector.shape_cast %63 : vector<1x1x64x64xf32> to vector<64x64xf32>
    %65 = vector.shape_cast %62 : vector<64x64xf32> to vector<1x1x64x64xf32>
    tpu.vector_store %arg11[%c0_27, %c2, %c0_28, %c0_29], %65 {strides = array<i32>} : memref<1x8x64x64xf32, #tpu.memory_space<vmem>>, vector<1x1x64x64xf32>,
    %cst_30 = arith.constant dense<0.000000e+00> : vector<64x4xf32>
    %66 = tpu.matmul %62, %50, %cst_30 {dimension_numbers = #tpu.dot_dimension_numbers<[1], [0], [0], [1], [0, 0, 1, 1], [], []>} : vector<64x64xf32>, vector<64x4xf32>, vector<64x4xf32> -> vector<64x4xf32>
    %67 = vector.extract_strided_slice %7 {offsets = [0, 12], sizes = [64, 4], strides = [1, 1]} : vector<64x32xf32> to vector<64x4xf32>
    %68 = vector.extract_strided_slice %8 {offsets = [0, 12], sizes = [64, 4], strides = [1, 1]} : vector<64x32xf32> to vector<64x4xf32>
    %69 = vector.extract_strided_slice %9 {offsets = [0, 12], sizes = [64, 4], strides = [1, 1]} : vector<64x32xf32> to vector<64x4xf32>
    %cst_31 = arith.constant dense<0.000000e+00> : vector<64x64xf32>
    %70 = tpu.matmul %67, %68, %cst_31 {dimension_numbers = #tpu.dot_dimension_numbers<[1], [1], [0], [0], [0, 0, 1, 0], [], []>} : vector<64x4xf32>, vector<64x4xf32>, vector<64x64xf32> -> vector<64x64xf32>
    %cst_32 = arith.constant 5.000000e-01 : f32
    %71 = vector.broadcast %cst_32 : f32 to vector<64x64xf32>
    %72 = arith.mulf %70, %71 : vector<64x64xf32>
    %cst_33 = arith.constant dense<0xFF800000> : vector<64xf32>
    %73 = vector.multi_reduction <maximumf>, %72, %cst_33 [1] : vector<64x64xf32> to vector<64xf32>
    %74 = vector.shape_cast %73 : vector<64xf32> to vector<64x1xf32>
    %75 = vector.broadcast %74 : vector<64x1xf32> to vector<64x64xf32>
    %76 = arith.subf %72, %75 : vector<64x64xf32>
    %77 = math.exp %76 : vector<64x64xf32>
    %cst_34 = arith.constant dense<0.000000e+00> : vector<64xf32>
    %78 = vector.multi_reduction <add>, %77, %cst_34 [1] : vector<64x64xf32> to vector<64xf32>
    %79 = vector.shape_cast %78 : vector<64xf32> to vector<64x1xf32>
    %80 = vector.broadcast %79 : vector<64x1xf32> to vector<64x64xf32>
    %81 = arith.divf %77, %80 : vector<64x64xf32>
    %c0_35 = arith.constant 0 : index
    %c3 = arith.constant 3 : index
    %c0_36 = arith.constant 0 : index
    %c0_37 = arith.constant 0 : index
    %82 = vector.load %arg11[%c0_35, %c3, %c0_36, %c0_37] : memref<1x8x64x64xf32, #tpu.memory_space<vmem>>, vector<1x1x64x64xf32>
    %83 = vector.shape_cast %82 : vector<1x1x64x64xf32> to vector<64x64xf32>
    %84 = vector.shape_cast %81 : vector<64x64xf32> to vector<1x1x64x64xf32>
    tpu.vector_store %arg11[%c0_35, %c3, %c0_36, %c0_37], %84 {strides = array<i32>} : memref<1x8x64x64xf32, #tpu.memory_space<vmem>>, vector<1x1x64x64xf32>,
    %cst_38 = arith.constant dense<0.000000e+00> : vector<64x4xf32>
    %85 = tpu.matmul %81, %69, %cst_38 {dimension_numbers = #tpu.dot_dimension_numbers<[1], [0], [0], [1], [0, 0, 1, 1], [], []>} : vector<64x64xf32>, vector<64x4xf32>, vector<64x4xf32> -> vector<64x4xf32>
    %86 = vector.extract_strided_slice %7 {offsets = [0, 16], sizes = [64, 4], strides = [1, 1]} : vector<64x32xf32> to vector<64x4xf32>
    %87 = vector.extract_strided_slice %8 {offsets = [0, 16], sizes = [64, 4], strides = [1, 1]} : vector<64x32xf32> to vector<64x4xf32>
    %88 = vector.extract_strided_slice %9 {offsets = [0, 16], sizes = [64, 4], strides = [1, 1]} : vector<64x32xf32> to vector<64x4xf32>
    %cst_39 = arith.constant dense<0.000000e+00> : vector<64x64xf32>
    %89 = tpu.matmul %86, %87, %cst_39 {dimension_numbers = #tpu.dot_dimension_numbers<[1], [1], [0], [0], [0, 0, 1, 0], [], []>} : vector<64x4xf32>, vector<64x4xf32>, vector<64x64xf32> -> vector<64x64xf32>
    %cst_40 = arith.constant 5.000000e-01 : f32
    %90 = vector.broadcast %cst_40 : f32 to vector<64x64xf32>
    %91 = arith.mulf %89, %90 : vector<64x64xf32>
    %cst_41 = arith.constant dense<0xFF800000> : vector<64xf32>
    %92 = vector.multi_reduction <maximumf>, %91, %cst_41 [1] : vector<64x64xf32> to vector<64xf32>
    %93 = vector.shape_cast %92 : vector<64xf32> to vector<64x1xf32>
    %94 = vector.broadcast %93 : vector<64x1xf32> to vector<64x64xf32>
    %95 = arith.subf %91, %94 : vector<64x64xf32>
    %96 = math.exp %95 : vector<64x64xf32>
    %cst_42 = arith.constant dense<0.000000e+00> : vector<64xf32>
    %97 = vector.multi_reduction <add>, %96, %cst_42 [1] : vector<64x64xf32> to vector<64xf32>
    %98 = vector.shape_cast %97 : vector<64xf32> to vector<64x1xf32>
    %99 = vector.broadcast %98 : vector<64x1xf32> to vector<64x64xf32>
    %100 = arith.divf %96, %99 : vector<64x64xf32>
    %c0_43 = arith.constant 0 : index
    %c4 = arith.constant 4 : index
    %c0_44 = arith.constant 0 : index
    %c0_45 = arith.constant 0 : index
    %101 = vector.load %arg11[%c0_43, %c4, %c0_44, %c0_45] : memref<1x8x64x64xf32, #tpu.memory_space<vmem>>, vector<1x1x64x64xf32>
    %102 = vector.shape_cast %101 : vector<1x1x64x64xf32> to vector<64x64xf32>
    %103 = vector.shape_cast %100 : vector<64x64xf32> to vector<1x1x64x64xf32>
    tpu.vector_store %arg11[%c0_43, %c4, %c0_44, %c0_45], %103 {strides = array<i32>} : memref<1x8x64x64xf32, #tpu.memory_space<vmem>>, vector<1x1x64x64xf32>,
    %cst_46 = arith.constant dense<0.000000e+00> : vector<64x4xf32>
    %104 = tpu.matmul %100, %88, %cst_46 {dimension_numbers = #tpu.dot_dimension_numbers<[1], [0], [0], [1], [0, 0, 1, 1], [], []>} : vector<64x64xf32>, vector<64x4xf32>, vector<64x4xf32> -> vector<64x4xf32>
    %105 = vector.extract_strided_slice %7 {offsets = [0, 20], sizes = [64, 4], strides = [1, 1]} : vector<64x32xf32> to vector<64x4xf32>
    %106 = vector.extract_strided_slice %8 {offsets = [0, 20], sizes = [64, 4], strides = [1, 1]} : vector<64x32xf32> to vector<64x4xf32>
    %107 = vector.extract_strided_slice %9 {offsets = [0, 20], sizes = [64, 4], strides = [1, 1]} : vector<64x32xf32> to vector<64x4xf32>
    %cst_47 = arith.constant dense<0.000000e+00> : vector<64x64xf32>
    %108 = tpu.matmul %105, %106, %cst_47 {dimension_numbers = #tpu.dot_dimension_numbers<[1], [1], [0], [0], [0, 0, 1, 0], [], []>} : vector<64x4xf32>, vector<64x4xf32>, vector<64x64xf32> -> vector<64x64xf32>
    %cst_48 = arith.constant 5.000000e-01 : f32
    %109 = vector.broadcast %cst_48 : f32 to vector<64x64xf32>
    %110 = arith.mulf %108, %109 : vector<64x64xf32>
    %cst_49 = arith.constant dense<0xFF800000> : vector<64xf32>
    %111 = vector.multi_reduction <maximumf>, %110, %cst_49 [1] : vector<64x64xf32> to vector<64xf32>
    %112 = vector.shape_cast %111 : vector<64xf32> to vector<64x1xf32>
    %113 = vector.broadcast %112 : vector<64x1xf32> to vector<64x64xf32>
    %114 = arith.subf %110, %113 : vector<64x64xf32>
    %115 = math.exp %114 : vector<64x64xf32>
    %cst_50 = arith.constant dense<0.000000e+00> : vector<64xf32>
    %116 = vector.multi_reduction <add>, %115, %cst_50 [1] : vector<64x64xf32> to vector<64xf32>
    %117 = vector.shape_cast %116 : vector<64xf32> to vector<64x1xf32>
    %118 = vector.broadcast %117 : vector<64x1xf32> to vector<64x64xf32>
    %119 = arith.divf %115, %118 : vector<64x64xf32>
    %c0_51 = arith.constant 0 : index
    %c5 = arith.constant 5 : index
    %c0_52 = arith.constant 0 : index
    %c0_53 = arith.constant 0 : index
    %120 = vector.load %arg11[%c0_51, %c5, %c0_52, %c0_53] : memref<1x8x64x64xf32, #tpu.memory_space<vmem>>, vector<1x1x64x64xf32>
    %121 = vector.shape_cast %120 : vector<1x1x64x64xf32> to vector<64x64xf32>
    %122 = vector.shape_cast %119 : vector<64x64xf32> to vector<1x1x64x64xf32>
    tpu.vector_store %arg11[%c0_51, %c5, %c0_52, %c0_53], %122 {strides = array<i32>} : memref<1x8x64x64xf32, #tpu.memory_space<vmem>>, vector<1x1x64x64xf32>,
    %cst_54 = arith.constant dense<0.000000e+00> : vector<64x4xf32>
    %123 = tpu.matmul %119, %107, %cst_54 {dimension_numbers = #tpu.dot_dimension_numbers<[1], [0], [0], [1], [0, 0, 1, 1], [], []>} : vector<64x64xf32>, vector<64x4xf32>, vector<64x4xf32> -> vector<64x4xf32>
    %124 = vector.extract_strided_slice %7 {offsets = [0, 24], sizes = [64, 4], strides = [1, 1]} : vector<64x32xf32> to vector<64x4xf32>
    %125 = vector.extract_strided_slice %8 {offsets = [0, 24], sizes = [64, 4], strides = [1, 1]} : vector<64x32xf32> to vector<64x4xf32>
    %126 = vector.extract_strided_slice %9 {offsets = [0, 24], sizes = [64, 4], strides = [1, 1]} : vector<64x32xf32> to vector<64x4xf32>
    %cst_55 = arith.constant dense<0.000000e+00> : vector<64x64xf32>
    %127 = tpu.matmul %124, %125, %cst_55 {dimension_numbers = #tpu.dot_dimension_numbers<[1], [1], [0], [0], [0, 0, 1, 0], [], []>} : vector<64x4xf32>, vector<64x4xf32>, vector<64x64xf32> -> vector<64x64xf32>
    %cst_56 = arith.constant 5.000000e-01 : f32
    %128 = vector.broadcast %cst_56 : f32 to vector<64x64xf32>
    %129 = arith.mulf %127, %128 : vector<64x64xf32>
    %cst_57 = arith.constant dense<0xFF800000> : vector<64xf32>
    %130 = vector.multi_reduction <maximumf>, %129, %cst_57 [1] : vector<64x64xf32> to vector<64xf32>
    %131 = vector.shape_cast %130 : vector<64xf32> to vector<64x1xf32>
    %132 = vector.broadcast %131 : vector<64x1xf32> to vector<64x64xf32>
    %133 = arith.subf %129, %132 : vector<64x64xf32>
    %134 = math.exp %133 : vector<64x64xf32>
    %cst_58 = arith.constant dense<0.000000e+00> : vector<64xf32>
    %135 = vector.multi_reduction <add>, %134, %cst_58 [1] : vector<64x64xf32> to vector<64xf32>
    %136 = vector.shape_cast %135 : vector<64xf32> to vector<64x1xf32>
    %137 = vector.broadcast %136 : vector<64x1xf32> to vector<64x64xf32>
    %138 = arith.divf %134, %137 : vector<64x64xf32>
    %c0_59 = arith.constant 0 : index
    %c6 = arith.constant 6 : index
    %c0_60 = arith.constant 0 : index
    %c0_61 = arith.constant 0 : index
    %139 = vector.load %arg11[%c0_59, %c6, %c0_60, %c0_61] : memref<1x8x64x64xf32, #tpu.memory_space<vmem>>, vector<1x1x64x64xf32>
    %140 = vector.shape_cast %139 : vector<1x1x64x64xf32> to vector<64x64xf32>
    %141 = vector.shape_cast %138 : vector<64x64xf32> to vector<1x1x64x64xf32>
    tpu.vector_store %arg11[%c0_59, %c6, %c0_60, %c0_61], %141 {strides = array<i32>} : memref<1x8x64x64xf32, #tpu.memory_space<vmem>>, vector<1x1x64x64xf32>,
    %cst_62 = arith.constant dense<0.000000e+00> : vector<64x4xf32>
    %142 = tpu.matmul %138, %126, %cst_62 {dimension_numbers = #tpu.dot_dimension_numbers<[1], [0], [0], [1], [0, 0, 1, 1], [], []>} : vector<64x64xf32>, vector<64x4xf32>, vector<64x4xf32> -> vector<64x4xf32>
    %143 = vector.extract_strided_slice %7 {offsets = [0, 28], sizes = [64, 4], strides = [1, 1]} : vector<64x32xf32> to vector<64x4xf32>
    %144 = vector.extract_strided_slice %8 {offsets = [0, 28], sizes = [64, 4], strides = [1, 1]} : vector<64x32xf32> to vector<64x4xf32>
    %145 = vector.extract_strided_slice %9 {offsets = [0, 28], sizes = [64, 4], strides = [1, 1]} : vector<64x32xf32> to vector<64x4xf32>
    %cst_63 = arith.constant dense<0.000000e+00> : vector<64x64xf32>
    %146 = tpu.matmul %143, %144, %cst_63 {dimension_numbers = #tpu.dot_dimension_numbers<[1], [1], [0], [0], [0, 0, 1, 0], [], []>} : vector<64x4xf32>, vector<64x4xf32>, vector<64x64xf32> -> vector<64x64xf32>
    %cst_64 = arith.constant 5.000000e-01 : f32
    %147 = vector.broadcast %cst_64 : f32 to vector<64x64xf32>
    %148 = arith.mulf %146, %147 : vector<64x64xf32>
    %cst_65 = arith.constant dense<0xFF800000> : vector<64xf32>
    %149 = vector.multi_reduction <maximumf>, %148, %cst_65 [1] : vector<64x64xf32> to vector<64xf32>
    %150 = vector.shape_cast %149 : vector<64xf32> to vector<64x1xf32>
    %151 = vector.broadcast %150 : vector<64x1xf32> to vector<64x64xf32>
    %152 = arith.subf %148, %151 : vector<64x64xf32>
    %153 = math.exp %152 : vector<64x64xf32>
    %cst_66 = arith.constant dense<0.000000e+00> : vector<64xf32>
    %154 = vector.multi_reduction <add>, %153, %cst_66 [1] : vector<64x64xf32> to vector<64xf32>
    %155 = vector.shape_cast %154 : vector<64xf32> to vector<64x1xf32>
    %156 = vector.broadcast %155 : vector<64x1xf32> to vector<64x64xf32>
    %157 = arith.divf %153, %156 : vector<64x64xf32>
    %c0_67 = arith.constant 0 : index
    %c7 = arith.constant 7 : index
    %c0_68 = arith.constant 0 : index
    %c0_69 = arith.constant 0 : index
    %158 = vector.load %arg11[%c0_67, %c7, %c0_68, %c0_69] : memref<1x8x64x64xf32, #tpu.memory_space<vmem>>, vector<1x1x64x64xf32>
    %159 = vector.shape_cast %158 : vector<1x1x64x64xf32> to vector<64x64xf32>
    %160 = vector.shape_cast %157 : vector<64x64xf32> to vector<1x1x64x64xf32>
    tpu.vector_store %arg11[%c0_67, %c7, %c0_68, %c0_69], %160 {strides = array<i32>} : memref<1x8x64x64xf32, #tpu.memory_space<vmem>>, vector<1x1x64x64xf32>,
    %cst_70 = arith.constant dense<0.000000e+00> : vector<64x4xf32>
    %161 = tpu.matmul %157, %145, %cst_70 {dimension_numbers = #tpu.dot_dimension_numbers<[1], [0], [0], [1], [0, 0, 1, 1], [], []>} : vector<64x64xf32>, vector<64x4xf32>, vector<64x4xf32> -> vector<64x4xf32>
    %162 = tpu.concatenate %28, %47, %66, %85, %104, %123, %142, %161 in 1 : vector<64x4xf32>, vector<64x4xf32>, vector<64x4xf32>, vector<64x4xf32>, vector<64x4xf32>, vector<64x4xf32>, vector<64x4xf32>, vector<64x4xf32> -> vector<64x32xf32>
    %c0_71 = arith.constant 0 : index
    %c0_72 = arith.constant 0 : index
    %163 = vector.load %arg4[%c0_71, %c0_72] : memref<9x32xf32, #tpu.memory_space<vmem>>, vector<9x32xf32>
    %164 = tpu.iota {dimensions = array<i32: 0>} : vector<64x1xi32>
    %c8_i32 = arith.constant 8 : i32
    %c0_i32 = arith.constant 0 : i32
    %165 = arith.cmpi eq, %c8_i32, %c0_i32 : i32
    %c1_i32 = arith.constant 1 : i32
    %166 = arith.select %165, %c1_i32, %c8_i32 : i32
    %167 = vector.broadcast %166 : i32 to vector<64x1xi32>
    %168 = arith.remsi %164, %167 : vector<64x1xi32>
    %c0_i32_73 = arith.constant 0 : i32
    %169 = vector.broadcast %c0_i32_73 : i32 to vector<64x1xi32>
    %170 = arith.cmpi ne, %168, %169 : vector<64x1xi32>
    %c0_i32_74 = arith.constant 0 : i32
    %171 = vector.broadcast %c0_i32_74 : i32 to vector<64x1xi32>
    %172 = arith.cmpi slt, %168, %171 : vector<64x1xi32>
    %c0_i32_75 = arith.constant 0 : i32
    %173 = arith.cmpi slt, %166, %c0_i32_75 : i32
    %174 = vector.broadcast %173 : i1 to vector<64x1xi1>
    %175 = vector.broadcast %174 : vector<64x1xi1> to vector<64x1xi1>
    %176 = arith.xori %172, %175 : vector<64x1xi1>
    %177 = arith.andi %176, %170 : vector<64x1xi1>
    %178 = vector.broadcast %166 : i32 to vector<64x1xi32>
    %179 = arith.addi %168, %178 : vector<64x1xi32>
    %180 = arith.select %177, %179, %168 : vector<64x1xi1>, vector<64x1xi32>
    %cst_76 = arith.constant 0.000000e+00 : f32
    %181 = vector.broadcast %cst_76 : f32 to vector<64x32xf32>
    %c-1_i32 = arith.constant -1 : i32
    %182 = vector.broadcast %c-1_i32 : i32 to vector<64x1xi32>
    %183 = arith.addi %180, %182 : vector<64x1xi32>
    %c0_i32_77 = arith.constant 0 : i32
    %184 = vector.broadcast %c0_i32_77 : i32 to vector<64x1xi32>
    %185 = arith.cmpi sge, %183, %184 : vector<64x1xi32>
    %c-1_i32_78 = arith.constant -1 : i32
    %186 = vector.broadcast %c-1_i32_78 : i32 to vector<64x1xi32>
    %187 = arith.addi %180, %186 : vector<64x1xi32>
    %c8_i32_79 = arith.constant 8 : i32
    %188 = vector.broadcast %c8_i32_79 : i32 to vector<64x1xi32>
    %189 = arith.cmpi slt, %187, %188 : vector<64x1xi32>
    %190 = arith.andi %185, %189 : vector<64x1xi1>
    %c-9_i32 = arith.constant -9 : i32
    %191 = vector.broadcast %c-9_i32 : i32 to vector<64x1xi32>
    %192 = arith.addi %164, %191 : vector<64x1xi32>
    %c0_i32_80 = arith.constant 0 : i32
    %193 = vector.broadcast %c0_i32_80 : i32 to vector<64x1xi32>
    %194 = arith.cmpi sge, %192, %193 : vector<64x1xi32>
    %195 = arith.andi %190, %194 : vector<64x1xi1>
    %c-9_i32_81 = arith.constant -9 : i32
    %196 = vector.broadcast %c-9_i32_81 : i32 to vector<64x1xi32>
    %197 = arith.addi %164, %196 : vector<64x1xi32>
    %c64_i32 = arith.constant 64 : i32
    %198 = vector.broadcast %c64_i32 : i32 to vector<64x1xi32>
    %199 = arith.cmpi slt, %197, %198 : vector<64x1xi32>
    %200 = arith.andi %195, %199 : vector<64x1xi1>
    %c9_i32 = arith.constant 9 : i32
    %201 = tpu.dynamic_rotate %9 by %c9_i32 dim 0 : vector<64x32xf32>, i32 -> vector<64x32xf32>
    %cst_82 = arith.constant 0.000000e+00 : f32
    %202 = vector.shape_cast %200 : vector<64x1xi1> to vector<64x1xi1>
    %203 = vector.broadcast %202 : vector<64x1xi1> to vector<64x32xi1>
    %204 = vector.broadcast %cst_82 : f32 to vector<64x32xf32>
    %205 = arith.select %203, %201, %204 : vector<64x32xi1>, vector<64x32xf32>
    %206 = vector.extract_strided_slice %163 {offsets = [0, 0], sizes = [1, 32], strides = [1, 1]} : vector<9x32xf32> to vector<1x32xf32>
    %207 = vector.broadcast %206 : vector<1x32xf32> to vector<64x32xf32>
    %208 = arith.mulf %205, %207 : vector<64x32xf32>
    %209 = arith.addf %181, %208 : vector<64x32xf32>
    %c0_i32_83 = arith.constant 0 : i32
    %210 = vector.broadcast %c0_i32_83 : i32 to vector<64x1xi32>
    %211 = arith.addi %180, %210 : vector<64x1xi32>
    %c0_i32_84 = arith.constant 0 : i32
    %212 = vector.broadcast %c0_i32_84 : i32 to vector<64x1xi32>
    %213 = arith.cmpi sge, %211, %212 : vector<64x1xi32>
    %c0_i32_85 = arith.constant 0 : i32
    %214 = vector.broadcast %c0_i32_85 : i32 to vector<64x1xi32>
    %215 = arith.addi %180, %214 : vector<64x1xi32>
    %c8_i32_86 = arith.constant 8 : i32
    %216 = vector.broadcast %c8_i32_86 : i32 to vector<64x1xi32>
    %217 = arith.cmpi slt, %215, %216 : vector<64x1xi32>
    %218 = arith.andi %213, %217 : vector<64x1xi1>
    %c-8_i32 = arith.constant -8 : i32
    %219 = vector.broadcast %c-8_i32 : i32 to vector<64x1xi32>
    %220 = arith.addi %164, %219 : vector<64x1xi32>
    %c0_i32_87 = arith.constant 0 : i32
    %221 = vector.broadcast %c0_i32_87 : i32 to vector<64x1xi32>
    %222 = arith.cmpi sge, %220, %221 : vector<64x1xi32>
    %223 = arith.andi %218, %222 : vector<64x1xi1>
    %c-8_i32_88 = arith.constant -8 : i32
    %224 = vector.broadcast %c-8_i32_88 : i32 to vector<64x1xi32>
    %225 = arith.addi %164, %224 : vector<64x1xi32>
    %c64_i32_89 = arith.constant 64 : i32
    %226 = vector.broadcast %c64_i32_89 : i32 to vector<64x1xi32>
    %227 = arith.cmpi slt, %225, %226 : vector<64x1xi32>
    %228 = arith.andi %223, %227 : vector<64x1xi1>
    %c8_i32_90 = arith.constant 8 : i32
    %229 = tpu.dynamic_rotate %9 by %c8_i32_90 dim 0 : vector<64x32xf32>, i32 -> vector<64x32xf32>
    %cst_91 = arith.constant 0.000000e+00 : f32
    %230 = vector.shape_cast %228 : vector<64x1xi1> to vector<64x1xi1>
    %231 = vector.broadcast %230 : vector<64x1xi1> to vector<64x32xi1>
    %232 = vector.broadcast %cst_91 : f32 to vector<64x32xf32>
    %233 = arith.select %231, %229, %232 : vector<64x32xi1>, vector<64x32xf32>
    %234 = vector.extract_strided_slice %163 {offsets = [1, 0], sizes = [1, 32], strides = [1, 1]} : vector<9x32xf32> to vector<1x32xf32>
    %235 = vector.broadcast %234 : vector<1x32xf32> to vector<64x32xf32>
    %236 = arith.mulf %233, %235 : vector<64x32xf32>
    %237 = arith.addf %209, %236 : vector<64x32xf32>
    %c1_i32_92 = arith.constant 1 : i32
    %238 = vector.broadcast %c1_i32_92 : i32 to vector<64x1xi32>
    %239 = arith.addi %180, %238 : vector<64x1xi32>
    %c0_i32_93 = arith.constant 0 : i32
    %240 = vector.broadcast %c0_i32_93 : i32 to vector<64x1xi32>
    %241 = arith.cmpi sge, %239, %240 : vector<64x1xi32>
    %c1_i32_94 = arith.constant 1 : i32
    %242 = vector.broadcast %c1_i32_94 : i32 to vector<64x1xi32>
    %243 = arith.addi %180, %242 : vector<64x1xi32>
    %c8_i32_95 = arith.constant 8 : i32
    %244 = vector.broadcast %c8_i32_95 : i32 to vector<64x1xi32>
    %245 = arith.cmpi slt, %243, %244 : vector<64x1xi32>
    %246 = arith.andi %241, %245 : vector<64x1xi1>
    %c-7_i32 = arith.constant -7 : i32
    %247 = vector.broadcast %c-7_i32 : i32 to vector<64x1xi32>
    %248 = arith.addi %164, %247 : vector<64x1xi32>
    %c0_i32_96 = arith.constant 0 : i32
    %249 = vector.broadcast %c0_i32_96 : i32 to vector<64x1xi32>
    %250 = arith.cmpi sge, %248, %249 : vector<64x1xi32>
    %251 = arith.andi %246, %250 : vector<64x1xi1>
    %c-7_i32_97 = arith.constant -7 : i32
    %252 = vector.broadcast %c-7_i32_97 : i32 to vector<64x1xi32>
    %253 = arith.addi %164, %252 : vector<64x1xi32>
    %c64_i32_98 = arith.constant 64 : i32
    %254 = vector.broadcast %c64_i32_98 : i32 to vector<64x1xi32>
    %255 = arith.cmpi slt, %253, %254 : vector<64x1xi32>
    %256 = arith.andi %251, %255 : vector<64x1xi1>
    %c7_i32 = arith.constant 7 : i32
    %257 = tpu.dynamic_rotate %9 by %c7_i32 dim 0 : vector<64x32xf32>, i32 -> vector<64x32xf32>
    %cst_99 = arith.constant 0.000000e+00 : f32
    %258 = vector.shape_cast %256 : vector<64x1xi1> to vector<64x1xi1>
    %259 = vector.broadcast %258 : vector<64x1xi1> to vector<64x32xi1>
    %260 = vector.broadcast %cst_99 : f32 to vector<64x32xf32>
    %261 = arith.select %259, %257, %260 : vector<64x32xi1>, vector<64x32xf32>
    %262 = vector.extract_strided_slice %163 {offsets = [2, 0], sizes = [1, 32], strides = [1, 1]} : vector<9x32xf32> to vector<1x32xf32>
    %263 = vector.broadcast %262 : vector<1x32xf32> to vector<64x32xf32>
    %264 = arith.mulf %261, %263 : vector<64x32xf32>
    %265 = arith.addf %237, %264 : vector<64x32xf32>
    %c-1_i32_100 = arith.constant -1 : i32
    %266 = vector.broadcast %c-1_i32_100 : i32 to vector<64x1xi32>
    %267 = arith.addi %180, %266 : vector<64x1xi32>
    %c0_i32_101 = arith.constant 0 : i32
    %268 = vector.broadcast %c0_i32_101 : i32 to vector<64x1xi32>
    %269 = arith.cmpi sge, %267, %268 : vector<64x1xi32>
    %c-1_i32_102 = arith.constant -1 : i32
    %270 = vector.broadcast %c-1_i32_102 : i32 to vector<64x1xi32>
    %271 = arith.addi %180, %270 : vector<64x1xi32>
    %c8_i32_103 = arith.constant 8 : i32
    %272 = vector.broadcast %c8_i32_103 : i32 to vector<64x1xi32>
    %273 = arith.cmpi slt, %271, %272 : vector<64x1xi32>
    %274 = arith.andi %269, %273 : vector<64x1xi1>
    %c-1_i32_104 = arith.constant -1 : i32
    %275 = vector.broadcast %c-1_i32_104 : i32 to vector<64x1xi32>
    %276 = arith.addi %164, %275 : vector<64x1xi32>
    %c0_i32_105 = arith.constant 0 : i32
    %277 = vector.broadcast %c0_i32_105 : i32 to vector<64x1xi32>
    %278 = arith.cmpi sge, %276, %277 : vector<64x1xi32>
    %279 = arith.andi %274, %278 : vector<64x1xi1>
    %c-1_i32_106 = arith.constant -1 : i32
    %280 = vector.broadcast %c-1_i32_106 : i32 to vector<64x1xi32>
    %281 = arith.addi %164, %280 : vector<64x1xi32>
    %c64_i32_107 = arith.constant 64 : i32
    %282 = vector.broadcast %c64_i32_107 : i32 to vector<64x1xi32>
    %283 = arith.cmpi slt, %281, %282 : vector<64x1xi32>
    %284 = arith.andi %279, %283 : vector<64x1xi1>
    %c1_i32_108 = arith.constant 1 : i32
    %285 = tpu.dynamic_rotate %9 by %c1_i32_108 dim 0 : vector<64x32xf32>, i32 -> vector<64x32xf32>
    %cst_109 = arith.constant 0.000000e+00 : f32
    %286 = vector.shape_cast %284 : vector<64x1xi1> to vector<64x1xi1>
    %287 = vector.broadcast %286 : vector<64x1xi1> to vector<64x32xi1>
    %288 = vector.broadcast %cst_109 : f32 to vector<64x32xf32>
    %289 = arith.select %287, %285, %288 : vector<64x32xi1>, vector<64x32xf32>
    %290 = vector.extract_strided_slice %163 {offsets = [3, 0], sizes = [1, 32], strides = [1, 1]} : vector<9x32xf32> to vector<1x32xf32>
    %291 = vector.broadcast %290 : vector<1x32xf32> to vector<64x32xf32>
    %292 = arith.mulf %289, %291 : vector<64x32xf32>
    %293 = arith.addf %265, %292 : vector<64x32xf32>
    %c0_i32_110 = arith.constant 0 : i32
    %294 = vector.broadcast %c0_i32_110 : i32 to vector<64x1xi32>
    %295 = arith.addi %180, %294 : vector<64x1xi32>
    %c0_i32_111 = arith.constant 0 : i32
    %296 = vector.broadcast %c0_i32_111 : i32 to vector<64x1xi32>
    %297 = arith.cmpi sge, %295, %296 : vector<64x1xi32>
    %c0_i32_112 = arith.constant 0 : i32
    %298 = vector.broadcast %c0_i32_112 : i32 to vector<64x1xi32>
    %299 = arith.addi %180, %298 : vector<64x1xi32>
    %c8_i32_113 = arith.constant 8 : i32
    %300 = vector.broadcast %c8_i32_113 : i32 to vector<64x1xi32>
    %301 = arith.cmpi slt, %299, %300 : vector<64x1xi32>
    %302 = arith.andi %297, %301 : vector<64x1xi1>
    %c0_i32_114 = arith.constant 0 : i32
    %303 = vector.broadcast %c0_i32_114 : i32 to vector<64x1xi32>
    %304 = arith.addi %164, %303 : vector<64x1xi32>
    %c0_i32_115 = arith.constant 0 : i32
    %305 = vector.broadcast %c0_i32_115 : i32 to vector<64x1xi32>
    %306 = arith.cmpi sge, %304, %305 : vector<64x1xi32>
    %307 = arith.andi %302, %306 : vector<64x1xi1>
    %c0_i32_116 = arith.constant 0 : i32
    %308 = vector.broadcast %c0_i32_116 : i32 to vector<64x1xi32>
    %309 = arith.addi %164, %308 : vector<64x1xi32>
    %c64_i32_117 = arith.constant 64 : i32
    %310 = vector.broadcast %c64_i32_117 : i32 to vector<64x1xi32>
    %311 = arith.cmpi slt, %309, %310 : vector<64x1xi32>
    %312 = arith.andi %307, %311 : vector<64x1xi1>
    %cst_118 = arith.constant 0.000000e+00 : f32
    %313 = vector.shape_cast %312 : vector<64x1xi1> to vector<64x1xi1>
    %314 = vector.broadcast %313 : vector<64x1xi1> to vector<64x32xi1>
    %315 = vector.broadcast %cst_118 : f32 to vector<64x32xf32>
    %316 = arith.select %314, %9, %315 : vector<64x32xi1>, vector<64x32xf32>
    %317 = vector.extract_strided_slice %163 {offsets = [4, 0], sizes = [1, 32], strides = [1, 1]} : vector<9x32xf32> to vector<1x32xf32>
    %318 = vector.broadcast %317 : vector<1x32xf32> to vector<64x32xf32>
    %319 = arith.mulf %316, %318 : vector<64x32xf32>
    %320 = arith.addf %293, %319 : vector<64x32xf32>
    %c1_i32_119 = arith.constant 1 : i32
    %321 = vector.broadcast %c1_i32_119 : i32 to vector<64x1xi32>
    %322 = arith.addi %180, %321 : vector<64x1xi32>
    %c0_i32_120 = arith.constant 0 : i32
    %323 = vector.broadcast %c0_i32_120 : i32 to vector<64x1xi32>
    %324 = arith.cmpi sge, %322, %323 : vector<64x1xi32>
    %c1_i32_121 = arith.constant 1 : i32
    %325 = vector.broadcast %c1_i32_121 : i32 to vector<64x1xi32>
    %326 = arith.addi %180, %325 : vector<64x1xi32>
    %c8_i32_122 = arith.constant 8 : i32
    %327 = vector.broadcast %c8_i32_122 : i32 to vector<64x1xi32>
    %328 = arith.cmpi slt, %326, %327 : vector<64x1xi32>
    %329 = arith.andi %324, %328 : vector<64x1xi1>
    %c1_i32_123 = arith.constant 1 : i32
    %330 = vector.broadcast %c1_i32_123 : i32 to vector<64x1xi32>
    %331 = arith.addi %164, %330 : vector<64x1xi32>
    %c0_i32_124 = arith.constant 0 : i32
    %332 = vector.broadcast %c0_i32_124 : i32 to vector<64x1xi32>
    %333 = arith.cmpi sge, %331, %332 : vector<64x1xi32>
    %334 = arith.andi %329, %333 : vector<64x1xi1>
    %c1_i32_125 = arith.constant 1 : i32
    %335 = vector.broadcast %c1_i32_125 : i32 to vector<64x1xi32>
    %336 = arith.addi %164, %335 : vector<64x1xi32>
    %c64_i32_126 = arith.constant 64 : i32
    %337 = vector.broadcast %c64_i32_126 : i32 to vector<64x1xi32>
    %338 = arith.cmpi slt, %336, %337 : vector<64x1xi32>
    %339 = arith.andi %334, %338 : vector<64x1xi1>
    %c63_i32 = arith.constant 63 : i32
    %340 = tpu.dynamic_rotate %9 by %c63_i32 dim 0 : vector<64x32xf32>, i32 -> vector<64x32xf32>
    %cst_127 = arith.constant 0.000000e+00 : f32
    %341 = vector.shape_cast %339 : vector<64x1xi1> to vector<64x1xi1>
    %342 = vector.broadcast %341 : vector<64x1xi1> to vector<64x32xi1>
    %343 = vector.broadcast %cst_127 : f32 to vector<64x32xf32>
    %344 = arith.select %342, %340, %343 : vector<64x32xi1>, vector<64x32xf32>
    %345 = vector.extract_strided_slice %163 {offsets = [5, 0], sizes = [1, 32], strides = [1, 1]} : vector<9x32xf32> to vector<1x32xf32>
    %346 = vector.broadcast %345 : vector<1x32xf32> to vector<64x32xf32>
    %347 = arith.mulf %344, %346 : vector<64x32xf32>
    %348 = arith.addf %320, %347 : vector<64x32xf32>
    %c-1_i32_128 = arith.constant -1 : i32
    %349 = vector.broadcast %c-1_i32_128 : i32 to vector<64x1xi32>
    %350 = arith.addi %180, %349 : vector<64x1xi32>
    %c0_i32_129 = arith.constant 0 : i32
    %351 = vector.broadcast %c0_i32_129 : i32 to vector<64x1xi32>
    %352 = arith.cmpi sge, %350, %351 : vector<64x1xi32>
    %c-1_i32_130 = arith.constant -1 : i32
    %353 = vector.broadcast %c-1_i32_130 : i32 to vector<64x1xi32>
    %354 = arith.addi %180, %353 : vector<64x1xi32>
    %c8_i32_131 = arith.constant 8 : i32
    %355 = vector.broadcast %c8_i32_131 : i32 to vector<64x1xi32>
    %356 = arith.cmpi slt, %354, %355 : vector<64x1xi32>
    %357 = arith.andi %352, %356 : vector<64x1xi1>
    %c7_i32_132 = arith.constant 7 : i32
    %358 = vector.broadcast %c7_i32_132 : i32 to vector<64x1xi32>
    %359 = arith.addi %164, %358 : vector<64x1xi32>
    %c0_i32_133 = arith.constant 0 : i32
    %360 = vector.broadcast %c0_i32_133 : i32 to vector<64x1xi32>
    %361 = arith.cmpi sge, %359, %360 : vector<64x1xi32>
    %362 = arith.andi %357, %361 : vector<64x1xi1>
    %c7_i32_134 = arith.constant 7 : i32
    %363 = vector.broadcast %c7_i32_134 : i32 to vector<64x1xi32>
    %364 = arith.addi %164, %363 : vector<64x1xi32>
    %c64_i32_135 = arith.constant 64 : i32
    %365 = vector.broadcast %c64_i32_135 : i32 to vector<64x1xi32>
    %366 = arith.cmpi slt, %364, %365 : vector<64x1xi32>
    %367 = arith.andi %362, %366 : vector<64x1xi1>
    %c57_i32 = arith.constant 57 : i32
    %368 = tpu.dynamic_rotate %9 by %c57_i32 dim 0 : vector<64x32xf32>, i32 -> vector<64x32xf32>
    %cst_136 = arith.constant 0.000000e+00 : f32
    %369 = vector.shape_cast %367 : vector<64x1xi1> to vector<64x1xi1>
    %370 = vector.broadcast %369 : vector<64x1xi1> to vector<64x32xi1>
    %371 = vector.broadcast %cst_136 : f32 to vector<64x32xf32>
    %372 = arith.select %370, %368, %371 : vector<64x32xi1>, vector<64x32xf32>
    %373 = vector.extract_strided_slice %163 {offsets = [6, 0], sizes = [1, 32], strides = [1, 1]} : vector<9x32xf32> to vector<1x32xf32>
    %374 = vector.broadcast %373 : vector<1x32xf32> to vector<64x32xf32>
    %375 = arith.mulf %372, %374 : vector<64x32xf32>
    %376 = arith.addf %348, %375 : vector<64x32xf32>
    %c0_i32_137 = arith.constant 0 : i32
    %377 = vector.broadcast %c0_i32_137 : i32 to vector<64x1xi32>
    %378 = arith.addi %180, %377 : vector<64x1xi32>
    %c0_i32_138 = arith.constant 0 : i32
    %379 = vector.broadcast %c0_i32_138 : i32 to vector<64x1xi32>
    %380 = arith.cmpi sge, %378, %379 : vector<64x1xi32>
    %c0_i32_139 = arith.constant 0 : i32
    %381 = vector.broadcast %c0_i32_139 : i32 to vector<64x1xi32>
    %382 = arith.addi %180, %381 : vector<64x1xi32>
    %c8_i32_140 = arith.constant 8 : i32
    %383 = vector.broadcast %c8_i32_140 : i32 to vector<64x1xi32>
    %384 = arith.cmpi slt, %382, %383 : vector<64x1xi32>
    %385 = arith.andi %380, %384 : vector<64x1xi1>
    %c8_i32_141 = arith.constant 8 : i32
    %386 = vector.broadcast %c8_i32_141 : i32 to vector<64x1xi32>
    %387 = arith.addi %164, %386 : vector<64x1xi32>
    %c0_i32_142 = arith.constant 0 : i32
    %388 = vector.broadcast %c0_i32_142 : i32 to vector<64x1xi32>
    %389 = arith.cmpi sge, %387, %388 : vector<64x1xi32>
    %390 = arith.andi %385, %389 : vector<64x1xi1>
    %c8_i32_143 = arith.constant 8 : i32
    %391 = vector.broadcast %c8_i32_143 : i32 to vector<64x1xi32>
    %392 = arith.addi %164, %391 : vector<64x1xi32>
    %c64_i32_144 = arith.constant 64 : i32
    %393 = vector.broadcast %c64_i32_144 : i32 to vector<64x1xi32>
    %394 = arith.cmpi slt, %392, %393 : vector<64x1xi32>
    %395 = arith.andi %390, %394 : vector<64x1xi1>
    %c56_i32 = arith.constant 56 : i32
    %396 = tpu.dynamic_rotate %9 by %c56_i32 dim 0 : vector<64x32xf32>, i32 -> vector<64x32xf32>
    %cst_145 = arith.constant 0.000000e+00 : f32
    %397 = vector.shape_cast %395 : vector<64x1xi1> to vector<64x1xi1>
    %398 = vector.broadcast %397 : vector<64x1xi1> to vector<64x32xi1>
    %399 = vector.broadcast %cst_145 : f32 to vector<64x32xf32>
    %400 = arith.select %398, %396, %399 : vector<64x32xi1>, vector<64x32xf32>
    %401 = vector.extract_strided_slice %163 {offsets = [7, 0], sizes = [1, 32], strides = [1, 1]} : vector<9x32xf32> to vector<1x32xf32>
    %402 = vector.broadcast %401 : vector<1x32xf32> to vector<64x32xf32>
    %403 = arith.mulf %400, %402 : vector<64x32xf32>
    %404 = arith.addf %376, %403 : vector<64x32xf32>
    %c1_i32_146 = arith.constant 1 : i32
    %405 = vector.broadcast %c1_i32_146 : i32 to vector<64x1xi32>
    %406 = arith.addi %180, %405 : vector<64x1xi32>
    %c0_i32_147 = arith.constant 0 : i32
    %407 = vector.broadcast %c0_i32_147 : i32 to vector<64x1xi32>
    %408 = arith.cmpi sge, %406, %407 : vector<64x1xi32>
    %c1_i32_148 = arith.constant 1 : i32
    %409 = vector.broadcast %c1_i32_148 : i32 to vector<64x1xi32>
    %410 = arith.addi %180, %409 : vector<64x1xi32>
    %c8_i32_149 = arith.constant 8 : i32
    %411 = vector.broadcast %c8_i32_149 : i32 to vector<64x1xi32>
    %412 = arith.cmpi slt, %410, %411 : vector<64x1xi32>
    %413 = arith.andi %408, %412 : vector<64x1xi1>
    %c9_i32_150 = arith.constant 9 : i32
    %414 = vector.broadcast %c9_i32_150 : i32 to vector<64x1xi32>
    %415 = arith.addi %164, %414 : vector<64x1xi32>
    %c0_i32_151 = arith.constant 0 : i32
    %416 = vector.broadcast %c0_i32_151 : i32 to vector<64x1xi32>
    %417 = arith.cmpi sge, %415, %416 : vector<64x1xi32>
    %418 = arith.andi %413, %417 : vector<64x1xi1>
    %c9_i32_152 = arith.constant 9 : i32
    %419 = vector.broadcast %c9_i32_152 : i32 to vector<64x1xi32>
    %420 = arith.addi %164, %419 : vector<64x1xi32>
    %c64_i32_153 = arith.constant 64 : i32
    %421 = vector.broadcast %c64_i32_153 : i32 to vector<64x1xi32>
    %422 = arith.cmpi slt, %420, %421 : vector<64x1xi32>
    %423 = arith.andi %418, %422 : vector<64x1xi1>
    %c55_i32 = arith.constant 55 : i32
    %424 = tpu.dynamic_rotate %9 by %c55_i32 dim 0 : vector<64x32xf32>, i32 -> vector<64x32xf32>
    %cst_154 = arith.constant 0.000000e+00 : f32
    %425 = vector.shape_cast %423 : vector<64x1xi1> to vector<64x1xi1>
    %426 = vector.broadcast %425 : vector<64x1xi1> to vector<64x32xi1>
    %427 = vector.broadcast %cst_154 : f32 to vector<64x32xf32>
    %428 = arith.select %426, %424, %427 : vector<64x32xi1>, vector<64x32xf32>
    %429 = vector.extract_strided_slice %163 {offsets = [8, 0], sizes = [1, 32], strides = [1, 1]} : vector<9x32xf32> to vector<1x32xf32>
    %430 = vector.broadcast %429 : vector<1x32xf32> to vector<64x32xf32>
    %431 = arith.mulf %428, %430 : vector<64x32xf32>
    %432 = arith.addf %404, %431 : vector<64x32xf32>
    %c0_155 = arith.constant 0 : index
    %c0_156 = arith.constant 0 : index
    %433 = vector.load %arg5[%c0_155, %c0_156] : memref<1x32xf32, #tpu.memory_space<vmem>>, vector<1x32xf32>
    %434 = vector.broadcast %433 : vector<1x32xf32> to vector<64x32xf32>
    %435 = arith.addf %432, %434 : vector<64x32xf32>
    %cst_157 = arith.constant dense<0.000000e+00> : vector<64xf32>
    %436 = vector.multi_reduction <add>, %435, %cst_157 [1] : vector<64x32xf32> to vector<64xf32>
    %437 = vector.shape_cast %436 : vector<64xf32> to vector<64x1xf32>
    %cst_158 = arith.constant 3.200000e+01 : f32
    %438 = vector.broadcast %cst_158 : f32 to vector<64x1xf32>
    %439 = arith.divf %437, %438 : vector<64x1xf32>
    %440 = vector.broadcast %439 : vector<64x1xf32> to vector<64x32xf32>
    %441 = arith.subf %435, %440 : vector<64x32xf32>
    %442 = arith.mulf %441, %441 : vector<64x32xf32>
    %cst_159 = arith.constant dense<0.000000e+00> : vector<64xf32>
    %443 = vector.multi_reduction <add>, %442, %cst_159 [1] : vector<64x32xf32> to vector<64xf32>
    %444 = vector.shape_cast %443 : vector<64xf32> to vector<64x1xf32>
    %cst_160 = arith.constant 3.200000e+01 : f32
    %445 = vector.broadcast %cst_160 : f32 to vector<64x1xf32>
    %446 = arith.divf %444, %445 : vector<64x1xf32>
    %447 = vector.broadcast %439 : vector<64x1xf32> to vector<64x32xf32>
    %448 = arith.subf %435, %447 : vector<64x32xf32>
    %cst_161 = arith.constant 9.99999997E-7 : f32
    %449 = vector.broadcast %cst_161 : f32 to vector<64x1xf32>
    %450 = arith.addf %446, %449 : vector<64x1xf32>
    %451 = math.rsqrt %450 : vector<64x1xf32>
    %452 = vector.broadcast %451 : vector<64x1xf32> to vector<64x32xf32>
    %453 = arith.mulf %448, %452 : vector<64x32xf32>
    %c0_162 = arith.constant 0 : index
    %c0_163 = arith.constant 0 : index
    %454 = vector.load %arg6[%c0_162, %c0_163] : memref<1x32xf32, #tpu.memory_space<vmem>>, vector<1x32xf32>
    %455 = vector.broadcast %454 : vector<1x32xf32> to vector<64x32xf32>
    %456 = arith.mulf %453, %455 : vector<64x32xf32>
    %c0_164 = arith.constant 0 : index
    %c0_165 = arith.constant 0 : index
    %457 = vector.load %arg7[%c0_164, %c0_165] : memref<1x32xf32, #tpu.memory_space<vmem>>, vector<1x32xf32>
    %458 = vector.broadcast %457 : vector<1x32xf32> to vector<64x32xf32>
    %459 = arith.addf %456, %458 : vector<64x32xf32>
    %460 = arith.addf %162, %459 : vector<64x32xf32>
    %c0_166 = arith.constant 0 : index
    %c0_167 = arith.constant 0 : index
    %461 = vector.load %arg8[%c0_166, %c0_167] : memref<32x32xf32, #tpu.memory_space<vmem>>, vector<32x32xf32>
    %cst_168 = arith.constant dense<0.000000e+00> : vector<64x32xf32>
    %462 = tpu.matmul %460, %461, %cst_168 {dimension_numbers = #tpu.dot_dimension_numbers<[1], [0], [0], [1], [0, 0, 1, 1], [], []>} : vector<64x32xf32>, vector<32x32xf32>, vector<64x32xf32> -> vector<64x32xf32>
    %c0_169 = arith.constant 0 : index
    %c0_170 = arith.constant 0 : index
    %463 = vector.load %arg9[%c0_169, %c0_170] : memref<1x32xf32, #tpu.memory_space<vmem>>, vector<1x32xf32>
    %464 = vector.broadcast %463 : vector<1x32xf32> to vector<64x32xf32>
    %465 = arith.addf %462, %464 : vector<64x32xf32>
    %c0_171 = arith.constant 0 : index
    %c0_172 = arith.constant 0 : index
    %c0_173 = arith.constant 0 : index
    %466 = vector.load %arg10[%c0_171, %c0_172, %c0_173] : memref<1x64x32xf32, #tpu.memory_space<vmem>>, vector<1x64x32xf32>
    %467 = vector.shape_cast %466 : vector<1x64x32xf32> to vector<64x32xf32>
    %468 = vector.shape_cast %465 : vector<64x32xf32> to vector<1x64x32xf32>
    tpu.vector_store %arg10[%c0_171, %c0_172, %c0_173], %468 {strides = array<i32>} : memref<1x64x32xf32, #tpu.memory_space<vmem>>, vector<1x64x32xf32>,
    return
  }
  func.func @transform_0(%arg0: i32) -> (i32, i32, i32) {
    %c0_i32 = arith.constant 0 : i32
    %c0_i32_0 = arith.constant 0 : i32
    %c0_i32_1 = arith.constant 0 : i32
    return %arg0, %c0_i32, %c0_i32_0 : i32, i32, i32
  }
  func.func @transform_1(%arg0: i32) -> (i32, i32) {
    %c0_i32 = arith.constant 0 : i32
    %c0_i32_0 = arith.constant 0 : i32
    %c0_i32_1 = arith.constant 0 : i32
    return %c0_i32, %c0_i32_0 : i32, i32
  }
  func.func @transform_2(%arg0: i32) -> (i32, i32) {
    %c0_i32 = arith.constant 0 : i32
    %c0_i32_0 = arith.constant 0 : i32
    %c0_i32_1 = arith.constant 0 : i32
    return %c0_i32, %c0_i32_0 : i32, i32
  }
  func.func @transform_3(%arg0: i32) -> (i32, i32) {
    %c0_i32 = arith.constant 0 : i32
    %c0_i32_0 = arith.constant 0 : i32
    %c0_i32_1 = arith.constant 0 : i32
    return %c0_i32, %c0_i32_0 : i32, i32
  }
  func.func @transform_4(%arg0: i32) -> (i32, i32) {
    %c0_i32 = arith.constant 0 : i32
    %c0_i32_0 = arith.constant 0 : i32
    %c0_i32_1 = arith.constant 0 : i32
    return %c0_i32, %c0_i32_0 : i32, i32
  }
  func.func @transform_5(%arg0: i32) -> (i32, i32) {
    %c0_i32 = arith.constant 0 : i32
    %c0_i32_0 = arith.constant 0 : i32
    %c0_i32_1 = arith.constant 0 : i32
    return %c0_i32, %c0_i32_0 : i32, i32
  }
  func.func @transform_6(%arg0: i32) -> (i32, i32) {
    %c0_i32 = arith.constant 0 : i32
    %c0_i32_0 = arith.constant 0 : i32
    %c0_i32_1 = arith.constant 0 : i32
    return %c0_i32, %c0_i32_0 : i32, i32
  }
  func.func @transform_7(%arg0: i32) -> (i32, i32) {
    %c0_i32 = arith.constant 0 : i32
    %c0_i32_0 = arith.constant 0 : i32
    %c0_i32_1 = arith.constant 0 : i32
    return %c0_i32, %c0_i32_0 : i32, i32
  }
  func.func @transform_8(%arg0: i32) -> (i32, i32) {
    %c0_i32 = arith.constant 0 : i32
    %c0_i32_0 = arith.constant 0 : i32
    %c0_i32_1 = arith.constant 0 : i32
    return %c0_i32, %c0_i32_0 : i32, i32
  }
  func.func @transform_9(%arg0: i32) -> (i32, i32, i32) {
    %c0_i32 = arith.constant 0 : i32
    %c0_i32_0 = arith.constant 0 : i32
    %c0_i32_1 = arith.constant 0 : i32
    return %arg0, %c0_i32, %c0_i32_0 : i32, i32, i32
  }
  func.func @transform_10(%arg0: i32) -> (i32, i32, i32, i32) {
    %c0_i32 = arith.constant 0 : i32
    %c0_i32_0 = arith.constant 0 : i32
    %c0_i32_1 = arith.constant 0 : i32
    %c0_i32_2 = arith.constant 0 : i32
    return %arg0, %c0_i32, %c0_i32_0, %c0_i32_1 : i32, i32, i32, i32
  }
}

</mosaic_0001>

<bundles_post_ra>
// kernel: attention_with_restrict_forward.1
= control target key start
LH: loop header
LB: loop body
LE: loop exit
PB: predicated region body
PF: predicated region fallthrough
CT: control target
= control target key end

     0   :  { %s7094_s13 = smov 0   ;;  %s9330_s0 = inlined_call_operand.vmem [shape: f32[2,64,32], index: 0, kind: input, shape index: {}]   ;;  %s9331_s1 = inlined_call_operand.vmem [shape: f32[32,96], index: 1, kind: input, shape index: {}]   ;;  %s9332_s2 = inlined_call_operand.vmem [shape: f32[1,96], index: 2, kind: input, shape index: {}]   ;;  %s9333_s3 = inlined_call_operand.vmem [shape: f32[9,32], index: 3, kind: input, shape index: {}]   ;;  %s9334_s4 = inlined_call_operand.vmem [shape: f32[1,32], index: 4, kind: input, shape index: {}]   ;;  %s9335_s5 = inlined_call_operand.vmem [shape: f32[1,32], index: 5, kind: input, shape index: {}]   ;;  %s9336_s6 = inlined_call_operand.vmem [shape: f32[1,32], index: 6, kind: input, shape index: {}]   ;;  %s9337_s7 = inlined_call_operand.vmem [shape: f32[32,32], index: 7, kind: input, shape index: {}]   ;;  %s9338_s8 = inlined_call_operand.vmem [shape: f32[1,32], index: 8, kind: input, shape index: {}]   ;;  %s9339_s9 = inlined_call_operand.vmem [shape: f32[2,64,32], index: 9, kind: output, shape index: {0}]   ;;  %s9340_s10 = inlined_call_operand.vmem [shape: f32[2,8,64,64], index: 10, kind: output, shape index: {1}]  }
   0x1 LB: > { %s5621_s14 = sadd.s32 4294967295, %s7007_s13   ;;  %p5625_p0 = scmp.ge.s32.totalorder %s7007_s13, 1  ;;  %s7007_s13 = sphi %s7094_s13, %s21_s13  }
   0x2   : > { %p315_p1 = scmp.lt.s32.totalorder %s7007_s13, 3 }
   0x4   : > { %p316_p2 = pnand %p5625_p0, %p315_p1 }
   0x6   : > { %319 = sbr.rel (%p316_p2) target bundleno = 5646 (0x160e), region = 56 }
   0xb   : > { %v384_v0 = vld [vmem:[%s9331_s1 + $0x18] sm:$0xff]  ;;  %v383_v1 = vld [vmem:[%s9331_s1 + $0x10] sm:$0xff]  ;;  %p358_p3 = scmp.lt.s32.totalorder %s5621_s14, 1  ;;  %v382_v2 = vld [vmem:[%s9331_s1 + $0x8] sm:$0xff]  ;;  %vm9342_vm0 = vcmask 261120   ;;  %vm9341_vm1 = vcmask 31744  }
   0xc   : > { %6187 = vmatprep.subr.mxu0 %v384_v0  ;;  %v381_v3 = vld [vmem:[%s9331_s1] sm:$0xff]  ;;  %s7009_s29 = smov 96   ;;  %s7010_s30 = smov 64   ;;  %vm692_vm2 = vcmask 523264  }
   0xd   : > { %6188 = vmatpush3.msra.mxu0 %v384_v0  ;;  %s9545_s14 = smov (!%p358_p3, %s5621_s14), 1  ;;  %v5632_v13 = vld [vmem:[%s9332_s2] ss:$0 sm:$0xff]  ;;  %s7011_s11 = smov 92  }
   0xe   : > { %6189 = vmatprep.subr.mxu0 %v383_v1  ;;  %s5904_s23 = sshll.u32 %s9545_s14, 6  ;;  %s7012_s12 = smov 124  }
   0xf   : > { %6190 = vmatpush3.msra.mxu0 %v383_v1  ;;  %s362_s26 = scalar_lea.vmem %s9330_s0, %s5904_s23  ;;  %s7013_s15 = smov 60  }
  0x10   : > { %6191 = vmatprep.subr.mxu0 %v382_v2  ;;  %v373_v4 = vld [vmem:[%s362_s26] sm:$0xff]  ;;  %v374_v5 = vld [vmem:[%s362_s26 + $0x8] sm:$0xff]  ;;  %v375_v6 = vld [vmem:[%s362_s26 + $0x10] sm:$0xff]  ;;  %s7014_s16 = smov 88   ;;  %s5906_s17 = sshll.u32 %s9545_s14, 9 }
  0x11   : > { %6192 = vmatpush3.msra.mxu0 %v382_v2  ;;  %6195 = vmatprep.mubr.msk.f32.mxu0 %vm9342_vm0, %v373_v4  ;;  %v376_v7 = vld [vmem:[%s362_s26 + $0x18] sm:$0xff]  ;;  %v377_v8 = vld [vmem:[%s362_s26 + $0x20] sm:$0xff]  ;;  %v378_v9 = vld [vmem:[%s362_s26 + $0x28] sm:$0xff]  ;;  %s7323_s20 = scalar_lea.vmem %s9340_s10, %s5906_s17  ;;  %s7015_s21 = smov 120  }
  0x12   : > { %6193 = vmatprep.subr.mxu0 %v381_v3  ;;  %v379_v10 = vld [vmem:[%s362_s26 + $0x30] sm:$0xff]  ;;  %v380_v11 = vld [vmem:[%s362_s26 + $0x38] sm:$0xff]  ;;  %s7016_s22 = smov 56   ;;  %s7017_s24 = smov 84  }
  0x13   : > { %6194 = vmatpush3.msra.mxu0 %v381_v3  ;;  %s7018_s25 = smov 116   ;;  %s7019_s26 = smov 52  }
  0x14   : > { %6196 = vmatmul.mubr.msk.f32.vlgmr.msra.gmra.mxu0 %vm9342_vm0, %v374_v5  ;;  %s7020_s27 = smov 80   ;;  %s7021_s28 = smov 112  }
  0x15   : > { %6198 = vmatprep.mubr.msk.f32.mxu0 %vm9342_vm0, %v375_v6  ;;  %s7027_s17 = smov 104   ;;  %s7028_s18 = smov 40  }
  0x16   : > { %s7029_s19 = smov 68  }
  0x18   : > { %6199 = vmatmul.mubr.msk.f32.gmra.mxu0 %vm9342_vm0, %v376_v7 }
  0x19   : > { %6201 = vmatprep.mubr.msk.f32.mxu0 %vm9342_vm0, %v377_v8 }
  0x1c   : > { %6202 = vmatmul.mubr.msk.f32.gmra.mxu0 %vm9342_vm0, %v378_v9 }
  0x1d   : > { %6204 = vmatprep.mubr.msk.f32.mxu0 %vm9342_vm0, %v379_v10 }
  0x20   : > { %6205 = vmatmul.mubr.msk.f32.gmra.mxu0 %vm9342_vm0, %v380_v11 }
  0xd4   : > { %v6197_v12 = vpop.f32.mrf.mxu0 }
  0xd5   : > { %v7156_v28 = vadd.f32 %v6197_v12, %v5632_v13 }
  0xd6   : > { %v483_v14 = vpop.f32.mrf.mxu0 }
  0xd7   : > { %v7133_v15 = vadd.f32 %v5632_v13, %v483_v14 }
  0xd8   : > { %v6200_v16 = vpop.f32.mrf.mxu0 }
  0xd9   : > { %6223 = vmatprep.mubr.msk.f32.mxu1 %vm9341_vm1, %v7133_v15  ;;  %v7152_v27 = vadd.f32 %v6200_v16, %v5632_v13 }
  0xda   : > { %v493_v17 = vpop.f32.mrf.mxu0 }
  0xdb   : > { %v7146_v25 = vadd.f32 %v5632_v13, %v493_v17 }
  0xdc   : > { %v6203_v18 = vpop.f32.mrf.mxu0 }
  0xdd   : > { %v7137_v19 = vadd.f32 %v6203_v18, %v5632_v13 }
  0xde   : > { %v503_v20 = vpop.f32.mrf.mxu0 }
  0xdf   : > { %540 = vrot.lane.b32.xlu1 %v7137_v19, %s7009_s29  ;;  %v7140_v22 = vadd.f32 %v5632_v13, %v503_v20 }
  0xe0   : > { %v6206_v21 = vpop.f32.mrf.mxu0 }
  0xe1   : > { %v7142_v23 = vadd.f32 %v6206_v21, %v5632_v13 }
  0xe2   : > { %v513_v24 = vpop.f32.mrf.mxu0 }
  0xe3   : > { %544 = vrot.lane.b32.xlu0 %v7142_v23, %s7009_s29  ;;  %538 = vrot.lane.b32.xlu1 %v7140_v22, %s7009_s29  ;;  %v7148_v26 = vadd.f32 %v5632_v13, %v513_v24 }
  0xe7   : > { %542 = vrot.lane.b32.xlu0 %v7148_v26, %s7009_s29  ;;  %534 = vrot.lane.b32.xlu1 %v7146_v25, %s7009_s29 }
  0xeb   : > { %536 = vrot.lane.b32.xlu0 %v7152_v27, %s7009_s29  ;;  %530 = vrot.lane.b32.xlu1 %v7133_v15, %s7009_s29 }
  0xef   : > { %532 = vrot.lane.b32.xlu0 %v7156_v28, %s7009_s29  ;;  %803 = vrot.lane.b32.xlu1 %v7142_v23, %s7010_s30  ;;  %s7022_s29 = smov 48  }
  0xf3   : > { %795 = vrot.lane.b32.xlu0 %v7152_v27, %s7010_s30  ;;  %799 = vrot.lane.b32.xlu1 %v7137_v19, %s7010_s30 }
  0xf7   : > { %791 = vrot.lane.b32.xlu0 %v7156_v28, %s7010_s30  ;;  %797 = vrot.lane.b32.xlu1 %v7140_v22, %s7010_s30 }
  0xfb   : > { %972 = vrot.lane.b32.xlu0 %v7142_v23, %s7011_s11  ;;  %793 = vrot.lane.b32.xlu1 %v7146_v25, %s7010_s30 }
  0xff   : > { %801 = vrot.lane.b32.xlu0 %v7148_v26, %s7010_s30  ;;  %789 = vrot.lane.b32.xlu1 %v7133_v15, %s7010_s30 }
 0x103   : > { %970 = vrot.lane.b32.xlu1 %v7148_v26, %s7011_s11 }
 0x151   : > { %v541_v29 = vpop.permute.xlu1 %540 }
 0x155   : > { %v545_v30 = vpop.permute.xlu0 %544  ;;  %v539_v31 = vpop.permute.xlu1 %538 }
 0x156   : > { %6207 = vmatprep.subr.msk.mxu1 %vm9341_vm1, %v545_v30 }
 0x157   : > { %6208 = vmatpush3.xpose.msk.msra.mxu1 %vm9341_vm1, %v545_v30 }
 0x159   : > { %v543_v32 = vpop.permute.xlu0 %542  ;;  %v535_v33 = vpop.permute.xlu1 %534 }
 0x15a   : > { %6209 = vmatprep.subr.msk.mxu1 %vm9341_vm1, %v543_v32 }
 0x15b   : > { %6210 = vmatpush3.xpose.msk.msra.mxu1 %vm9341_vm1, %v543_v32 }
 0x15c   : > { %6211 = vmatprep.subr.msk.mxu1 %vm9341_vm1, %v541_v29 }
 0x15d   : > { %v537_v34 = vpop.permute.xlu0 %536  ;;  %v531_v35 = vpop.permute.xlu1 %530 }
 0x15f   : > { %6212 = vmatpush3.xpose.msk.msra.mxu1 %vm9341_vm1, %v541_v29 }
 0x160   : > { %6213 = vmatprep.subr.msk.mxu1 %vm9341_vm1, %v539_v31 }
 0x161   : > { %v533_v36 = vpop.permute.xlu0 %532  ;;  %v7186_v37 = vpop.permute.xlu1 %803 }
 0x162   : > { %6235 = vmatprep.subr.mxu0 %v7186_v37 }
 0x163   : > { %6214 = vmatpush3.xpose.msk.msra.mxu1 %vm9341_vm1, %v539_v31  ;;  %6236 = vmatpush3.msra.mxu0 %v7186_v37 }
 0x164   : > { %6215 = vmatprep.subr.msk.mxu1 %vm9341_vm1, %v537_v34 }
 0x165   : > { %v7192_v38 = vpop.permute.xlu0 %795  ;;  %v7198_v40 = vpop.permute.xlu1 %799 }
 0x167   : > { %6216 = vmatpush3.xpose.msk.msra.mxu1 %vm9341_vm1, %v537_v34 }
 0x168   : > { %6217 = vmatprep.subr.msk.mxu1 %vm9341_vm1, %v535_v33 }
 0x169   : > { %v7196_v39 = vpop.permute.xlu0 %791  ;;  %v7206_v42 = vpop.permute.xlu1 %797 }
 0x16b   : > { %6218 = vmatpush3.xpose.msk.msra.mxu1 %vm9341_vm1, %v535_v33 }
 0x16c   : > { %6219 = vmatprep.subr.msk.mxu1 %vm9341_vm1, %v533_v36 }
 0x16d   : > { %v7202_v41 = vpop.permute.xlu0 %972  ;;  %v7218_v44 = vpop.permute.xlu1 %793 }
 0x16f   : > { %6220 = vmatpush3.xpose.msk.msra.mxu1 %vm9341_vm1, %v533_v36 }
 0x170   : > { %6221 = vmatprep.subr.msk.mxu1 %vm9341_vm1, %v531_v35 }
 0x171   : > { %v7208_v43 = vpop.permute.xlu0 %801  ;;  %v7232_v45 = vpop.permute.xlu1 %789 }
 0x172   : > { %6237 = vmatprep.subr.mxu0 %v7208_v43 }
 0x173   : > { %6222 = vmatpush3.xpose.msk.msra.mxu1 %vm9341_vm1, %v531_v35  ;;  %6238 = vmatpush3.msra.mxu0 %v7208_v43 }
 0x174   : > { %6239 = vmatprep.subr.mxu0 %v7198_v40 }
 0x175   : > { %6240 = vmatpush3.msra.mxu0 %v7198_v40  ;;  %v7257_v6 = vpop.permute.xlu1 %970 }
 0x176   : > { %6224 = vmatmul.mubr.msk.f32.vlgmr.msra.gmra.mxu1 %vm9341_vm1, %v7156_v28  ;;  %6241 = vmatprep.subr.mxu0 %v7206_v42 }
 0x177   : > { %6226 = vmatprep.mubr.msk.f32.mxu1 %vm9341_vm1, %v7146_v25  ;;  %6242 = vmatpush3.msra.mxu0 %v7206_v42 }
 0x178   : > { %6243 = vmatprep.subr.mxu0 %v7192_v38 }
 0x179   : > { %6244 = vmatpush3.msra.mxu0 %v7192_v38 }
 0x17a   : > { %6227 = vmatmul.mubr.msk.f32.gmra.mxu1 %vm9341_vm1, %v7152_v27  ;;  %6245 = vmatprep.subr.mxu0 %v7218_v44 }
 0x17b   : > { %6229 = vmatprep.mubr.msk.f32.mxu1 %vm9341_vm1, %v7140_v22  ;;  %6246 = vmatpush3.msra.mxu0 %v7218_v44 }
 0x17c   : > { %6247 = vmatprep.subr.mxu0 %v7196_v39 }
 0x17d   : > { %6248 = vmatpush3.msra.mxu0 %v7196_v39 }
 0x17e   : > { %6230 = vmatmul.mubr.msk.f32.gmra.mxu1 %vm9341_vm1, %v7137_v19  ;;  %6249 = vmatprep.subr.mxu0 %v7232_v45 }
 0x17f   : > { %6232 = vmatprep.mubr.msk.f32.mxu1 %vm9341_vm1, %v7148_v26  ;;  %6250 = vmatpush3.msra.mxu0 %v7232_v45 }
 0x180   : > { %6263 = vmatprep.subr.msk.mxu0 %vm9341_vm1, %v7202_v41 }
 0x182   : > { %6233 = vmatmul.mubr.msk.f32.gmra.mxu1 %vm9341_vm1, %v7142_v23 }
 0x236   : > { %v6225_v46 = vpop.f32.mrf.mxu1 }
 0x237   : > { %v685_v47 = vmul.f32 0.5, %v6225_v46 }
 0x238   : > { %v645_v48 = vpop.f32.mrf.mxu1 }
 0x239   : > { %v684_v49 = vmul.f32 0.5, %v645_v48  ;;  %v696_v50 = vsel %vm692_vm2, %v685_v47, -inf }
 0x23a   : > { %697 = vmax.xlane.f32.xlu1 %v696_v50  ;;  %v6228_v51 = vpop.f32.mrf.mxu1 }
 0x23b   : > { %v687_v52 = vmul.f32 0.5, %v6228_v51  ;;  %v693_v53 = vsel %vm692_vm2, %v684_v49, -inf }
 0x23c   : > { %694 = vmax.xlane.f32.xlu0 %v693_v53  ;;  %v655_v54 = vpop.f32.mrf.mxu1 }
 0x23d   : > { %v686_v56 = vmul.f32 0.5, %v655_v54  ;;  %v702_v57 = vsel %vm692_vm2, %v687_v52, -inf }
 0x23e   : > { %v6231_v55 = vpop.f32.mrf.mxu1 }
 0x23f   : > { %v689_v61 = vmul.f32 0.5, %v6231_v55  ;;  %v699_v62 = vsel %vm692_vm2, %v686_v56, -inf }
 0x240   : > { %703 = vmax.xlane.f32.xlu0 %v702_v57  ;;  %v665_v58 = vpop.f32.mrf.mxu1 }
 0x241   : > { %v688_v59 = vmul.f32 0.5, %v665_v58  ;;  %v708_v3 = vsel %vm692_vm2, %v689_v61, -inf }
 0x242   : > { %v6234_v60 = vpop.f32.mrf.mxu1 }
 0x243   : > { %v705_v63 = vsel %vm692_vm2, %v688_v59, -inf  ;;  %v691_v2 = vmul.f32 0.5, %v6234_v60 }
 0x244   : > { %700 = vmax.xlane.f32.xlu0 %v699_v62  ;;  %706 = vmax.xlane.f32.xlu1 %v705_v63  ;;  %v675_v0 = vpop.f32.mrf.mxu1 }
 0x245   : > { %v690_v1 = vmul.f32 0.5, %v675_v0  ;;  %v714_v5 = vsel %vm692_vm2, %v691_v2, -inf }
 0x247   : > { %v711_v4 = vsel %vm692_vm2, %v690_v1, -inf }
 0x248   : > { %709 = vmax.xlane.f32.xlu0 %v708_v3  ;;  %712 = vmax.xlane.f32.xlu1 %v711_v4 }
 0x24c   : > { %715 = vmax.xlane.f32.xlu0 %v714_v5 }
 0x259   : > { %966 = vrot.lane.b32.xlu1 %v7140_v22, %s7011_s11 }
 0x262   : > { %968 = vrot.lane.b32.xlu0 %v7137_v19, %s7011_s11 }
 0x2c3   : > { %v698_v7 = vpop.xlane.xlu1 %697 }
 0x2c4   : > { %v718_v8 = vsub.f32 %v685_v47, %v698_v7 }
 0x2c5   : > { %v695_v9 = vpop.xlane.xlu0 %694 }
 0x2c6   : > { %v727_v10 = vmul.f32 1.442695, %v718_v8  ;;  %v717_v11 = vsub.f32 %v684_v49, %v695_v9 }
 0x2c8   : > { %6729 = vpow2.f32 %v727_v10  ;;  %v725_v12 = vmul.f32 1.442695, %v717_v11 }
 0x2c9   : > { %v704_v18 = vpop.xlane.xlu0 %703 }
 0x2ca   : > { %6731 = vpow2.f32 %v725_v12  ;;  %v720_v30 = vsub.f32 %v687_v52, %v704_v18 }
 0x2cc   : > { %v731_v34 = vmul.f32 1.442695, %v720_v30 }
 0x2cd   : > { %v701_v20 = vpop.xlane.xlu0 %700  ;;  %v707_v21 = vpop.xlane.xlu1 %706 }
 0x2ce   : > { %v719_v24 = vsub.f32 %v686_v56, %v701_v20  ;;  %v721_v32 = vsub.f32 %v688_v59, %v707_v21 }
 0x2d0   : > { %v729_v31 = vmul.f32 1.442695, %v719_v24  ;;  %v733_v46 = vmul.f32 1.442695, %v721_v32 }
 0x2d1   : > { %v710_v29 = vpop.xlane.xlu0 %709  ;;  %v713_v33 = vpop.xlane.xlu1 %712 }
 0x2d2   : > { %v722_v35 = vsub.f32 %v689_v61, %v710_v29  ;;  %6733 = vpow2.f32 %v729_v31  ;;  %v723_v47 = vsub.f32 %v690_v1, %v713_v33 }
 0x2d3   : > { %6735 = vpow2.f32 %v731_v34 }
 0x2d4   : > { %v735_v48 = vmul.f32 1.442695, %v722_v35  ;;  %6737 = vpow2.f32 %v733_v46  ;;  %v737_v50 = vmul.f32 1.442695, %v723_v47 }
 0x2d5   : > { %v7259_v13 = vpop.eup %6729  ;;  %v716_v36 = vpop.xlane.xlu0 %715 }
 0x2d6   : > { %v744_v14 = vsel %vm692_vm2, %v7259_v13, 0.0  ;;  %v724_v49 = vsub.f32 %v691_v2, %v716_v36  ;;  %6739 = vpow2.f32 %v735_v48  ;;  %v967_v1 = vpop.permute.xlu1 %966 }
 0x2d7   : > { %v7263_v16 = vpop.eup %6731  ;;  %745 = vadd.xlane.f32.xlu0 %v744_v14  ;;  %6741 = vpow2.f32 %v737_v50 }
 0x2d8   : > { %v741_v17 = vsel %vm692_vm2, %v7263_v16, 0.0  ;;  %v739_v51 = vmul.f32 1.442695, %v724_v49 }
 0x2d9   : > { %742 = vadd.xlane.f32.xlu1 %v741_v17  ;;  %v969_v0 = vpop.permute.xlu0 %968 }
 0x2da   : > { %6743 = vpow2.f32 %v739_v51 }
 0x2df   : > { %v7271_v53 = vpop.eup %6733 }
 0x2e0   : > { %v7273_v52 = vpop.eup %6735  ;;  %v747_v54 = vsel %vm692_vm2, %v7271_v53, 0.0 }
 0x2e1   : > { %v7277_v55 = vpop.eup %6737  ;;  %v750_v56 = vsel %vm692_vm2, %v7273_v52, 0.0 }
 0x2e2   : > { %v753_v58 = vsel %vm692_vm2, %v7277_v55, 0.0 }
 0x2e3   : > { %v7281_v57 = vpop.eup %6739 }
 0x2e4   : > { %v7285_v59 = vpop.eup %6741  ;;  %v756_v60 = vsel %vm692_vm2, %v7281_v57, 0.0 }
 0x2e5   : > { %v759_v62 = vsel %vm692_vm2, %v7285_v59, 0.0 }
 0x2e7   : > { %v7289_v61 = vpop.eup %6743 }
 0x2e8   : > { %v762_v63 = vsel %vm692_vm2, %v7289_v61, 0.0 }
 0x2ea   : > { %962 = vrot.lane.b32.xlu1 %v7146_v25, %s7011_s11 }
 0x2ed   : > { %964 = vrot.lane.b32.xlu0 %v7152_v27, %s7011_s11 }
 0x30c   : > { %748 = vadd.xlane.f32.xlu0 %v747_v54 }
 0x30e   : > { %751 = vadd.xlane.f32.xlu1 %v750_v56 }
 0x310   : > { %754 = vadd.xlane.f32.xlu0 %v753_v58 }
 0x312   : > { %757 = vadd.xlane.f32.xlu1 %v756_v60 }
 0x314   : > { %760 = vadd.xlane.f32.xlu0 %v759_v62 }
 0x316   : > { %763 = vadd.xlane.f32.xlu1 %v762_v63 }
 0x327   : > { %958 = vrot.lane.b32.xlu1 %v7133_v15, %s7011_s11 }
 0x32a   : > { %960 = vrot.lane.b32.xlu0 %v7156_v28, %s7011_s11  ;;  %s7023_s11 = smov 76  }
 0x32b   : > { %944 = vrot.lane.b32.xlu1 %v7156_v28, %s7012_s12 }
 0x32e   : > { %942 = vrot.lane.b32.xlu0 %v7133_v15, %s7012_s12 }
 0x32f   : > { %948 = vrot.lane.b32.xlu1 %v7152_v27, %s7012_s12 }
 0x332   : > { %946 = vrot.lane.b32.xlu0 %v7146_v25, %s7012_s12 }
 0x333   : > { %952 = vrot.lane.b32.xlu1 %v7137_v19, %s7012_s12 }
 0x336   : > { %950 = vrot.lane.b32.xlu0 %v7140_v22, %s7012_s12 }
 0x337   : > { %956 = vrot.lane.b32.xlu1 %v7142_v23, %s7012_s12 }
 0x33a   : > { %954 = vrot.lane.b32.xlu0 %v7148_v26, %s7012_s12  ;;  %s7024_s12 = smov 108  }
 0x33b   : > { %1230 = vrot.lane.b32.xlu1 %v7142_v23, %s7013_s15 }
 0x33e   : > { %1228 = vrot.lane.b32.xlu0 %v7148_v26, %s7013_s15 }
 0x33f   : > { %1226 = vrot.lane.b32.xlu1 %v7137_v19, %s7013_s15 }
 0x342   : > { %1222 = vrot.lane.b32.xlu0 %v7152_v27, %s7013_s15 }
 0x343   : > { %1224 = vrot.lane.b32.xlu1 %v7140_v22, %s7013_s15 }
 0x346   : > { %1218 = vrot.lane.b32.xlu0 %v7156_v28, %s7013_s15 }
 0x347   : > { %1220 = vrot.lane.b32.xlu1 %v7146_v25, %s7013_s15 }
 0x34a   : > { %1399 = vrot.lane.b32.xlu0 %v7142_v23, %s7014_s16 }
 0x34b   : > { %1216 = vrot.lane.b32.xlu1 %v7133_v15, %s7013_s15  ;;  %s7025_s15 = smov 44  }
 0x34f   : > { %1397 = vrot.lane.b32.xlu1 %v7148_v26, %s7014_s16 }
 0x360   : > { %v746_v2 = vpop.xlane.xlu0 %745 }
 0x361   : > { %6745 = vrcp.f32 %v746_v2 }
 0x362   : > { %v743_v3 = vpop.xlane.xlu1 %742 }
 0x363   : > { %6747 = vrcp.f32 %v743_v3 }
 0x364   : > { %v965_v9 = vpop.permute.xlu0 %964 }
 0x366   : > { %v963_v10 = vpop.permute.xlu1 %962 }
 0x36e   : > { %v6746_v4 = vpop.eup %6745 }
 0x36f   : > { %v768_v5 = vmul.f32 %v6746_v4, %v7259_v13 }
 0x370   : > { %v6748_v7 = vpop.eup %6747 }
 0x371   : > { %782 = vst.msk [vmem:[%s7323_s20 + $0x8] sm:$0xff] %vm692_vm2, %v768_v5  ;;  %v766_v8 = vmul.f32 %v6748_v7, %v7263_v16 }
 0x373   : > { %781 = vst.msk [vmem:[%s7323_s20] sm:$0xff] %vm692_vm2, %v766_v8  ;;  %6251 = vmatprep.mubr.msk.f32.mxu0 %vm692_vm2, %v766_v8 }
 0x374   : > { %6252 = vmatmul.mubr.msk.f32.vlgmr.msra.gmra.mxu0 %vm692_vm2, %v768_v5 }
 0x375   : > { %6264 = vmatpush3.xpose.msk.msra.mxu0 %vm9341_vm1, %v7202_v41 }
 0x376   : > { %6265 = vmatprep.subr.msk.mxu0 %vm9341_vm1, %v7257_v6 }
 0x379   : > { %6266 = vmatpush3.xpose.msk.msra.mxu0 %vm9341_vm1, %v7257_v6 }
 0x37a   : > { %6267 = vmatprep.subr.msk.mxu0 %vm9341_vm1, %v969_v0 }
 0x37d   : > { %6268 = vmatpush3.xpose.msk.msra.mxu0 %vm9341_vm1, %v969_v0 }
 0x37e   : > { %6269 = vmatprep.subr.msk.mxu0 %vm9341_vm1, %v967_v1 }
 0x381   : > { %6270 = vmatpush3.xpose.msk.msra.mxu0 %vm9341_vm1, %v967_v1 }
 0x382   : > { %6271 = vmatprep.subr.msk.mxu0 %vm9341_vm1, %v965_v9 }
 0x385   : > { %6272 = vmatpush3.xpose.msk.msra.mxu0 %vm9341_vm1, %v965_v9 }
 0x386   : > { %6273 = vmatprep.subr.msk.mxu0 %vm9341_vm1, %v963_v10 }
 0x389   : > { %6274 = vmatpush3.xpose.msk.msra.mxu0 %vm9341_vm1, %v963_v10 }
 0x395   : > { %v749_v41 = vpop.xlane.xlu0 %748 }
 0x396   : > { %6749 = vrcp.f32 %v749_v41 }
 0x397   : > { %v752_v6 = vpop.xlane.xlu1 %751 }
 0x398   : > { %6751 = vrcp.f32 %v752_v6 }
 0x399   : > { %v755_v11 = vpop.xlane.xlu0 %754 }
 0x39a   : > { %6753 = vrcp.f32 %v755_v11 }
 0x39b   : > { %v758_v12 = vpop.xlane.xlu1 %757 }
 0x39c   : > { %6755 = vrcp.f32 %v758_v12 }
 0x39d   : > { %v761_v13 = vpop.xlane.xlu0 %760 }
 0x39e   : > { %6757 = vrcp.f32 %v761_v13 }
 0x39f   : > { %v764_v14 = vpop.xlane.xlu1 %763 }
 0x3a0   : > { %6759 = vrcp.f32 %v764_v14 }
 0x3a1   : > { %v961_v16 = vpop.permute.xlu0 %960 }
 0x3a2   : > { %6275 = vmatprep.subr.msk.mxu0 %vm9341_vm1, %v961_v16 }
 0x3a3   : > { %v6750_v17 = vpop.eup %6749  ;;  %6276 = vmatpush3.xpose.msk.msra.mxu0 %vm9341_vm1, %v961_v16  ;;  %v959_v18 = vpop.permute.xlu1 %958 }
 0x3a4   : > { %6277 = vmatprep.subr.msk.mxu0 %vm9341_vm1, %v959_v18  ;;  %v770_v20 = vmul.f32 %v6750_v17, %v7271_v53 }
 0x3a5   : > { %v6752_v21 = vpop.eup %6751  ;;  %v943_v24 = vpop.permute.xlu0 %942 }
 0x3a6   : > { %783 = vst.msk [vmem:[%s7323_s20 + $0x10] sm:$0xff] %vm692_vm2, %v770_v20  ;;  %6254 = vmatprep.mubr.msk.f32.mxu0 %vm692_vm2, %v770_v20  ;;  %v772_v29 = vmul.f32 %v6752_v21, %v7273_v52 }
 0x3a7   : > { %v6754_v30 = vpop.eup %6753  ;;  %6278 = vmatpush3.xpose.msk.msra.mxu0 %vm9341_vm1, %v959_v18  ;;  %v945_v31 = vpop.permute.xlu1 %944 }
 0x3a8   : > { %784 = vst.msk [vmem:[%s7323_s20 + $0x18] sm:$0xff] %vm692_vm2, %v772_v29  ;;  %6255 = vmatmul.mubr.msk.f32.gmra.mxu0 %vm692_vm2, %v772_v29  ;;  %v774_v32 = vmul.f32 %v6754_v30, %v7277_v55 }
 0x3a9   : > { %v6756_v33 = vpop.eup %6755  ;;  %v947_v34 = vpop.permute.xlu0 %946 }
 0x3aa   : > { %785 = vst.msk [vmem:[%s7323_s20 + $0x20] sm:$0xff] %vm692_vm2, %v774_v32  ;;  %6257 = vmatprep.mubr.msk.f32.mxu0 %vm692_vm2, %v774_v32  ;;  %v776_v35 = vmul.f32 %v6756_v33, %v7281_v57 }
 0x3ab   : > { %v6758_v36 = vpop.eup %6757  ;;  %v949_v46 = vpop.permute.xlu1 %948 }
 0x3ac   : > { %786 = vst.msk [vmem:[%s7323_s20 + $0x28] sm:$0xff] %vm692_vm2, %v776_v35  ;;  %6258 = vmatmul.mubr.msk.f32.gmra.mxu0 %vm692_vm2, %v776_v35  ;;  %v778_v47 = vmul.f32 %v6758_v36, %v7285_v59 }
 0x3ad   : > { %v6760_v48 = vpop.eup %6759  ;;  %v951_v49 = vpop.permute.xlu0 %950 }
 0x3ae   : > { %787 = vst.msk [vmem:[%s7323_s20 + $0x30] sm:$0xff] %vm692_vm2, %v778_v47  ;;  %6260 = vmatprep.mubr.msk.f32.mxu0 %vm692_vm2, %v778_v47  ;;  %v780_v50 = vmul.f32 %v6760_v48, %v7289_v61 }
 0x3af   : > { %v953_v51 = vpop.permute.xlu1 %952 }
 0x3b0   : > { %788 = vst.msk [vmem:[%s7323_s20 + $0x38] sm:$0xff] %vm692_vm2, %v780_v50  ;;  %6261 = vmatmul.mubr.msk.f32.gmra.mxu0 %vm692_vm2, %v780_v50 }
 0x3b1   : > { %v955_v53 = vpop.permute.xlu0 %954  ;;  %6279 = vmatprep.mubr.msk.f32.mxu0 %vm9341_vm1, %v943_v24 }
 0x3b3   : > { %v957_v52 = vpop.permute.xlu1 %956 }
 0x3b4   : > { %6280 = vmatmul.mubr.msk.f32.vlgmr.msra.gmra.mxu0 %vm9341_vm1, %v945_v31 }
 0x3b5   : > { %6282 = vmatprep.mubr.msk.f32.mxu0 %vm9341_vm1, %v947_v34  ;;  %v1229_v54 = vpop.permute.xlu0 %1228 }
 0x3b7   : > { %v1231_v55 = vpop.permute.xlu1 %1230 }
 0x3b8   : > { %6283 = vmatmul.mubr.msk.f32.gmra.mxu0 %vm9341_vm1, %v949_v46  ;;  %6291 = vmatprep.subr.mxu1 %v1231_v55 }
 0x3b9   : > { %6285 = vmatprep.mubr.msk.f32.mxu0 %vm9341_vm1, %v951_v49  ;;  %6292 = vmatpush3.msra.mxu1 %v1231_v55  ;;  %v1223_v57 = vpop.permute.xlu0 %1222 }
 0x3ba   : > { %6293 = vmatprep.subr.mxu1 %v1229_v54 }
 0x3bb   : > { %6294 = vmatpush3.msra.mxu1 %v1229_v54  ;;  %v1227_v56 = vpop.permute.xlu1 %1226 }
 0x3bc   : > { %6286 = vmatmul.mubr.msk.f32.gmra.mxu0 %vm9341_vm1, %v953_v51  ;;  %6295 = vmatprep.subr.mxu1 %v1227_v56 }
 0x3bd   : > { %6288 = vmatprep.mubr.msk.f32.mxu0 %vm9341_vm1, %v955_v53  ;;  %6296 = vmatpush3.msra.mxu1 %v1227_v56  ;;  %v1219_v59 = vpop.permute.xlu0 %1218 }
 0x3bf   : > { %v1225_v58 = vpop.permute.xlu1 %1224 }
 0x3c0   : > { %6289 = vmatmul.mubr.msk.f32.gmra.mxu0 %vm9341_vm1, %v957_v52  ;;  %6297 = vmatprep.subr.mxu1 %v1225_v58 }
 0x3c1   : > { %6298 = vmatpush3.msra.mxu1 %v1225_v58  ;;  %v7383_v62 = vpop.permute.xlu0 %1399 }
 0x3c2   : > { %6299 = vmatprep.subr.mxu1 %v1223_v57 }
 0x3c3   : > { %6300 = vmatpush3.msra.mxu1 %v1223_v57  ;;  %v1221_v60 = vpop.permute.xlu1 %1220 }
 0x3c4   : > { %6301 = vmatprep.subr.mxu1 %v1221_v60 }
 0x3c5   : > { %6302 = vmatpush3.msra.mxu1 %v1221_v60 }
 0x3c6   : > { %6303 = vmatprep.subr.mxu1 %v1219_v59 }
 0x3c7   : > { %6304 = vmatpush3.msra.mxu1 %v1219_v59  ;;  %v1217_v61 = vpop.permute.xlu1 %1216 }
 0x3c8   : > { %6305 = vmatprep.subr.mxu1 %v1217_v61 }
 0x3c9   : > { %6306 = vmatpush3.msra.mxu1 %v1217_v61 }
 0x3ca   : > { %6319 = vmatprep.subr.msk.mxu1 %vm9341_vm1, %v7383_v62 }
 0x3cb   : > { %v7415_v47 = vpop.permute.xlu1 %1397 }
 0x434   : > { %v7387_v63 = vpop.f32.mrf.mxu0 }
 0x435   : > { %9350 = vst [vmem:[#allocation2_spill] sm:$0xff] %v7387_v63 }
 0x436   : > { %v7389_v0 = vpop.f32.mrf.mxu0 }
 0x437   : > { %9351 = vst [vmem:[#allocation3_spill] sm:$0xff] %v7389_v0 }
 0x468   : > { %v7391_v1 = vpop.f32.mrf.mxu0 }
 0x469   : > { %9352 = vst [vmem:[#allocation4_spill] sm:$0xff] %v7391_v1 }
 0x46a   : > { %v7393_v2 = vpop.f32.mrf.mxu0 }
 0x46b   : > { %9353 = vst [vmem:[#allocation5_spill] sm:$0xff] %v7393_v2 }
 0x46c   : > { %v7395_v3 = vpop.f32.mrf.mxu0 }
 0x46d   : > { %9354 = vst [vmem:[#allocation6_spill] sm:$0xff] %v7395_v3 }
 0x46e   : > { %v7397_v4 = vpop.f32.mrf.mxu0 }
 0x46f   : > { %9355 = vst [vmem:[#allocation7_spill] sm:$0xff] %v7397_v4 }
 0x470   : > { %v7399_v5 = vpop.f32.mrf.mxu0 }
 0x471   : > { %9356 = vst [vmem:[#allocation8_spill] sm:$0xff] %v7399_v5 }
 0x472   : > { %v7401_v7 = vpop.f32.mrf.mxu0 }
 0x473   : > { %9357 = vst [vmem:[#allocation9_spill] sm:$0xff] %v7401_v7 }
 0x474   : > { %v6281_v8 = vpop.f32.mrf.mxu0 }
 0x475   : > { %v1112_v9 = vmul.f32 0.5, %v6281_v8 }
 0x476   : > { %v1072_v10 = vpop.f32.mrf.mxu0 }
 0x477   : > { %v1111_v41 = vmul.f32 0.5, %v1072_v10  ;;  %v1122_v6 = vsel %vm692_vm2, %v1112_v9, -inf }
 0x478   : > { %1123 = vmax.xlane.f32.xlu1 %v1122_v6  ;;  %v6284_v11 = vpop.f32.mrf.mxu0 }
 0x479   : > { %v1114_v12 = vmul.f32 0.5, %v6284_v11  ;;  %v1119_v13 = vsel %vm692_vm2, %v1111_v41, -inf }
 0x47a   : > { %1120 = vmax.xlane.f32.xlu0 %v1119_v13  ;;  %v1082_v14 = vpop.f32.mrf.mxu0 }
 0x47b   : > { %v1113_v17 = vmul.f32 0.5, %v1082_v14  ;;  %v1128_v18 = vsel %vm692_vm2, %v1114_v12, -inf }
 0x47c   : > { %v6287_v16 = vpop.f32.mrf.mxu0 }
 0x47d   : > { %v1116_v29 = vmul.f32 0.5, %v6287_v16  ;;  %v1125_v30 = vsel %vm692_vm2, %v1113_v17, -inf }
 0x47e   : > { %1129 = vmax.xlane.f32.xlu0 %v1128_v18  ;;  %v1092_v20 = vpop.f32.mrf.mxu0 }
 0x47f   : > { %v1115_v21 = vmul.f32 0.5, %v1092_v20  ;;  %v1134_v35 = vsel %vm692_vm2, %v1116_v29, -inf }
 0x480   : > { %v6290_v24 = vpop.f32.mrf.mxu0 }
 0x481   : > { %v1131_v31 = vsel %vm692_vm2, %v1115_v21, -inf  ;;  %v1118_v34 = vmul.f32 0.5, %v6290_v24 }
 0x482   : > { %1126 = vmax.xlane.f32.xlu0 %v1125_v30  ;;  %1132 = vmax.xlane.f32.xlu1 %v1131_v31  ;;  %v1102_v32 = vpop.f32.mrf.mxu0 }
 0x483   : > { %v1117_v33 = vmul.f32 0.5, %v1102_v32  ;;  %v1140_v46 = vsel %vm692_vm2, %v1118_v34, -inf }
 0x485   : > { %v1137_v36 = vsel %vm692_vm2, %v1117_v33, -inf }
 0x486   : > { %1135 = vmax.xlane.f32.xlu0 %v1134_v35  ;;  %1138 = vmax.xlane.f32.xlu1 %v1137_v36 }
 0x48a   : > { %1141 = vmax.xlane.f32.xlu0 %v1140_v46 }
 0x497   : > { %1393 = vrot.lane.b32.xlu1 %v7140_v22, %s7014_s16 }
 0x4a0   : > { %1395 = vrot.lane.b32.xlu0 %v7137_v19, %s7014_s16 }
 0x501   : > { %v1124_v48 = vpop.xlane.xlu1 %1123 }
 0x502   : > { %v1144_v49 = vsub.f32 %v1112_v9, %v1124_v48 }
 0x503   : > { %v1121_v50 = vpop.xlane.xlu0 %1120 }
 0x504   : > { %v1153_v51 = vmul.f32 1.442695, %v1144_v49  ;;  %v1143_v53 = vsub.f32 %v1111_v41, %v1121_v50 }
 0x506   : > { %6761 = vpow2.f32 %v1153_v51  ;;  %v1151_v52 = vmul.f32 1.442695, %v1143_v53 }
 0x507   : > { %v1130_v58 = vpop.xlane.xlu0 %1129 }
 0x508   : > { %6763 = vpow2.f32 %v1151_v52  ;;  %v1146_v9 = vsub.f32 %v1114_v12, %v1130_v58 }
 0x50a   : > { %v1157_v11 = vmul.f32 1.442695, %v1146_v9 }
 0x50b   : > { %v1127_v59 = vpop.xlane.xlu0 %1126  ;;  %v1133_v60 = vpop.xlane.xlu1 %1132 }
 0x50c   : > { %v1145_v61 = vsub.f32 %v1113_v17, %v1127_v59  ;;  %v1147_v41 = vsub.f32 %v1115_v21, %v1133_v60 }
 0x50e   : > { %v1155_v10 = vmul.f32 1.442695, %v1145_v61  ;;  %v1159_v16 = vmul.f32 1.442695, %v1147_v41 }
 0x50f   : > { %v1136_v8 = vpop.xlane.xlu0 %1135  ;;  %v1139_v6 = vpop.xlane.xlu1 %1138 }
 0x510   : > { %v1148_v13 = vsub.f32 %v1116_v29, %v1136_v8  ;;  %6765 = vpow2.f32 %v1155_v10  ;;  %v1149_v18 = vsub.f32 %v1117_v33, %v1139_v6 }
 0x511   : > { %6767 = vpow2.f32 %v1157_v11 }
 0x512   : > { %v1161_v20 = vmul.f32 1.442695, %v1148_v13  ;;  %6769 = vpow2.f32 %v1159_v16  ;;  %v1163_v30 = vmul.f32 1.442695, %v1149_v18 }
 0x513   : > { %v7417_v54 = vpop.eup %6761  ;;  %v1142_v14 = vpop.xlane.xlu0 %1141 }
 0x514   : > { %v1170_v55 = vsel %vm692_vm2, %v7417_v54, 0.0  ;;  %v1150_v24 = vsub.f32 %v1118_v34, %v1142_v14  ;;  %6771 = vpow2.f32 %v1161_v20  ;;  %v1394_v51 = vpop.permute.xlu1 %1393 }
 0x515   : > { %v7421_v56 = vpop.eup %6763  ;;  %1171 = vadd.xlane.f32.xlu0 %v1170_v55  ;;  %6773 = vpow2.f32 %v1163_v30 }
 0x516   : > { %v1167_v57 = vsel %vm692_vm2, %v7421_v56, 0.0  ;;  %v1165_v31 = vmul.f32 1.442695, %v1150_v24 }
 0x517   : > { %1168 = vadd.xlane.f32.xlu1 %v1167_v57  ;;  %v1396_v50 = vpop.permute.xlu0 %1395 }
 0x518   : > { %6775 = vpow2.f32 %v1165_v31 }
 0x51d   : > { %v7429_v17 = vpop.eup %6765 }
 0x51e   : > { %v7431_v12 = vpop.eup %6767  ;;  %v1173_v21 = vsel %vm692_vm2, %v7429_v17, 0.0 }
 0x51f   : > { %v7435_v29 = vpop.eup %6769  ;;  %v1176_v32 = vsel %vm692_vm2, %v7431_v12, 0.0 }
 0x520   : > { %v1179_v34 = vsel %vm692_vm2, %v7435_v29, 0.0 }
 0x521   : > { %v7439_v33 = vpop.eup %6771 }
 0x522   : > { %v7443_v35 = vpop.eup %6773  ;;  %v1182_v36 = vsel %vm692_vm2, %v7439_v33, 0.0 }
 0x523   : > { %v1185_v48 = vsel %vm692_vm2, %v7443_v35, 0.0 }
 0x525   : > { %v7447_v46 = vpop.eup %6775 }
 0x526   : > { %v1188_v49 = vsel %vm692_vm2, %v7447_v46, 0.0 }
 0x528   : > { %1389 = vrot.lane.b32.xlu1 %v7146_v25, %s7014_s16 }
 0x52b   : > { %1391 = vrot.lane.b32.xlu0 %v7152_v27, %s7014_s16 }
 0x54a   : > { %1174 = vadd.xlane.f32.xlu0 %v1173_v21 }
 0x54c   : > { %1177 = vadd.xlane.f32.xlu1 %v1176_v32 }
 0x54e   : > { %1180 = vadd.xlane.f32.xlu0 %v1179_v34 }
 0x550   : > { %1183 = vadd.xlane.f32.xlu1 %v1182_v36 }
 0x552   : > { %1186 = vadd.xlane.f32.xlu0 %v1185_v48 }
 0x554   : > { %1189 = vadd.xlane.f32.xlu1 %v1188_v49 }
 0x565   : > { %1385 = vrot.lane.b32.xlu1 %v7133_v15, %s7014_s16 }
 0x568   : > { %1387 = vrot.lane.b32.xlu0 %v7156_v28, %s7014_s16  ;;  %s7026_s16 = smov 72  }
 0x569   : > { %1371 = vrot.lane.b32.xlu1 %v7156_v28, %s7015_s21 }
 0x56c   : > { %1369 = vrot.lane.b32.xlu0 %v7133_v15, %s7015_s21 }
 0x56d   : > { %1375 = vrot.lane.b32.xlu1 %v7152_v27, %s7015_s21 }
 0x570   : > { %1373 = vrot.lane.b32.xlu0 %v7146_v25, %s7015_s21 }
 0x571   : > { %1379 = vrot.lane.b32.xlu1 %v7137_v19, %s7015_s21 }
 0x574   : > { %1377 = vrot.lane.b32.xlu0 %v7140_v22, %s7015_s21 }
 0x575   : > { %1383 = vrot.lane.b32.xlu1 %v7142_v23, %s7015_s21 }
 0x578   : > { %1381 = vrot.lane.b32.xlu0 %v7148_v26, %s7015_s21  ;;  %s7030_s21 = smov 100  }
 0x579   : > { %1657 = vrot.lane.b32.xlu1 %v7142_v23, %s7016_s22 }
 0x57c   : > { %1655 = vrot.lane.b32.xlu0 %v7148_v26, %s7016_s22 }
 0x57d   : > { %1653 = vrot.lane.b32.xlu1 %v7137_v19, %s7016_s22 }
 0x580   : > { %1649 = vrot.lane.b32.xlu0 %v7152_v27, %s7016_s22 }
 0x581   : > { %1651 = vrot.lane.b32.xlu1 %v7140_v22, %s7016_s22 }
 0x584   : > { %1645 = vrot.lane.b32.xlu0 %v7156_v28, %s7016_s22 }
 0x585   : > { %1647 = vrot.lane.b32.xlu1 %v7146_v25, %s7016_s22 }
 0x588   : > { %1826 = vrot.lane.b32.xlu0 %v7142_v23, %s7017_s24 }
 0x589   : > { %1643 = vrot.lane.b32.xlu1 %v7133_v15, %s7016_s22  ;;  %s7031_s22 = smov 36  }
 0x58d   : > { %1824 = vrot.lane.b32.xlu1 %v7148_v26, %s7017_s24 }
 0x59e   : > { %v1172_v53 = vpop.xlane.xlu0 %1171 }
 0x59f   : > { %6777 = vrcp.f32 %v1172_v53 }
 0x5a0   : > { %v1169_v52 = vpop.xlane.xlu1 %1168 }
 0x5a1   : > { %6779 = vrcp.f32 %v1169_v52 }
 0x5ac   : > { %v6778_v55 = vpop.eup %6777 }
 0x5ad   : > { %v1194_v57 = vmul.f32 %v6778_v55, %v7417_v54  ;;  %v1392_v54 = vpop.permute.xlu0 %1391 }
 0x5ae   : > { %v6780_v58 = vpop.eup %6779 }
 0x5af   : > { %5682 = vst.msk [vmem:[%s7323_s20 + $0x48] sm:$0xff] %vm692_vm2, %v1194_v57  ;;  %v1192_v59 = vmul.f32 %v6780_v58, %v7421_v56  ;;  %v1390_v56 = vpop.permute.xlu1 %1389 }
 0x5b1   : > { %5681 = vst.msk [vmem:[%s7323_s20 + $0x40] sm:$0xff] %vm692_vm2, %v1192_v59  ;;  %6307 = vmatprep.mubr.msk.f32.mxu1 %vm692_vm2, %v1192_v59 }
 0x5b2   : > { %6308 = vmatmul.mubr.msk.f32.vlgmr.msra.gmra.mxu1 %vm692_vm2, %v1194_v57 }
 0x5b3   : > { %6320 = vmatpush3.xpose.msk.msra.mxu1 %vm9341_vm1, %v7383_v62 }
 0x5b4   : > { %6321 = vmatprep.subr.msk.mxu1 %vm9341_vm1, %v7415_v47 }
 0x5b7   : > { %6322 = vmatpush3.xpose.msk.msra.mxu1 %vm9341_vm1, %v7415_v47 }
 0x5b8   : > { %6323 = vmatprep.subr.msk.mxu1 %vm9341_vm1, %v1396_v50 }
 0x5bb   : > { %6324 = vmatpush3.xpose.msk.msra.mxu1 %vm9341_vm1, %v1396_v50 }
 0x5bc   : > { %6325 = vmatprep.subr.msk.mxu1 %vm9341_vm1, %v1394_v51 }
 0x5bf   : > { %6326 = vmatpush3.xpose.msk.msra.mxu1 %vm9341_vm1, %v1394_v51 }
 0x5c0   : > { %6327 = vmatprep.subr.msk.mxu1 %vm9341_vm1, %v1392_v54 }
 0x5c3   : > { %6328 = vmatpush3.xpose.msk.msra.mxu1 %vm9341_vm1, %v1392_v54 }
 0x5c4   : > { %6329 = vmatprep.subr.msk.mxu1 %vm9341_vm1, %v1390_v56 }
 0x5c7   : > { %6330 = vmatpush3.xpose.msk.msra.mxu1 %vm9341_vm1, %v1390_v56 }
 0x5d3   : > { %v1175_v62 = vpop.xlane.xlu0 %1174 }
 0x5d4   : > { %6781 = vrcp.f32 %v1175_v62 }
 0x5d5   : > { %v1178_v47 = vpop.xlane.xlu1 %1177 }
 0x5d6   : > { %6783 = vrcp.f32 %v1178_v47 }
 0x5d7   : > { %v1181_v60 = vpop.xlane.xlu0 %1180 }
 0x5d8   : > { %6785 = vrcp.f32 %v1181_v60 }
 0x5d9   : > { %v1184_v61 = vpop.xlane.xlu1 %1183 }
 0x5da   : > { %6787 = vrcp.f32 %v1184_v61 }
 0x5db   : > { %v1187_v8 = vpop.xlane.xlu0 %1186 }
 0x5dc   : > { %6789 = vrcp.f32 %v1187_v8 }
 0x5dd   : > { %v1190_v9 = vpop.xlane.xlu1 %1189 }
 0x5de   : > { %6791 = vrcp.f32 %v1190_v9 }
 0x5df   : > { %v1388_v10 = vpop.permute.xlu0 %1387 }
 0x5e0   : > { %6331 = vmatprep.subr.msk.mxu1 %vm9341_vm1, %v1388_v10 }
 0x5e1   : > { %v6782_v41 = vpop.eup %6781  ;;  %6332 = vmatpush3.xpose.msk.msra.mxu1 %vm9341_vm1, %v1388_v10  ;;  %v1386_v6 = vpop.permute.xlu1 %1385 }
 0x5e2   : > { %6333 = vmatprep.subr.msk.mxu1 %vm9341_vm1, %v1386_v6  ;;  %v1196_v11 = vmul.f32 %v6782_v41, %v7429_v17 }
 0x5e3   : > { %v6784_v13 = vpop.eup %6783  ;;  %v1370_v14 = vpop.permute.xlu0 %1369 }
 0x5e4   : > { %5683 = vst.msk [vmem:[%s7323_s20 + $0x50] sm:$0xff] %vm692_vm2, %v1196_v11  ;;  %6310 = vmatprep.mubr.msk.f32.mxu1 %vm692_vm2, %v1196_v11  ;;  %v1198_v16 = vmul.f32 %v6784_v13, %v7431_v12 }
 0x5e5   : > { %v6786_v18 = vpop.eup %6785  ;;  %6334 = vmatpush3.xpose.msk.msra.mxu1 %vm9341_vm1, %v1386_v6  ;;  %v1372_v20 = vpop.permute.xlu1 %1371 }
 0x5e6   : > { %5684 = vst.msk [vmem:[%s7323_s20 + $0x58] sm:$0xff] %vm692_vm2, %v1198_v16  ;;  %6311 = vmatmul.mubr.msk.f32.gmra.mxu1 %vm692_vm2, %v1198_v16  ;;  %v1200_v24 = vmul.f32 %v6786_v18, %v7435_v29 }
 0x5e7   : > { %v6788_v30 = vpop.eup %6787  ;;  %v1374_v31 = vpop.permute.xlu0 %1373 }
 0x5e8   : > { %5685 = vst.msk [vmem:[%s7323_s20 + $0x60] sm:$0xff] %vm692_vm2, %v1200_v24  ;;  %6313 = vmatprep.mubr.msk.f32.mxu1 %vm692_vm2, %v1200_v24  ;;  %v1202_v17 = vmul.f32 %v6788_v30, %v7439_v33 }
 0x5e9   : > { %v6790_v12 = vpop.eup %6789  ;;  %v1376_v21 = vpop.permute.xlu1 %1375 }
 0x5ea   : > { %5686 = vst.msk [vmem:[%s7323_s20 + $0x68] sm:$0xff] %vm692_vm2, %v1202_v17  ;;  %6314 = vmatmul.mubr.msk.f32.gmra.mxu1 %vm692_vm2, %v1202_v17  ;;  %v1204_v32 = vmul.f32 %v6790_v12, %v7443_v35 }
 0x5eb   : > { %v6792_v34 = vpop.eup %6791  ;;  %v1378_v36 = vpop.permute.xlu0 %1377 }
 0x5ec   : > { %5687 = vst.msk [vmem:[%s7323_s20 + $0x70] sm:$0xff] %vm692_vm2, %v1204_v32  ;;  %6316 = vmatprep.mubr.msk.f32.mxu1 %vm692_vm2, %v1204_v32  ;;  %v1206_v29 = vmul.f32 %v6792_v34, %v7447_v46 }
 0x5ed   : > { %v1380_v48 = vpop.permute.xlu1 %1379 }
 0x5ee   : > { %5688 = vst.msk [vmem:[%s7323_s20 + $0x78] sm:$0xff] %vm692_vm2, %v1206_v29  ;;  %6317 = vmatmul.mubr.msk.f32.gmra.mxu1 %vm692_vm2, %v1206_v29 }
 0x5ef   : > { %v1382_v33 = vpop.permute.xlu0 %1381  ;;  %6335 = vmatprep.mubr.msk.f32.mxu1 %vm9341_vm1, %v1370_v14 }
 0x5f1   : > { %v1384_v49 = vpop.permute.xlu1 %1383 }
 0x5f2   : > { %6336 = vmatmul.mubr.msk.f32.vlgmr.msra.gmra.mxu1 %vm9341_vm1, %v1372_v20 }
 0x5f3   : > { %6338 = vmatprep.mubr.msk.f32.mxu1 %vm9341_vm1, %v1374_v31  ;;  %v1656_v35 = vpop.permute.xlu0 %1655 }
 0x5f5   : > { %v1658_v50 = vpop.permute.xlu1 %1657 }
 0x5f6   : > { %6339 = vmatmul.mubr.msk.f32.gmra.mxu1 %vm9341_vm1, %v1376_v21  ;;  %6347 = vmatprep.subr.mxu0 %v1658_v50 }
 0x5f7   : > { %6341 = vmatprep.mubr.msk.f32.mxu1 %vm9341_vm1, %v1378_v36  ;;  %6348 = vmatpush3.msra.mxu0 %v1658_v50  ;;  %v1650_v51 = vpop.permute.xlu0 %1649 }
 0x5f8   : > { %6349 = vmatprep.subr.mxu0 %v1656_v35 }
 0x5f9   : > { %6350 = vmatpush3.msra.mxu0 %v1656_v35  ;;  %v1654_v46 = vpop.permute.xlu1 %1653 }
 0x5fa   : > { %6342 = vmatmul.mubr.msk.f32.gmra.mxu1 %vm9341_vm1, %v1380_v48  ;;  %6351 = vmatprep.subr.mxu0 %v1654_v46 }
 0x5fb   : > { %6344 = vmatprep.mubr.msk.f32.mxu1 %vm9341_vm1, %v1382_v33  ;;  %6352 = vmatpush3.msra.mxu0 %v1654_v46  ;;  %v1646_v52 = vpop.permute.xlu0 %1645 }
 0x5fd   : > { %v1652_v53 = vpop.permute.xlu1 %1651 }
 0x5fe   : > { %6345 = vmatmul.mubr.msk.f32.gmra.mxu1 %vm9341_vm1, %v1384_v49  ;;  %6353 = vmatprep.subr.mxu0 %v1652_v53 }
 0x5ff   : > { %6354 = vmatpush3.msra.mxu0 %v1652_v53  ;;  %v7535_v58 = vpop.permute.xlu0 %1826 }
 0x600   : > { %6355 = vmatprep.subr.mxu0 %v1650_v51 }
 0x601   : > { %6356 = vmatpush3.msra.mxu0 %v1650_v51  ;;  %v1648_v55 = vpop.permute.xlu1 %1647 }
 0x602   : > { %6357 = vmatprep.subr.mxu0 %v1648_v55 }
 0x603   : > { %6358 = vmatpush3.msra.mxu0 %v1648_v55 }
 0x604   : > { %6359 = vmatprep.subr.mxu0 %v1646_v52 }
 0x605   : > { %6360 = vmatpush3.msra.mxu0 %v1646_v52  ;;  %v1644_v57 = vpop.permute.xlu1 %1643 }
 0x606   : > { %6361 = vmatprep.subr.mxu0 %v1644_v57 }
 0x607   : > { %6362 = vmatpush3.msra.mxu0 %v1644_v57 }
 0x608   : > { %6375 = vmatprep.subr.msk.mxu0 %vm9341_vm1, %v7535_v58 }
 0x609   : > { %v7567_v50 = vpop.permute.xlu1 %1824 }
 0x672   : > { %v7539_v59 = vpop.f32.mrf.mxu1 }
 0x673   : > { %9358 = vst [vmem:[#allocation10_spill] sm:$0xff] %v7539_v59 }
 0x674   : > { %v7541_v54 = vpop.f32.mrf.mxu1 }
 0x675   : > { %9359 = vst [vmem:[#allocation11_spill] sm:$0xff] %v7541_v54 }
 0x6a6   : > { %v7543_v56 = vpop.f32.mrf.mxu1 }
 0x6a7   : > { %9360 = vst [vmem:[#allocation12_spill] sm:$0xff] %v7543_v56 }
 0x6a8   : > { %v7545_v62 = vpop.f32.mrf.mxu1 }
 0x6a9   : > { %9361 = vst [vmem:[#allocation13_spill] sm:$0xff] %v7545_v62 }
 0x6aa   : > { %v7547_v47 = vpop.f32.mrf.mxu1 }
 0x6ab   : > { %9362 = vst [vmem:[#allocation14_spill] sm:$0xff] %v7547_v47 }
 0x6ac   : > { %v7549_v60 = vpop.f32.mrf.mxu1 }
 0x6ad   : > { %9363 = vst [vmem:[#allocation15_spill] sm:$0xff] %v7549_v60 }
 0x6ae   : > { %v7551_v61 = vpop.f32.mrf.mxu1 }
 0x6af   : > { %9364 = vst [vmem:[#allocation16_spill] sm:$0xff] %v7551_v61 }
 0x6b0   : > { %v7553_v8 = vpop.f32.mrf.mxu1 }
 0x6b1   : > { %9365 = vst [vmem:[#allocation17_spill] sm:$0xff] %v7553_v8 }
 0x6b2   : > { %v6337_v9 = vpop.f32.mrf.mxu1 }
 0x6b3   : > { %v1539_v10 = vmul.f32 0.5, %v6337_v9 }
 0x6b4   : > { %v1499_v41 = vpop.f32.mrf.mxu1 }
 0x6b5   : > { %v1538_v6 = vmul.f32 0.5, %v1499_v41  ;;  %v1549_v11 = vsel %vm692_vm2, %v1539_v10, -inf }
 0x6b6   : > { %1550 = vmax.xlane.f32.xlu1 %v1549_v11  ;;  %v6340_v13 = vpop.f32.mrf.mxu1 }
 0x6b7   : > { %v1541_v14 = vmul.f32 0.5, %v6340_v13  ;;  %v1546_v16 = vsel %vm692_vm2, %v1538_v6, -inf }
 0x6b8   : > { %1547 = vmax.xlane.f32.xlu0 %v1546_v16  ;;  %v1509_v18 = vpop.f32.mrf.mxu1 }
 0x6b9   : > { %v1540_v24 = vmul.f32 0.5, %v1509_v18  ;;  %v1555_v30 = vsel %vm692_vm2, %v1541_v14, -inf }
 0x6ba   : > { %v6343_v20 = vpop.f32.mrf.mxu1 }
 0x6bb   : > { %v1543_v21 = vmul.f32 0.5, %v6343_v20  ;;  %v1552_v32 = vsel %vm692_vm2, %v1540_v24, -inf }
 0x6bc   : > { %1556 = vmax.xlane.f32.xlu0 %v1555_v30  ;;  %v1519_v31 = vpop.f32.mrf.mxu1 }
 0x6bd   : > { %v1542_v17 = vmul.f32 0.5, %v1519_v31  ;;  %v1561_v33 = vsel %vm692_vm2, %v1543_v21, -inf }
 0x6be   : > { %v6346_v12 = vpop.f32.mrf.mxu1 }
 0x6bf   : > { %v1558_v34 = vsel %vm692_vm2, %v1542_v17, -inf  ;;  %v1545_v48 = vmul.f32 0.5, %v6346_v12 }
 0x6c0   : > { %1553 = vmax.xlane.f32.xlu0 %v1552_v32  ;;  %1559 = vmax.xlane.f32.xlu1 %v1558_v34  ;;  %v1529_v36 = vpop.f32.mrf.mxu1 }
 0x6c1   : > { %v1544_v29 = vmul.f32 0.5, %v1529_v36  ;;  %v1567_v35 = vsel %vm692_vm2, %v1545_v48, -inf }
 0x6c3   : > { %v1564_v49 = vsel %vm692_vm2, %v1544_v29, -inf }
 0x6c4   : > { %1562 = vmax.xlane.f32.xlu0 %v1561_v33  ;;  %1565 = vmax.xlane.f32.xlu1 %v1564_v49 }
 0x6c8   : > { %1568 = vmax.xlane.f32.xlu0 %v1567_v35 }
 0x6d5   : > { %1820 = vrot.lane.b32.xlu1 %v7140_v22, %s7017_s24 }
 0x6de   : > { %1822 = vrot.lane.b32.xlu0 %v7137_v19, %s7017_s24 }
 0x73f   : > { %v1551_v46 = vpop.xlane.xlu1 %1550 }
 0x740   : > { %v1571_v51 = vsub.f32 %v1539_v10, %v1551_v46 }
 0x741   : > { %v1548_v53 = vpop.xlane.xlu0 %1547 }
 0x742   : > { %v1580_v52 = vmul.f32 1.442695, %v1571_v51  ;;  %v1570_v55 = vsub.f32 %v1538_v6, %v1548_v53 }
 0x744   : > { %6793 = vpow2.f32 %v1580_v52  ;;  %v1578_v57 = vmul.f32 1.442695, %v1570_v55 }
 0x745   : > { %v1557_v16 = vpop.xlane.xlu0 %1556 }
 0x746   : > { %6795 = vpow2.f32 %v1578_v57  ;;  %v1573_v30 = vsub.f32 %v1541_v14, %v1557_v16 }
 0x748   : > { %v1584_v34 = vmul.f32 1.442695, %v1573_v30 }
 0x749   : > { %v1554_v10 = vpop.xlane.xlu0 %1553  ;;  %v1560_v6 = vpop.xlane.xlu1 %1559 }
 0x74a   : > { %v1572_v18 = vsub.f32 %v1540_v24, %v1554_v10  ;;  %v1574_v12 = vsub.f32 %v1542_v17, %v1560_v6 }
 0x74c   : > { %v1582_v31 = vmul.f32 1.442695, %v1572_v18  ;;  %v1586_v49 = vmul.f32 1.442695, %v1574_v12 }
 0x74d   : > { %v1563_v20 = vpop.xlane.xlu0 %1562  ;;  %v1566_v32 = vpop.xlane.xlu1 %1565 }
 0x74e   : > { %v1575_v36 = vsub.f32 %v1543_v21, %v1563_v20  ;;  %6797 = vpow2.f32 %v1582_v31  ;;  %v1576_v35 = vsub.f32 %v1544_v29, %v1566_v32 }
 0x74f   : > { %6799 = vpow2.f32 %v1584_v34 }
 0x750   : > { %v1588_v46 = vmul.f32 1.442695, %v1575_v36  ;;  %6801 = vpow2.f32 %v1586_v49  ;;  %v1590_v53 = vmul.f32 1.442695, %v1576_v35 }
 0x751   : > { %v7569_v9 = vpop.eup %6793  ;;  %v1569_v33 = vpop.xlane.xlu0 %1568 }
 0x752   : > { %v1597_v41 = vsel %vm692_vm2, %v7569_v9, 0.0  ;;  %v1577_v51 = vsub.f32 %v1545_v48, %v1569_v33  ;;  %6803 = vpow2.f32 %v1588_v46  ;;  %v1821_v18 = vpop.permute.xlu1 %1820 }
 0x753   : > { %v7573_v11 = vpop.eup %6795  ;;  %1598 = vadd.xlane.f32.xlu0 %v1597_v41  ;;  %6805 = vpow2.f32 %v1590_v53 }
 0x754   : > { %v1594_v13 = vsel %vm692_vm2, %v7573_v11, 0.0  ;;  %v1592_v52 = vmul.f32 1.442695, %v1577_v51 }
 0x755   : > { %1595 = vadd.xlane.f32.xlu1 %v1594_v13  ;;  %v1823_v6 = vpop.permute.xlu0 %1822 }
 0x756   : > { %6807 = vpow2.f32 %v1592_v52 }
 0x75b   : > { %v7581_v24 = vpop.eup %6797 }
 0x75c   : > { %v7583_v14 = vpop.eup %6799  ;;  %v1600_v17 = vsel %vm692_vm2, %v7581_v24, 0.0 }
 0x75d   : > { %v7587_v21 = vpop.eup %6801  ;;  %v1603_v29 = vsel %vm692_vm2, %v7583_v14, 0.0 }
 0x75e   : > { %v1606_v55 = vsel %vm692_vm2, %v7587_v21, 0.0 }
 0x75f   : > { %v7591_v48 = vpop.eup %6803 }
 0x760   : > { %v7595_v57 = vpop.eup %6805  ;;  %v1609_v41 = vsel %vm692_vm2, %v7591_v48, 0.0 }
 0x761   : > { %v1612_v16 = vsel %vm692_vm2, %v7595_v57, 0.0 }
 0x763   : > { %v7599_v13 = vpop.eup %6807 }
 0x764   : > { %v1615_v10 = vsel %vm692_vm2, %v7599_v13, 0.0 }
 0x766   : > { %1816 = vrot.lane.b32.xlu1 %v7146_v25, %s7017_s24 }
 0x769   : > { %1818 = vrot.lane.b32.xlu0 %v7152_v27, %s7017_s24 }
 0x788   : > { %1601 = vadd.xlane.f32.xlu0 %v1600_v17 }
 0x78a   : > { %1604 = vadd.xlane.f32.xlu1 %v1603_v29 }
 0x78c   : > { %1607 = vadd.xlane.f32.xlu0 %v1606_v55 }
 0x78e   : > { %1610 = vadd.xlane.f32.xlu1 %v1609_v41 }
 0x790   : > { %1613 = vadd.xlane.f32.xlu0 %v1612_v16 }
 0x792   : > { %1616 = vadd.xlane.f32.xlu1 %v1615_v10 }
 0x7a3   : > { %1812 = vrot.lane.b32.xlu1 %v7133_v15, %s7017_s24 }
 0x7a6   : > { %1814 = vrot.lane.b32.xlu0 %v7156_v28, %s7017_s24 }
 0x7a7   : > { %1798 = vrot.lane.b32.xlu1 %v7156_v28, %s7018_s25 }
 0x7aa   : > { %1796 = vrot.lane.b32.xlu0 %v7133_v15, %s7018_s25 }
 0x7ab   : > { %1802 = vrot.lane.b32.xlu1 %v7152_v27, %s7018_s25 }
 0x7ae   : > { %1800 = vrot.lane.b32.xlu0 %v7146_v25, %s7018_s25 }
 0x7af   : > { %1806 = vrot.lane.b32.xlu1 %v7137_v19, %s7018_s25 }
 0x7b2   : > { %1804 = vrot.lane.b32.xlu0 %v7140_v22, %s7018_s25 }
 0x7b3   : > { %1810 = vrot.lane.b32.xlu1 %v7142_v23, %s7018_s25 }
 0x7b6   : > { %1808 = vrot.lane.b32.xlu0 %v7148_v26, %s7018_s25 }
 0x7b7   : > { %2084 = vrot.lane.b32.xlu1 %v7142_v23, %s7019_s26 }
 0x7ba   : > { %2082 = vrot.lane.b32.xlu0 %v7148_v26, %s7019_s26 }
 0x7bb   : > { %2080 = vrot.lane.b32.xlu1 %v7137_v19, %s7019_s26 }
 0x7be   : > { %2076 = vrot.lane.b32.xlu0 %v7152_v27, %s7019_s26 }
 0x7bf   : > { %2078 = vrot.lane.b32.xlu1 %v7140_v22, %s7019_s26 }
 0x7c2   : > { %2072 = vrot.lane.b32.xlu0 %v7156_v28, %s7019_s26 }
 0x7c3   : > { %2074 = vrot.lane.b32.xlu1 %v7146_v25, %s7019_s26 }
 0x7c6   : > { %2253 = vrot.lane.b32.xlu0 %v7142_v23, %s7020_s27 }
 0x7c7   : > { %2070 = vrot.lane.b32.xlu1 %v7133_v15, %s7019_s26 }
 0x7cb   : > { %2251 = vrot.lane.b32.xlu1 %v7148_v26, %s7020_s27 }
 0x7dc   : > { %v1599_v20 = vpop.xlane.xlu0 %1598 }
 0x7dd   : > { %6809 = vrcp.f32 %v1599_v20 }
 0x7de   : > { %v1596_v30 = vpop.xlane.xlu1 %1595 }
 0x7df   : > { %6811 = vrcp.f32 %v1596_v30 }
 0x7ea   : > { %v6810_v31 = vpop.eup %6809 }
 0x7eb   : > { %v1621_v12 = vmul.f32 %v6810_v31, %v7569_v9  ;;  %v1819_v9 = vpop.permute.xlu0 %1818 }
 0x7ec   : > { %v6812_v32 = vpop.eup %6811 }
 0x7ed   : > { %5714 = vst.msk [vmem:[%s7323_s20 + $0x88] sm:$0xff] %vm692_vm2, %v1621_v12  ;;  %v1619_v34 = vmul.f32 %v6812_v32, %v7573_v11  ;;  %v1817_v11 = vpop.permute.xlu1 %1816 }
 0x7ef   : > { %5713 = vst.msk [vmem:[%s7323_s20 + $0x80] sm:$0xff] %vm692_vm2, %v1619_v34  ;;  %6363 = vmatprep.mubr.msk.f32.mxu0 %vm692_vm2, %v1619_v34 }
 0x7f0   : > { %6364 = vmatmul.mubr.msk.f32.vlgmr.msra.gmra.mxu0 %vm692_vm2, %v1621_v12 }
 0x7f1   : > { %6376 = vmatpush3.xpose.msk.msra.mxu0 %vm9341_vm1, %v7535_v58 }
 0x7f2   : > { %6377 = vmatprep.subr.msk.mxu0 %vm9341_vm1, %v7567_v50 }
 0x7f5   : > { %6378 = vmatpush3.xpose.msk.msra.mxu0 %vm9341_vm1, %v7567_v50 }
 0x7f6   : > { %6379 = vmatprep.subr.msk.mxu0 %vm9341_vm1, %v1823_v6 }
 0x7f9   : > { %6380 = vmatpush3.xpose.msk.msra.mxu0 %vm9341_vm1, %v1823_v6 }
 0x7fa   : > { %6381 = vmatprep.subr.msk.mxu0 %vm9341_vm1, %v1821_v18 }
 0x7fd   : > { %6382 = vmatpush3.xpose.msk.msra.mxu0 %vm9341_vm1, %v1821_v18 }
 0x7fe   : > { %6383 = vmatprep.subr.msk.mxu0 %vm9341_vm1, %v1819_v9 }
 0x801   : > { %6384 = vmatpush3.xpose.msk.msra.mxu0 %vm9341_vm1, %v1819_v9 }
 0x802   : > { %6385 = vmatprep.subr.msk.mxu0 %vm9341_vm1, %v1817_v11 }
 0x805   : > { %6386 = vmatpush3.xpose.msk.msra.mxu0 %vm9341_vm1, %v1817_v11 }
 0x811   : > { %v1602_v58 = vpop.xlane.xlu0 %1601 }
 0x812   : > { %6813 = vrcp.f32 %v1602_v58 }
 0x813   : > { %v1605_v50 = vpop.xlane.xlu1 %1604 }
 0x814   : > { %6815 = vrcp.f32 %v1605_v50 }
 0x815   : > { %v1608_v36 = vpop.xlane.xlu0 %1607 }
 0x816   : > { %6817 = vrcp.f32 %v1608_v36 }
 0x817   : > { %v1611_v33 = vpop.xlane.xlu1 %1610 }
 0x818   : > { %6819 = vrcp.f32 %v1611_v33 }
 0x819   : > { %v1614_v49 = vpop.xlane.xlu0 %1613 }
 0x81a   : > { %6821 = vrcp.f32 %v1614_v49 }
 0x81b   : > { %v1617_v35 = vpop.xlane.xlu1 %1616 }
 0x81c   : > { %6823 = vrcp.f32 %v1617_v35 }
 0x81d   : > { %v1815_v46 = vpop.permute.xlu0 %1814 }
 0x81e   : > { %6387 = vmatprep.subr.msk.mxu0 %vm9341_vm1, %v1815_v46 }
 0x81f   : > { %v6814_v51 = vpop.eup %6813  ;;  %6388 = vmatpush3.xpose.msk.msra.mxu0 %vm9341_vm1, %v1815_v46  ;;  %v1813_v53 = vpop.permute.xlu1 %1812 }
 0x820   : > { %6389 = vmatprep.subr.msk.mxu0 %vm9341_vm1, %v1813_v53  ;;  %v1623_v52 = vmul.f32 %v6814_v51, %v7581_v24 }
 0x821   : > { %v6816_v17 = vpop.eup %6815  ;;  %v1797_v29 = vpop.permute.xlu0 %1796 }
 0x822   : > { %5715 = vst.msk [vmem:[%s7323_s20 + $0x90] sm:$0xff] %vm692_vm2, %v1623_v52  ;;  %6366 = vmatprep.mubr.msk.f32.mxu0 %vm692_vm2, %v1623_v52  ;;  %v1625_v55 = vmul.f32 %v6816_v17, %v7583_v14 }
 0x823   : > { %v6818_v41 = vpop.eup %6817  ;;  %6390 = vmatpush3.xpose.msk.msra.mxu0 %vm9341_vm1, %v1813_v53  ;;  %v1799_v16 = vpop.permute.xlu1 %1798 }
 0x824   : > { %5716 = vst.msk [vmem:[%s7323_s20 + $0x98] sm:$0xff] %vm692_vm2, %v1625_v55  ;;  %6367 = vmatmul.mubr.msk.f32.gmra.mxu0 %vm692_vm2, %v1625_v55  ;;  %v1627_v24 = vmul.f32 %v6818_v41, %v7587_v21 }
 0x825   : > { %v6820_v10 = vpop.eup %6819  ;;  %v1801_v6 = vpop.permute.xlu0 %1800 }
 0x826   : > { %5717 = vst.msk [vmem:[%s7323_s20 + $0xa0] sm:$0xff] %vm692_vm2, %v1627_v24  ;;  %6369 = vmatprep.mubr.msk.f32.mxu0 %vm692_vm2, %v1627_v24  ;;  %v1629_v14 = vmul.f32 %v6820_v10, %v7591_v48 }
 0x827   : > { %v6822_v18 = vpop.eup %6821  ;;  %v1803_v20 = vpop.permute.xlu1 %1802 }
 0x828   : > { %5718 = vst.msk [vmem:[%s7323_s20 + $0xa8] sm:$0xff] %vm692_vm2, %v1629_v14  ;;  %6370 = vmatmul.mubr.msk.f32.gmra.mxu0 %vm692_vm2, %v1629_v14  ;;  %v1631_v30 = vmul.f32 %v6822_v18, %v7595_v57 }
 0x829   : > { %v6824_v31 = vpop.eup %6823  ;;  %v1805_v12 = vpop.permute.xlu0 %1804 }
 0x82a   : > { %5719 = vst.msk [vmem:[%s7323_s20 + $0xb0] sm:$0xff] %vm692_vm2, %v1631_v30  ;;  %6372 = vmatprep.mubr.msk.f32.mxu0 %vm692_vm2, %v1631_v30  ;;  %v1633_v21 = vmul.f32 %v6824_v31, %v7599_v13 }
 0x82b   : > { %v1807_v32 = vpop.permute.xlu1 %1806 }
 0x82c   : > { %5720 = vst.msk [vmem:[%s7323_s20 + $0xb8] sm:$0xff] %vm692_vm2, %v1633_v21  ;;  %6373 = vmatmul.mubr.msk.f32.gmra.mxu0 %vm692_vm2, %v1633_v21 }
 0x82d   : > { %v1809_v48 = vpop.permute.xlu0 %1808  ;;  %6391 = vmatprep.mubr.msk.f32.mxu0 %vm9341_vm1, %v1797_v29 }
 0x82f   : > { %v1811_v34 = vpop.permute.xlu1 %1810 }
 0x830   : > { %6392 = vmatmul.mubr.msk.f32.vlgmr.msra.gmra.mxu0 %vm9341_vm1, %v1799_v16 }
 0x831   : > { %6394 = vmatprep.mubr.msk.f32.mxu0 %vm9341_vm1, %v1801_v6  ;;  %v2083_v57 = vpop.permute.xlu0 %2082 }
 0x833   : > { %v2085_v9 = vpop.permute.xlu1 %2084 }
 0x834   : > { %6395 = vmatmul.mubr.msk.f32.gmra.mxu0 %vm9341_vm1, %v1803_v20  ;;  %6403 = vmatprep.subr.mxu1 %v2085_v9 }
 0x835   : > { %6397 = vmatprep.mubr.msk.f32.mxu0 %vm9341_vm1, %v1805_v12  ;;  %6404 = vmatpush3.msra.mxu1 %v2085_v9  ;;  %v2077_v11 = vpop.permute.xlu0 %2076 }
 0x836   : > { %6405 = vmatprep.subr.mxu1 %v2083_v57 }
 0x837   : > { %6406 = vmatpush3.msra.mxu1 %v2083_v57  ;;  %v2081_v13 = vpop.permute.xlu1 %2080 }
 0x838   : > { %6398 = vmatmul.mubr.msk.f32.gmra.mxu0 %vm9341_vm1, %v1807_v32  ;;  %6407 = vmatprep.subr.mxu1 %v2081_v13 }
 0x839   : > { %6400 = vmatprep.mubr.msk.f32.mxu0 %vm9341_vm1, %v1809_v48  ;;  %6408 = vmatpush3.msra.mxu1 %v2081_v13  ;;  %v2073_v50 = vpop.permute.xlu0 %2072 }
 0x83b   : > { %v2079_v58 = vpop.permute.xlu1 %2078 }
 0x83c   : > { %6401 = vmatmul.mubr.msk.f32.gmra.mxu0 %vm9341_vm1, %v1811_v34  ;;  %6409 = vmatprep.subr.mxu1 %v2079_v58 }
 0x83d   : > { %6410 = vmatpush3.msra.mxu1 %v2079_v58  ;;  %v7687_v49 = vpop.permute.xlu0 %2253 }
 0x83e   : > { %6411 = vmatprep.subr.mxu1 %v2077_v11 }
 0x83f   : > { %6412 = vmatpush3.msra.mxu1 %v2077_v11  ;;  %v2075_v36 = vpop.permute.xlu1 %2074 }
 0x840   : > { %6413 = vmatprep.subr.mxu1 %v2075_v36 }
 0x841   : > { %6414 = vmatpush3.msra.mxu1 %v2075_v36 }
 0x842   : > { %6415 = vmatprep.subr.mxu1 %v2073_v50 }
 0x843   : > { %6416 = vmatpush3.msra.mxu1 %v2073_v50  ;;  %v2071_v33 = vpop.permute.xlu1 %2070 }
 0x844   : > { %6417 = vmatprep.subr.mxu1 %v2071_v33 }
 0x845   : > { %6418 = vmatpush3.msra.mxu1 %v2071_v33 }
 0x846   : > { %6431 = vmatprep.subr.msk.mxu1 %vm9341_vm1, %v7687_v49 }
 0x8b0   : > { %v7691_v35 = vpop.f32.mrf.mxu0 }
 0x8b1   : > { %9366 = vst [vmem:[#allocation18_spill] sm:$0xff] %v7691_v35 }
 0x8b2   : > { %v7693_v46 = vpop.f32.mrf.mxu0 }
 0x8b3   : > { %9367 = vst [vmem:[#allocation19_spill] sm:$0xff] %v7693_v46 }
 0x8e4   : > { %v7695_v51 = vpop.f32.mrf.mxu0 }
 0x8e5   : > { %9368 = vst [vmem:[#allocation20_spill] sm:$0xff] %v7695_v51  ;;  %v4397_v51 = vrot.slane %v7196_v39, 7 }
 0x8e6   : > { %v7697_v53 = vpop.f32.mrf.mxu0 }
 0x8e7   : > { %9369 = vst [vmem:[#allocation21_spill] sm:$0xff] %v7697_v53  ;;  %v4639_v53 = vrot.slane %v7218_v44, 1 }
 0x8e8   : > { %v7699_v52 = vpop.f32.mrf.mxu0 }
 0x8e9   : > { %9370 = vst [vmem:[#allocation22_spill] sm:$0xff] %v7699_v52 }
 0x8ea   : > { %v7701_v17 = vpop.f32.mrf.mxu0 }
 0x8eb   : > { %9371 = vst [vmem:[#allocation23_spill] sm:$0xff] %v7701_v17 }
 0x8ec   : > { %v7703_v29 = vpop.f32.mrf.mxu0 }
 0x8ed   : > { %9372 = vst [vmem:[#allocation24_spill] sm:$0xff] %v7703_v29 }
 0x8ee   : > { %v7705_v55 = vpop.f32.mrf.mxu0 }
 0x8ef   : > { %9373 = vst [vmem:[#allocation25_spill] sm:$0xff] %v7705_v55 }
 0x8f0   : > { %v6393_v41 = vpop.f32.mrf.mxu0 }
 0x8f1   : > { %v1966_v16 = vmul.f32 0.5, %v6393_v41 }
 0x8f2   : > { %v1926_v24 = vpop.f32.mrf.mxu0 }
 0x8f3   : > { %v1965_v10 = vmul.f32 0.5, %v1926_v24  ;;  %v1976_v6 = vsel %vm692_vm2, %v1966_v16, -inf  ;;  %v7719_v24 = vpop.permute.xlu1 %2251 }
 0x8f4   : > { %1977 = vmax.xlane.f32.xlu1 %v1976_v6  ;;  %v6396_v14 = vpop.f32.mrf.mxu0 }
 0x8f5   : > { %v1968_v18 = vmul.f32 0.5, %v6396_v14  ;;  %v1973_v20 = vsel %vm692_vm2, %v1965_v10, -inf }
 0x8f6   : > { %1974 = vmax.xlane.f32.xlu0 %v1973_v20  ;;  %v1936_v30 = vpop.f32.mrf.mxu0 }
 0x8f7   : > { %v1967_v12 = vmul.f32 0.5, %v1936_v30  ;;  %v1982_v21 = vsel %vm692_vm2, %v1968_v18, -inf }
 0x8f8   : > { %v6399_v31 = vpop.f32.mrf.mxu0 }
 0x8f9   : > { %v1970_v57 = vmul.f32 0.5, %v6399_v31  ;;  %v1979_v9 = vsel %vm692_vm2, %v1967_v12, -inf }
 0x8fa   : > { %1983 = vmax.xlane.f32.xlu0 %v1982_v21  ;;  %v1946_v32 = vpop.f32.mrf.mxu0 }
 0x8fb   : > { %v1969_v48 = vmul.f32 0.5, %v1946_v32  ;;  %v1988_v36 = vsel %vm692_vm2, %v1970_v57, -inf }
 0x8fc   : > { %v6402_v34 = vpop.f32.mrf.mxu0 }
 0x8fd   : > { %v1985_v13 = vsel %vm692_vm2, %v1969_v48, -inf  ;;  %v1972_v50 = vmul.f32 0.5, %v6402_v34 }
 0x8fe   : > { %1980 = vmax.xlane.f32.xlu0 %v1979_v9  ;;  %1986 = vmax.xlane.f32.xlu1 %v1985_v13  ;;  %v1956_v11 = vpop.f32.mrf.mxu0 }
 0x8ff   : > { %v1971_v58 = vmul.f32 0.5, %v1956_v11  ;;  %v1994_v41 = vsel %vm692_vm2, %v1972_v50, -inf }
 0x901   : > { %v1991_v33 = vsel %vm692_vm2, %v1971_v58, -inf }
 0x902   : > { %1989 = vmax.xlane.f32.xlu0 %v1988_v36  ;;  %1992 = vmax.xlane.f32.xlu1 %v1991_v33 }
 0x906   : > { %1995 = vmax.xlane.f32.xlu0 %v1994_v41 }
 0x913   : > { %2247 = vrot.lane.b32.xlu1 %v7140_v22, %s7020_s27 }
 0x91c   : > { %2249 = vrot.lane.b32.xlu0 %v7137_v19, %s7020_s27 }
 0x97d   : > { %v1978_v6 = vpop.xlane.xlu1 %1977 }
 0x97e   : > { %v1998_v14 = vsub.f32 %v1966_v16, %v1978_v6 }
 0x97f   : > { %v1975_v20 = vpop.xlane.xlu0 %1974 }
 0x980   : > { %v2007_v30 = vmul.f32 1.442695, %v1998_v14  ;;  %v1997_v31 = vsub.f32 %v1965_v10, %v1975_v20 }
 0x982   : > { %6825 = vpow2.f32 %v2007_v30  ;;  %v2005_v21 = vmul.f32 1.442695, %v1997_v31 }
 0x983   : > { %v1984_v11 = vpop.xlane.xlu0 %1983 }
 0x984   : > { %6827 = vpow2.f32 %v2005_v21  ;;  %v2000_v41 = vsub.f32 %v1968_v18, %v1984_v11 }
 0x986   : > { %v2011_v30 = vmul.f32 1.442695, %v2000_v41 }
 0x987   : > { %v1981_v16 = vpop.xlane.xlu0 %1980  ;;  %v1987_v10 = vpop.xlane.xlu1 %1986 }
 0x988   : > { %v1999_v36 = vsub.f32 %v1967_v12, %v1981_v16  ;;  %v2001_v14 = vsub.f32 %v1969_v48, %v1987_v10 }
 0x98a   : > { %v2009_v6 = vmul.f32 1.442695, %v1999_v36 }
 0x98b   : > { %v1990_v33 = vpop.xlane.xlu0 %1989  ;;  %v1993_v20 = vpop.xlane.xlu1 %1992 }
 0x98c   : > { %v2002_v31 = vsub.f32 %v1970_v57, %v1990_v33  ;;  %6829 = vpow2.f32 %v2009_v6 }
 0x98d   : > { %6831 = vpow2.f32 %v2011_v30 }
 0x98e   : > { %v2015_v7 = vmul.f32 1.442695, %v2002_v31 }
 0x98f   : > { %v7721_v32 = vpop.eup %6825  ;;  %v1996_v21 = vpop.xlane.xlu0 %1995 }
 0x990   : > { %v2024_v34 = vsel %vm692_vm2, %v7721_v32, 0.0  ;;  %v2004_v5 = vsub.f32 %v1972_v50, %v1996_v21  ;;  %v2248_v36 = vpop.permute.xlu1 %2247 }
 0x991   : > { %v7725_v9 = vpop.eup %6827  ;;  %2025 = vadd.xlane.f32.xlu0 %v2024_v34  ;;  %v2013_v34 = vmul.f32 1.442695, %v2001_v14 }
 0x992   : > { %v2021_v13 = vsel %vm692_vm2, %v7725_v9, 0.0  ;;  %v2019_v4 = vmul.f32 1.442695, %v2004_v5 }
 0x993   : > { %2022 = vadd.xlane.f32.xlu1 %v2021_v13  ;;  %v2003_v13 = vsub.f32 %v1971_v58, %v1993_v20  ;;  %6833 = vpow2.f32 %v2013_v34  ;;  %v2250_v10 = vpop.permute.xlu0 %2249 }
 0x994   : > { %6835 = vpow2.f32 %v2015_v7 }
 0x995   : > { %v2017_v3 = vmul.f32 1.442695, %v2003_v13 }
 0x997   : > { %6837 = vpow2.f32 %v2017_v3 }
 0x998   : > { %6839 = vpow2.f32 %v2019_v4 }
 0x999   : > { %v7733_v12 = vpop.eup %6829 }
 0x99a   : > { %v7735_v18 = vpop.eup %6831  ;;  %v2027_v48 = vsel %vm692_vm2, %v7733_v12, 0.0 }
 0x99b   : > { %v2030_v58 = vsel %vm692_vm2, %v7735_v18, 0.0 }
 0x9a0   : > { %v7739_v57 = vpop.eup %6833 }
 0x9a1   : > { %v7743_v50 = vpop.eup %6835  ;;  %v2033_v3 = vsel %vm692_vm2, %v7739_v57, 0.0 }
 0x9a2   : > { %v2036_v5 = vsel %vm692_vm2, %v7743_v50, 0.0 }
 0x9a4   : > { %2243 = vrot.lane.b32.xlu1 %v7146_v25, %s7020_s27  ;;  %v7747_v4 = vpop.eup %6837 }
 0x9a5   : > { %v7751_v7 = vpop.eup %6839  ;;  %v2039_v11 = vsel %vm692_vm2, %v7747_v4, 0.0 }
 0x9a6   : > { %v2042_v16 = vsel %vm692_vm2, %v7751_v7, 0.0 }
 0x9a7   : > { %2245 = vrot.lane.b32.xlu0 %v7152_v27, %s7020_s27 }
 0x9c6   : > { %2028 = vadd.xlane.f32.xlu0 %v2027_v48 }
 0x9c8   : > { %2031 = vadd.xlane.f32.xlu1 %v2030_v58 }
 0x9ca   : > { %2034 = vadd.xlane.f32.xlu0 %v2033_v3 }
 0x9cc   : > { %2037 = vadd.xlane.f32.xlu1 %v2036_v5 }
 0x9ce   : > { %2040 = vadd.xlane.f32.xlu0 %v2039_v11 }
 0x9d0   : > { %2043 = vadd.xlane.f32.xlu1 %v2042_v16 }
 0x9e1   : > { %2239 = vrot.lane.b32.xlu1 %v7133_v15, %s7020_s27 }
 0x9e4   : > { %2241 = vrot.lane.b32.xlu0 %v7156_v28, %s7020_s27 }
 0x9e5   : > { %2225 = vrot.lane.b32.xlu1 %v7156_v28, %s7021_s28 }
 0x9e8   : > { %2223 = vrot.lane.b32.xlu0 %v7133_v15, %s7021_s28 }
 0x9e9   : > { %2229 = vrot.lane.b32.xlu1 %v7152_v27, %s7021_s28 }
 0x9ec   : > { %2227 = vrot.lane.b32.xlu0 %v7146_v25, %s7021_s28 }
 0x9ed   : > { %2233 = vrot.lane.b32.xlu1 %v7137_v19, %s7021_s28 }
 0x9f0   : > { %2231 = vrot.lane.b32.xlu0 %v7140_v22, %s7021_s28 }
 0x9f1   : > { %2237 = vrot.lane.b32.xlu1 %v7142_v23, %s7021_s28 }
 0x9f4   : > { %2235 = vrot.lane.b32.xlu0 %v7148_v26, %s7021_s28  ;;  %s7032_s28 = smov 4  }
 0x9f5   : > { %2511 = vrot.lane.b32.xlu1 %v7142_v23, %s7022_s29 }
 0x9f8   : > { %2509 = vrot.lane.b32.xlu0 %v7148_v26, %s7022_s29 }
 0x9f9   : > { %2507 = vrot.lane.b32.xlu1 %v7137_v19, %s7022_s29 }
 0x9fc   : > { %2503 = vrot.lane.b32.xlu0 %v7152_v27, %s7022_s29 }
 0x9fd   : > { %2505 = vrot.lane.b32.xlu1 %v7140_v22, %s7022_s29 }
 0xa00   : > { %2499 = vrot.lane.b32.xlu0 %v7156_v28, %s7022_s29 }
 0xa01   : > { %2501 = vrot.lane.b32.xlu1 %v7146_v25, %s7022_s29 }
 0xa04   : > { %2680 = vrot.lane.b32.xlu0 %v7142_v23, %s7023_s11 }
 0xa05   : > { %2497 = vrot.lane.b32.xlu1 %v7133_v15, %s7022_s29  ;;  %s7033_s29 = smov 8  }
 0xa09   : > { %2678 = vrot.lane.b32.xlu1 %v7148_v26, %s7023_s11 }
 0xa1a   : > { %v2026_v33 = vpop.xlane.xlu0 %2025 }
 0xa1b   : > { %6841 = vrcp.f32 %v2026_v33 }
 0xa1c   : > { %v2023_v41 = vpop.xlane.xlu1 %2022 }
 0xa1d   : > { %6843 = vrcp.f32 %v2023_v41 }
 0xa28   : > { %v6842_v6 = vpop.eup %6841 }
 0xa29   : > { %v2048_v14 = vmul.f32 %v6842_v6, %v7721_v32  ;;  %v2246_v32 = vpop.permute.xlu0 %2245 }
 0xa2a   : > { %v6844_v20 = vpop.eup %6843 }
 0xa2b   : > { %5746 = vst.msk [vmem:[%s7323_s20 + $0xc8] sm:$0xff] %vm692_vm2, %v2048_v14  ;;  %v2046_v30 = vmul.f32 %v6844_v20, %v7725_v9  ;;  %v2244_v9 = vpop.permute.xlu1 %2243 }
 0xa2d   : > { %5745 = vst.msk [vmem:[%s7323_s20 + $0xc0] sm:$0xff] %vm692_vm2, %v2046_v30  ;;  %6419 = vmatprep.mubr.msk.f32.mxu1 %vm692_vm2, %v2046_v30 }
 0xa2e   : > { %6420 = vmatmul.mubr.msk.f32.vlgmr.msra.gmra.mxu1 %vm692_vm2, %v2048_v14 }
 0xa2f   : > { %6432 = vmatpush3.xpose.msk.msra.mxu1 %vm9341_vm1, %v7687_v49 }
 0xa30   : > { %6433 = vmatprep.subr.msk.mxu1 %vm9341_vm1, %v7719_v24 }
 0xa33   : > { %6434 = vmatpush3.xpose.msk.msra.mxu1 %vm9341_vm1, %v7719_v24 }
 0xa34   : > { %6435 = vmatprep.subr.msk.mxu1 %vm9341_vm1, %v2250_v10 }
 0xa37   : > { %6436 = vmatpush3.xpose.msk.msra.mxu1 %vm9341_vm1, %v2250_v10 }
 0xa38   : > { %6437 = vmatprep.subr.msk.mxu1 %vm9341_vm1, %v2248_v36 }
 0xa3b   : > { %6438 = vmatpush3.xpose.msk.msra.mxu1 %vm9341_vm1, %v2248_v36 }
 0xa3c   : > { %6439 = vmatprep.subr.msk.mxu1 %vm9341_vm1, %v2246_v32 }
 0xa3f   : > { %6440 = vmatpush3.xpose.msk.msra.mxu1 %vm9341_vm1, %v2246_v32 }
 0xa40   : > { %6441 = vmatprep.subr.msk.mxu1 %vm9341_vm1, %v2244_v9 }
 0xa43   : > { %6442 = vmatpush3.xpose.msk.msra.mxu1 %vm9341_vm1, %v2244_v9 }
 0xa4f   : > { %v2029_v49 = vpop.xlane.xlu0 %2028 }
 0xa50   : > { %6845 = vrcp.f32 %v2029_v49 }
 0xa51   : > { %v2032_v24 = vpop.xlane.xlu1 %2031 }
 0xa52   : > { %6847 = vrcp.f32 %v2032_v24 }
 0xa53   : > { %v2035_v31 = vpop.xlane.xlu0 %2034 }
 0xa54   : > { %6849 = vrcp.f32 %v2035_v31 }
 0xa55   : > { %v2038_v21 = vpop.xlane.xlu1 %2037 }
 0xa56   : > { %6851 = vrcp.f32 %v2038_v21 }
 0xa57   : > { %v2041_v34 = vpop.xlane.xlu0 %2040 }
 0xa58   : > { %6853 = vrcp.f32 %v2041_v34 }
 0xa59   : > { %v2044_v13 = vpop.xlane.xlu1 %2043 }
 0xa5a   : > { %6855 = vrcp.f32 %v2044_v13 }
 0xa5b   : > { %v2242_v48 = vpop.permute.xlu0 %2241 }
 0xa5c   : > { %6443 = vmatprep.subr.msk.mxu1 %vm9341_vm1, %v2242_v48 }
 0xa5d   : > { %v6846_v58 = vpop.eup %6845  ;;  %6444 = vmatpush3.xpose.msk.msra.mxu1 %vm9341_vm1, %v2242_v48  ;;  %v2240_v3 = vpop.permute.xlu1 %2239 }
 0xa5e   : > { %6445 = vmatprep.subr.msk.mxu1 %vm9341_vm1, %v2240_v3  ;;  %v2050_v5 = vmul.f32 %v6846_v58, %v7733_v12 }
 0xa5f   : > { %v6848_v11 = vpop.eup %6847  ;;  %v2224_v16 = vpop.permute.xlu0 %2223 }
 0xa60   : > { %5747 = vst.msk [vmem:[%s7323_s20 + $0xd0] sm:$0xff] %vm692_vm2, %v2050_v5  ;;  %6422 = vmatprep.mubr.msk.f32.mxu1 %vm692_vm2, %v2050_v5  ;;  %v2052_v10 = vmul.f32 %v6848_v11, %v7735_v18 }
 0xa61   : > { %v6850_v36 = vpop.eup %6849  ;;  %6446 = vmatpush3.xpose.msk.msra.mxu1 %vm9341_vm1, %v2240_v3  ;;  %v2226_v33 = vpop.permute.xlu1 %2225 }
 0xa62   : > { %5748 = vst.msk [vmem:[%s7323_s20 + $0xd8] sm:$0xff] %vm692_vm2, %v2052_v10  ;;  %6423 = vmatmul.mubr.msk.f32.gmra.mxu1 %vm692_vm2, %v2052_v10  ;;  %v2054_v12 = vmul.f32 %v6850_v36, %v7739_v57 }
 0xa63   : > { %v6852_v41 = vpop.eup %6851  ;;  %v2228_v6 = vpop.permute.xlu0 %2227 }
 0xa64   : > { %5749 = vst.msk [vmem:[%s7323_s20 + $0xe0] sm:$0xff] %vm692_vm2, %v2054_v12  ;;  %6425 = vmatprep.mubr.msk.f32.mxu1 %vm692_vm2, %v2054_v12  ;;  %v2056_v18 = vmul.f32 %v6852_v41, %v7743_v50 }
 0xa65   : > { %v6854_v14 = vpop.eup %6853  ;;  %v2230_v20 = vpop.permute.xlu1 %2229 }
 0xa66   : > { %5750 = vst.msk [vmem:[%s7323_s20 + $0xe8] sm:$0xff] %vm692_vm2, %v2056_v18  ;;  %6426 = vmatmul.mubr.msk.f32.gmra.mxu1 %vm692_vm2, %v2056_v18  ;;  %v2058_v30 = vmul.f32 %v6854_v14, %v7747_v4 }
 0xa67   : > { %v6856_v32 = vpop.eup %6855  ;;  %v2232_v9 = vpop.permute.xlu0 %2231 }
 0xa68   : > { %5751 = vst.msk [vmem:[%s7323_s20 + $0xf0] sm:$0xff] %vm692_vm2, %v2058_v30  ;;  %6428 = vmatprep.mubr.msk.f32.mxu1 %vm692_vm2, %v2058_v30  ;;  %v2060_v57 = vmul.f32 %v6856_v32, %v7751_v7 }
 0xa69   : > { %v2234_v49 = vpop.permute.xlu1 %2233 }
 0xa6a   : > { %5752 = vst.msk [vmem:[%s7323_s20 + $0xf8] sm:$0xff] %vm692_vm2, %v2060_v57  ;;  %6429 = vmatmul.mubr.msk.f32.gmra.mxu1 %vm692_vm2, %v2060_v57 }
 0xa6b   : > { %v2236_v50 = vpop.permute.xlu0 %2235  ;;  %6447 = vmatprep.mubr.msk.f32.mxu1 %vm9341_vm1, %v2224_v16 }
 0xa6d   : > { %v2238_v24 = vpop.permute.xlu1 %2237 }
 0xa6e   : > { %6448 = vmatmul.mubr.msk.f32.vlgmr.msra.gmra.mxu1 %vm9341_vm1, %v2226_v33 }
 0xa6f   : > { %6450 = vmatprep.mubr.msk.f32.mxu1 %vm9341_vm1, %v2228_v6  ;;  %v2510_v4 = vpop.permute.xlu0 %2509 }
 0xa71   : > { %v2512_v31 = vpop.permute.xlu1 %2511 }
 0xa72   : > { %6451 = vmatmul.mubr.msk.f32.gmra.mxu1 %vm9341_vm1, %v2230_v20  ;;  %6459 = vmatprep.subr.mxu0 %v2512_v31 }
 0xa73   : > { %6453 = vmatprep.mubr.msk.f32.mxu1 %vm9341_vm1, %v2232_v9  ;;  %6460 = vmatpush3.msra.mxu0 %v2512_v31  ;;  %v2504_v21 = vpop.permute.xlu0 %2503 }
 0xa74   : > { %6461 = vmatprep.subr.mxu0 %v2510_v4 }
 0xa75   : > { %6462 = vmatpush3.msra.mxu0 %v2510_v4  ;;  %v2508_v7 = vpop.permute.xlu1 %2507 }
 0xa76   : > { %6454 = vmatmul.mubr.msk.f32.gmra.mxu1 %vm9341_vm1, %v2234_v49  ;;  %6463 = vmatprep.subr.mxu0 %v2508_v7 }
 0xa77   : > { %6456 = vmatprep.mubr.msk.f32.mxu1 %vm9341_vm1, %v2236_v50  ;;  %6464 = vmatpush3.msra.mxu0 %v2508_v7  ;;  %v2500_v13 = vpop.permute.xlu0 %2499 }
 0xa79   : > { %v2506_v34 = vpop.permute.xlu1 %2505 }
 0xa7a   : > { %6457 = vmatmul.mubr.msk.f32.gmra.mxu1 %vm9341_vm1, %v2238_v24  ;;  %6465 = vmatprep.subr.mxu0 %v2506_v34 }
 0xa7b   : > { %6466 = vmatpush3.msra.mxu0 %v2506_v34  ;;  %v7839_v3 = vpop.permute.xlu0 %2680 }
 0xa7c   : > { %6467 = vmatprep.subr.mxu0 %v2504_v21 }
 0xa7d   : > { %6468 = vmatpush3.msra.mxu0 %v2504_v21  ;;  %v2502_v48 = vpop.permute.xlu1 %2501 }
 0xa7e   : > { %6469 = vmatprep.subr.mxu0 %v2502_v48 }
 0xa7f   : > { %6470 = vmatpush3.msra.mxu0 %v2502_v48 }
 0xa80   : > { %6471 = vmatprep.subr.mxu0 %v2500_v13 }
 0xa81   : > { %6472 = vmatpush3.msra.mxu0 %v2500_v13  ;;  %v2498_v58 = vpop.permute.xlu1 %2497 }
 0xa82   : > { %6473 = vmatprep.subr.mxu0 %v2498_v58 }
 0xa83   : > { %6474 = vmatpush3.msra.mxu0 %v2498_v58 }
 0xa84   : > { %6487 = vmatprep.subr.msk.mxu0 %vm9341_vm1, %v7839_v3 }
 0xaee   : > { %v7843_v5 = vpop.f32.mrf.mxu1 }
 0xaef   : > { %9374 = vst [vmem:[#allocation26_spill] sm:$0xff] %v7843_v5 }
 0xaf0   : > { %v7845_v11 = vpop.f32.mrf.mxu1 }
 0xaf1   : > { %9375 = vst [vmem:[#allocation27_spill] sm:$0xff] %v7845_v11  ;;  %v9416_v11 = vrot.slane %v7198_v40, 7 }
 0xb22   : > { %v7847_v16 = vpop.f32.mrf.mxu1 }
 0xb23   : > { %9376 = vst [vmem:[#allocation28_spill] sm:$0xff] %v7847_v16  ;;  %v4398_v16 = vrot.slane %v7218_v44, 7 }
 0xb24   : > { %v7849_v10 = vpop.f32.mrf.mxu1 }
 0xb25   : > { %9377 = vst [vmem:[#allocation29_spill] sm:$0xff] %v7849_v10 }
 0xb26   : > { %v7851_v36 = vpop.f32.mrf.mxu1 }
 0xb27   : > { %9378 = vst [vmem:[#allocation30_spill] sm:$0xff] %v7851_v36 }
 0xb28   : > { %v7853_v33 = vpop.f32.mrf.mxu1 }
 0xb29   : > { %9379 = vst [vmem:[#allocation31_spill] sm:$0xff] %v7853_v33 }
 0xb2a   : > { %v7855_v12 = vpop.f32.mrf.mxu1 }
 0xb2b   : > { %9380 = vst [vmem:[#allocation32_spill] sm:$0xff] %v7855_v12 }
 0xb2c   : > { %v7857_v41 = vpop.f32.mrf.mxu1 }
 0xb2d   : > { %9381 = vst [vmem:[#allocation33_spill] sm:$0xff] %v7857_v41 }
 0xb2e   : > { %v6449_v6 = vpop.f32.mrf.mxu1 }
 0xb2f   : > { %v2393_v18 = vmul.f32 0.5, %v6449_v6 }
 0xb30   : > { %v2353_v14 = vpop.f32.mrf.mxu1 }
 0xb31   : > { %v2392_v20 = vmul.f32 0.5, %v2353_v14  ;;  %v2403_v30 = vsel %vm692_vm2, %v2393_v18, -inf }
 0xb32   : > { %2404 = vmax.xlane.f32.xlu1 %v2403_v30  ;;  %v6452_v32 = vpop.f32.mrf.mxu1 }
 0xb33   : > { %v2395_v9 = vmul.f32 0.5, %v6452_v32  ;;  %v2400_v57 = vsel %vm692_vm2, %v2392_v20, -inf }
 0xb34   : > { %2401 = vmax.xlane.f32.xlu0 %v2400_v57  ;;  %v2363_v49 = vpop.f32.mrf.mxu1 }
 0xb35   : > { %v2394_v24 = vmul.f32 0.5, %v2363_v49  ;;  %v2409_v4 = vsel %vm692_vm2, %v2395_v9, -inf  ;;  %v7871_v49 = vpop.permute.xlu1 %2678 }
 0xb36   : > { %v6455_v50 = vpop.f32.mrf.mxu1 }
 0xb37   : > { %v2397_v34 = vmul.f32 0.5, %v6455_v50  ;;  %v2406_v13 = vsel %vm692_vm2, %v2394_v24, -inf }
 0xb38   : > { %2410 = vmax.xlane.f32.xlu0 %v2409_v4  ;;  %v2373_v31 = vpop.f32.mrf.mxu1 }
 0xb39   : > { %v2396_v7 = vmul.f32 0.5, %v2373_v31  ;;  %v2415_v30 = vsel %vm692_vm2, %v2397_v34, -inf }
 0xb3a   : > { %v6458_v21 = vpop.f32.mrf.mxu1 }
 0xb3b   : > { %v2412_v48 = vsel %vm692_vm2, %v2396_v7, -inf  ;;  %v2399_v14 = vmul.f32 0.5, %v6458_v21 }
 0xb3c   : > { %2407 = vmax.xlane.f32.xlu0 %v2406_v13  ;;  %2413 = vmax.xlane.f32.xlu1 %v2412_v48  ;;  %v2383_v58 = vpop.f32.mrf.mxu1 }
 0xb3d   : > { %v2398_v6 = vmul.f32 0.5, %v2383_v58  ;;  %v2421_v57 = vsel %vm692_vm2, %v2399_v14, -inf }
 0xb3f   : > { %v2418_v32 = vsel %vm692_vm2, %v2398_v6, -inf }
 0xb40   : > { %2416 = vmax.xlane.f32.xlu0 %v2415_v30  ;;  %2419 = vmax.xlane.f32.xlu1 %v2418_v32 }
 0xb44   : > { %2422 = vmax.xlane.f32.xlu0 %v2421_v57 }
 0xb51   : > { %2674 = vrot.lane.b32.xlu1 %v7140_v22, %s7023_s11 }
 0xb5a   : > { %2676 = vrot.lane.b32.xlu0 %v7137_v19, %s7023_s11 }
 0xbbb   : > { %v2405_v50 = vpop.xlane.xlu1 %2404 }
 0xbbc   : > { %v2425_v4 = vsub.f32 %v2393_v18, %v2405_v50 }
 0xbbd   : > { %v2402_v31 = vpop.xlane.xlu0 %2401 }
 0xbbe   : > { %v2434_v21 = vmul.f32 1.442695, %v2425_v4  ;;  %v2424_v13 = vsub.f32 %v2392_v20, %v2402_v31 }
 0xbc0   : > { %6857 = vpow2.f32 %v2434_v21  ;;  %v2432_v48 = vmul.f32 1.442695, %v2424_v13 }
 0xbc1   : > { %v2411_v1 = vpop.xlane.xlu0 %2410 }
 0xbc2   : > { %6859 = vpow2.f32 %v2432_v48  ;;  %v2427_v31 = vsub.f32 %v2395_v9, %v2411_v1 }
 0xbc5   : > { %v2408_v18 = vpop.xlane.xlu0 %2407  ;;  %v2414_v20 = vpop.xlane.xlu1 %2413 }
 0xbc6   : > { %v2426_v50 = vsub.f32 %v2394_v24, %v2408_v18  ;;  %v2428_v13 = vsub.f32 %v2396_v7, %v2414_v20 }
 0xbc8   : > { %v2436_v21 = vmul.f32 1.442695, %v2426_v50 }
 0xbc9   : > { %v2417_v4 = vpop.xlane.xlu0 %2416  ;;  %v2420_v48 = vpop.xlane.xlu1 %2419 }
 0xbca   : > { %v2429_v2 = vsub.f32 %v2397_v34, %v2417_v4  ;;  %6861 = vpow2.f32 %v2436_v21  ;;  %v2430_v0 = vsub.f32 %v2398_v6, %v2420_v48 }
 0xbcc   : > { %v2442_v12 = vmul.f32 1.442695, %v2429_v2  ;;  %v2444_v29 = vmul.f32 1.442695, %v2430_v0 }
 0xbcd   : > { %v7873_v58 = vpop.eup %6857  ;;  %v2423_v63 = vpop.xlane.xlu0 %2422 }
 0xbce   : > { %v2451_v30 = vsel %vm692_vm2, %v7873_v58, 0.0  ;;  %v2431_v41 = vsub.f32 %v2399_v14, %v2423_v63  ;;  %v2675_v14 = vpop.permute.xlu1 %2674 }
 0xbcf   : > { %v7877_v32 = vpop.eup %6859  ;;  %2452 = vadd.xlane.f32.xlu0 %v2451_v30  ;;  %v2438_v30 = vmul.f32 1.442695, %v2427_v31 }
 0xbd0   : > { %v2448_v57 = vsel %vm692_vm2, %v7877_v32, 0.0  ;;  %v2446_v55 = vmul.f32 1.442695, %v2431_v41 }
 0xbd1   : > { %2449 = vadd.xlane.f32.xlu1 %v2448_v57  ;;  %v2440_v57 = vmul.f32 1.442695, %v2428_v13  ;;  %6863 = vpow2.f32 %v2438_v30  ;;  %v2677_v6 = vpop.permute.xlu0 %2676 }
 0xbd3   : > { %6865 = vpow2.f32 %v2440_v57 }
 0xbd4   : > { %6867 = vpow2.f32 %v2442_v12 }
 0xbd5   : > { %6869 = vpow2.f32 %v2444_v29 }
 0xbd6   : > { %6871 = vpow2.f32 %v2446_v55 }
 0xbd7   : > { %v7885_v24 = vpop.eup %6861 }
 0xbd8   : > { %v2454_v9 = vsel %vm692_vm2, %v7885_v24, 0.0 }
 0xbde   : > { %v7887_v1 = vpop.eup %6863 }
 0xbdf   : > { %v2457_v2 = vsel %vm692_vm2, %v7887_v1, 0.0 }
 0xbe0   : > { %v7891_v7 = vpop.eup %6865 }
 0xbe1   : > { %v7895_v63 = vpop.eup %6867  ;;  %v2460_v0 = vsel %vm692_vm2, %v7891_v7, 0.0 }
 0xbe2   : > { %2670 = vrot.lane.b32.xlu1 %v7146_v25, %s7023_s11  ;;  %v7899_v29 = vpop.eup %6869  ;;  %v2463_v55 = vsel %vm692_vm2, %v7895_v63, 0.0 }
 0xbe3   : > { %v7903_v12 = vpop.eup %6871  ;;  %v2466_v41 = vsel %vm692_vm2, %v7899_v29, 0.0 }
 0xbe4   : > { %v2469_v34 = vsel %vm692_vm2, %v7903_v12, 0.0 }
 0xbe5   : > { %2672 = vrot.lane.b32.xlu0 %v7152_v27, %s7023_s11 }
 0xc04   : > { %2455 = vadd.xlane.f32.xlu0 %v2454_v9 }
 0xc06   : > { %2458 = vadd.xlane.f32.xlu1 %v2457_v2 }
 0xc08   : > { %2461 = vadd.xlane.f32.xlu0 %v2460_v0 }
 0xc0a   : > { %2464 = vadd.xlane.f32.xlu1 %v2463_v55 }
 0xc0c   : > { %2467 = vadd.xlane.f32.xlu0 %v2466_v41 }
 0xc0e   : > { %2470 = vadd.xlane.f32.xlu1 %v2469_v34 }
 0xc1f   : > { %2666 = vrot.lane.b32.xlu1 %v7133_v15, %s7023_s11 }
 0xc22   : > { %2668 = vrot.lane.b32.xlu0 %v7156_v28, %s7023_s11  ;;  %s7034_s11 = smov 12  }
 0xc23   : > { %2652 = vrot.lane.b32.xlu1 %v7156_v28, %s7024_s12 }
 0xc26   : > { %2650 = vrot.lane.b32.xlu0 %v7133_v15, %s7024_s12 }
 0xc27   : > { %2656 = vrot.lane.b32.xlu1 %v7152_v27, %s7024_s12 }
 0xc2a   : > { %2654 = vrot.lane.b32.xlu0 %v7146_v25, %s7024_s12 }
 0xc2b   : > { %2660 = vrot.lane.b32.xlu1 %v7137_v19, %s7024_s12 }
 0xc2e   : > { %2658 = vrot.lane.b32.xlu0 %v7140_v22, %s7024_s12 }
 0xc2f   : > { %2664 = vrot.lane.b32.xlu1 %v7142_v23, %s7024_s12 }
 0xc32   : > { %2662 = vrot.lane.b32.xlu0 %v7148_v26, %s7024_s12  ;;  %s7035_s12 = smov 16  }
 0xc33   : > { %2938 = vrot.lane.b32.xlu1 %v7142_v23, %s7025_s15 }
 0xc36   : > { %2936 = vrot.lane.b32.xlu0 %v7148_v26, %s7025_s15 }
 0xc37   : > { %2934 = vrot.lane.b32.xlu1 %v7137_v19, %s7025_s15 }
 0xc3a   : > { %2930 = vrot.lane.b32.xlu0 %v7152_v27, %s7025_s15 }
 0xc3b   : > { %2932 = vrot.lane.b32.xlu1 %v7140_v22, %s7025_s15 }
 0xc3e   : > { %2926 = vrot.lane.b32.xlu0 %v7156_v28, %s7025_s15 }
 0xc3f   : > { %2928 = vrot.lane.b32.xlu1 %v7146_v25, %s7025_s15 }
 0xc42   : > { %3107 = vrot.lane.b32.xlu0 %v7142_v23, %s7026_s16 }
 0xc43   : > { %2924 = vrot.lane.b32.xlu1 %v7133_v15, %s7025_s15  ;;  %s7036_s15 = smov 20  }
 0xc47   : > { %3105 = vrot.lane.b32.xlu1 %v7148_v26, %s7026_s16 }
 0xc58   : > { %v2453_v18 = vpop.xlane.xlu0 %2452 }
 0xc59   : > { %6873 = vrcp.f32 %v2453_v18 }
 0xc5a   : > { %v2450_v20 = vpop.xlane.xlu1 %2449 }
 0xc5b   : > { %6875 = vrcp.f32 %v2450_v20 }
 0xc66   : > { %v6874_v50 = vpop.eup %6873 }
 0xc67   : > { %v2475_v4 = vmul.f32 %v6874_v50, %v7873_v58  ;;  %v2673_v58 = vpop.permute.xlu0 %2672 }
 0xc68   : > { %v6876_v31 = vpop.eup %6875 }
 0xc69   : > { %5778 = vst.msk [vmem:[%s7323_s20 + $0x108] sm:$0xff] %vm692_vm2, %v2475_v4  ;;  %v2473_v21 = vmul.f32 %v6876_v31, %v7877_v32  ;;  %v2671_v32 = vpop.permute.xlu1 %2670 }
 0xc6b   : > { %5777 = vst.msk [vmem:[%s7323_s20 + $0x100] sm:$0xff] %vm692_vm2, %v2473_v21  ;;  %6475 = vmatprep.mubr.msk.f32.mxu0 %vm692_vm2, %v2473_v21 }
 0xc6c   : > { %6476 = vmatmul.mubr.msk.f32.vlgmr.msra.gmra.mxu0 %vm692_vm2, %v2475_v4 }
 0xc6d   : > { %6488 = vmatpush3.xpose.msk.msra.mxu0 %vm9341_vm1, %v7839_v3 }
 0xc6e   : > { %6489 = vmatprep.subr.msk.mxu0 %vm9341_vm1, %v7871_v49 }
 0xc71   : > { %6490 = vmatpush3.xpose.msk.msra.mxu0 %vm9341_vm1, %v7871_v49 }
 0xc72   : > { %6491 = vmatprep.subr.msk.mxu0 %vm9341_vm1, %v2677_v6 }
 0xc75   : > { %6492 = vmatpush3.xpose.msk.msra.mxu0 %vm9341_vm1, %v2677_v6 }
 0xc76   : > { %6493 = vmatprep.subr.msk.mxu0 %vm9341_vm1, %v2675_v14 }
 0xc79   : > { %6494 = vmatpush3.xpose.msk.msra.mxu0 %vm9341_vm1, %v2675_v14 }
 0xc7a   : > { %6495 = vmatprep.subr.msk.mxu0 %vm9341_vm1, %v2673_v58 }
 0xc7d   : > { %6496 = vmatpush3.xpose.msk.msra.mxu0 %vm9341_vm1, %v2673_v58 }
 0xc7e   : > { %6497 = vmatprep.subr.msk.mxu0 %vm9341_vm1, %v2671_v32 }
 0xc81   : > { %6498 = vmatpush3.xpose.msk.msra.mxu0 %vm9341_vm1, %v2671_v32 }
 0xc8d   : > { %v2456_v3 = vpop.xlane.xlu0 %2455 }
 0xc8e   : > { %6877 = vrcp.f32 %v2456_v3 }
 0xc8f   : > { %v2459_v49 = vpop.xlane.xlu1 %2458 }
 0xc90   : > { %6879 = vrcp.f32 %v2459_v49 }
 0xc91   : > { %v2462_v13 = vpop.xlane.xlu0 %2461 }
 0xc92   : > { %6881 = vrcp.f32 %v2462_v13 }
 0xc93   : > { %v2465_v48 = vpop.xlane.xlu1 %2464 }
 0xc94   : > { %6883 = vrcp.f32 %v2465_v48 }
 0xc95   : > { %v2468_v30 = vpop.xlane.xlu0 %2467 }
 0xc96   : > { %6885 = vrcp.f32 %v2468_v30 }
 0xc97   : > { %v2471_v57 = vpop.xlane.xlu1 %2470 }
 0xc98   : > { %6887 = vrcp.f32 %v2471_v57 }
 0xc99   : > { %v2669_v9 = vpop.permute.xlu0 %2668 }
 0xc9a   : > { %6499 = vmatprep.subr.msk.mxu0 %vm9341_vm1, %v2669_v9 }
 0xc9b   : > { %v6878_v2 = vpop.eup %6877  ;;  %6500 = vmatpush3.xpose.msk.msra.mxu0 %vm9341_vm1, %v2669_v9  ;;  %v2667_v0 = vpop.permute.xlu1 %2666 }
 0xc9c   : > { %6501 = vmatprep.subr.msk.mxu0 %vm9341_vm1, %v2667_v0  ;;  %v2477_v55 = vmul.f32 %v6878_v2, %v7885_v24 }
 0xc9d   : > { %v6880_v41 = vpop.eup %6879  ;;  %v2651_v34 = vpop.permute.xlu0 %2650 }
 0xc9e   : > { %5779 = vst.msk [vmem:[%s7323_s20 + $0x110] sm:$0xff] %vm692_vm2, %v2477_v55  ;;  %6478 = vmatprep.mubr.msk.f32.mxu0 %vm692_vm2, %v2477_v55  ;;  %v2479_v6 = vmul.f32 %v6880_v41, %v7887_v1 }
 0xc9f   : > { %v6882_v14 = vpop.eup %6881  ;;  %6502 = vmatpush3.xpose.msk.msra.mxu0 %vm9341_vm1, %v2667_v0  ;;  %v2653_v18 = vpop.permute.xlu1 %2652 }
 0xca0   : > { %5780 = vst.msk [vmem:[%s7323_s20 + $0x118] sm:$0xff] %vm692_vm2, %v2479_v6  ;;  %6479 = vmatmul.mubr.msk.f32.gmra.mxu0 %vm692_vm2, %v2479_v6  ;;  %v2481_v24 = vmul.f32 %v6882_v14, %v7891_v7 }
 0xca1   : > { %v6884_v20 = vpop.eup %6883  ;;  %v2655_v50 = vpop.permute.xlu0 %2654 }
 0xca2   : > { %5781 = vst.msk [vmem:[%s7323_s20 + $0x120] sm:$0xff] %vm692_vm2, %v2481_v24  ;;  %6481 = vmatprep.mubr.msk.f32.mxu0 %vm692_vm2, %v2481_v24  ;;  %v2483_v1 = vmul.f32 %v6884_v20, %v7895_v63 }
 0xca3   : > { %v6886_v4 = vpop.eup %6885  ;;  %v2657_v31 = vpop.permute.xlu1 %2656 }
 0xca4   : > { %5782 = vst.msk [vmem:[%s7323_s20 + $0x128] sm:$0xff] %vm692_vm2, %v2483_v1  ;;  %6482 = vmatmul.mubr.msk.f32.gmra.mxu0 %vm692_vm2, %v2483_v1  ;;  %v2485_v21 = vmul.f32 %v6886_v4, %v7899_v29 }
 0xca5   : > { %v6888_v58 = vpop.eup %6887  ;;  %v2659_v32 = vpop.permute.xlu0 %2658 }
 0xca6   : > { %5783 = vst.msk [vmem:[%s7323_s20 + $0x130] sm:$0xff] %vm692_vm2, %v2485_v21  ;;  %6484 = vmatprep.mubr.msk.f32.mxu0 %vm692_vm2, %v2485_v21  ;;  %v2487_v7 = vmul.f32 %v6888_v58, %v7903_v12 }
 0xca7   : > { %v2661_v3 = vpop.permute.xlu1 %2660 }
 0xca8   : > { %5784 = vst.msk [vmem:[%s7323_s20 + $0x138] sm:$0xff] %vm692_vm2, %v2487_v7  ;;  %6485 = vmatmul.mubr.msk.f32.gmra.mxu0 %vm692_vm2, %v2487_v7 }
 0xca9   : > { %v2663_v63 = vpop.permute.xlu0 %2662  ;;  %6503 = vmatprep.mubr.msk.f32.mxu0 %vm9341_vm1, %v2651_v34 }
 0xcab   : > { %v2665_v49 = vpop.permute.xlu1 %2664 }
 0xcac   : > { %6504 = vmatmul.mubr.msk.f32.vlgmr.msra.gmra.mxu0 %vm9341_vm1, %v2653_v18 }
 0xcad   : > { %6506 = vmatprep.mubr.msk.f32.mxu0 %vm9341_vm1, %v2655_v50  ;;  %v2937_v29 = vpop.permute.xlu0 %2936 }
 0xcaf   : > { %v2939_v13 = vpop.permute.xlu1 %2938 }
 0xcb0   : > { %6507 = vmatmul.mubr.msk.f32.gmra.mxu0 %vm9341_vm1, %v2657_v31  ;;  %6515 = vmatprep.subr.mxu1 %v2939_v13 }
 0xcb1   : > { %6509 = vmatprep.mubr.msk.f32.mxu0 %vm9341_vm1, %v2659_v32  ;;  %6516 = vmatpush3.msra.mxu1 %v2939_v13  ;;  %v2931_v48 = vpop.permute.xlu0 %2930 }
 0xcb2   : > { %6517 = vmatprep.subr.mxu1 %v2937_v29 }
 0xcb3   : > { %6518 = vmatpush3.msra.mxu1 %v2937_v29  ;;  %v2935_v12 = vpop.permute.xlu1 %2934 }
 0xcb4   : > { %6510 = vmatmul.mubr.msk.f32.gmra.mxu0 %vm9341_vm1, %v2661_v3  ;;  %6519 = vmatprep.subr.mxu1 %v2935_v12 }
 0xcb5   : > { %6512 = vmatprep.mubr.msk.f32.mxu0 %vm9341_vm1, %v2663_v63  ;;  %6520 = vmatpush3.msra.mxu1 %v2935_v12  ;;  %v2927_v57 = vpop.permute.xlu0 %2926 }
 0xcb7   : > { %v2933_v30 = vpop.permute.xlu1 %2932 }
 0xcb8   : > { %6513 = vmatmul.mubr.msk.f32.gmra.mxu0 %vm9341_vm1, %v2665_v49  ;;  %6521 = vmatprep.subr.mxu1 %v2933_v30 }
 0xcb9   : > { %6522 = vmatpush3.msra.mxu1 %v2933_v30  ;;  %v7991_v0 = vpop.permute.xlu0 %3107 }
 0xcba   : > { %6523 = vmatprep.subr.mxu1 %v2931_v48 }
 0xcbb   : > { %6524 = vmatpush3.msra.mxu1 %v2931_v48  ;;  %v2929_v9 = vpop.permute.xlu1 %2928 }
 0xcbc   : > { %6525 = vmatprep.subr.mxu1 %v2929_v9 }
 0xcbd   : > { %6526 = vmatpush3.msra.mxu1 %v2929_v9 }
 0xcbe   : > { %6527 = vmatprep.subr.mxu1 %v2927_v57 }
 0xcbf   : > { %6528 = vmatpush3.msra.mxu1 %v2927_v57  ;;  %v2925_v2 = vpop.permute.xlu1 %2924 }
 0xcc0   : > { %6529 = vmatprep.subr.mxu1 %v2925_v2 }
 0xcc1   : > { %6530 = vmatpush3.msra.mxu1 %v2925_v2 }
 0xcc2   : > { %6543 = vmatprep.subr.msk.mxu1 %vm9341_vm1, %v7991_v0 }
 0xd2c   : > { %v7995_v55 = vpop.f32.mrf.mxu0 }
 0xd2d   : > { %9382 = vst [vmem:[#allocation34_spill] sm:$0xff] %v7995_v55 }
 0xd2e   : > { %v7997_v41 = vpop.f32.mrf.mxu0 }
 0xd2f   : > { %9383 = vst [vmem:[#allocation35_spill] sm:$0xff] %v7997_v41 }
 0xd60   : > { %v7999_v34 = vpop.f32.mrf.mxu0 }
 0xd61   : > { %9384 = vst [vmem:[#allocation36_spill] sm:$0xff] %v7999_v34 }
 0xd62   : > { %v8001_v6 = vpop.f32.mrf.mxu0 }
 0xd63   : > { %9385 = vst [vmem:[#allocation37_spill] sm:$0xff] %v8001_v6  ;;  %v4396_v6 = vrot.slane %v7232_v45, 7 }
 0xd64   : > { %v8003_v14 = vpop.f32.mrf.mxu0 }
 0xd65   : > { %9386 = vst [vmem:[#allocation38_spill] sm:$0xff] %v8003_v14 }
 0xd66   : > { %v8005_v18 = vpop.f32.mrf.mxu0 }
 0xd67   : > { %9387 = vst [vmem:[#allocation39_spill] sm:$0xff] %v8005_v18 }
 0xd68   : > { %v8007_v24 = vpop.f32.mrf.mxu0 }
 0xd69   : > { %9388 = vst [vmem:[#allocation40_spill] sm:$0xff] %v8007_v24 }
 0xd6a   : > { %v8009_v20 = vpop.f32.mrf.mxu0 }
 0xd6b   : > { %9389 = vst [vmem:[#allocation41_spill] sm:$0xff] %v8009_v20 }
 0xd6c   : > { %v6505_v50 = vpop.f32.mrf.mxu0 }
 0xd6d   : > { %v2820_v1 = vmul.f32 0.5, %v6505_v50 }
 0xd6e   : > { %v2780_v4 = vpop.f32.mrf.mxu0 }
 0xd6f   : > { %v2819_v31 = vmul.f32 0.5, %v2780_v4  ;;  %v2830_v21 = vsel %vm692_vm2, %v2820_v1, -inf }
 0xd70   : > { %2831 = vmax.xlane.f32.xlu1 %v2830_v21  ;;  %v6508_v58 = vpop.f32.mrf.mxu0 }
 0xd71   : > { %v2822_v32 = vmul.f32 0.5, %v6508_v58  ;;  %v2827_v7 = vsel %vm692_vm2, %v2819_v31, -inf }
 0xd72   : > { %2828 = vmax.xlane.f32.xlu0 %v2827_v7  ;;  %v2790_v3 = vpop.f32.mrf.mxu0 }
 0xd73   : > { %v2821_v49 = vmul.f32 0.5, %v2790_v3  ;;  %v2836_v29 = vsel %vm692_vm2, %v2822_v32, -inf  ;;  %v8023_v3 = vpop.permute.xlu1 %3105 }
 0xd74   : > { %v6511_v63 = vpop.f32.mrf.mxu0 }
 0xd75   : > { %v2824_v30 = vmul.f32 0.5, %v6511_v63  ;;  %v2833_v57 = vsel %vm692_vm2, %v2821_v49, -inf }
 0xd76   : > { %2837 = vmax.xlane.f32.xlu0 %v2836_v29  ;;  %v2800_v13 = vpop.f32.mrf.mxu0 }
 0xd77   : > { %v2823_v12 = vmul.f32 0.5, %v2800_v13  ;;  %v2842_v21 = vsel %vm692_vm2, %v2824_v30, -inf }
 0xd78   : > { %v6514_v48 = vpop.f32.mrf.mxu0 }
 0xd79   : > { %v2839_v9 = vsel %vm692_vm2, %v2823_v12, -inf  ;;  %v2826_v4 = vmul.f32 0.5, %v6514_v48 }
 0xd7a   : > { %2834 = vmax.xlane.f32.xlu0 %v2833_v57  ;;  %2840 = vmax.xlane.f32.xlu1 %v2839_v9  ;;  %v2810_v2 = vpop.f32.mrf.mxu0 }
 0xd7b   : > { %v2825_v50 = vmul.f32 0.5, %v2810_v2  ;;  %v2848_v7 = vsel %vm692_vm2, %v2826_v4, -inf }
 0xd7d   : > { %v2845_v58 = vsel %vm692_vm2, %v2825_v50, -inf }
 0xd7e   : > { %2843 = vmax.xlane.f32.xlu0 %v2842_v21  ;;  %2846 = vmax.xlane.f32.xlu1 %v2845_v58 }
 0xd82   : > { %2849 = vmax.xlane.f32.xlu0 %v2848_v7 }
 0xd8f   : > { %3101 = vrot.lane.b32.xlu1 %v7140_v22, %s7026_s16 }
 0xd98   : > { %3103 = vrot.lane.b32.xlu0 %v7137_v19, %s7026_s16 }
 0xdf9   : > { %v2832_v63 = vpop.xlane.xlu1 %2831 }
 0xdfa   : > { %v2852_v29 = vsub.f32 %v2820_v1, %v2832_v63 }
 0xdfb   : > { %v2829_v13 = vpop.xlane.xlu0 %2828 }
 0xdfc   : > { %v2861_v48 = vmul.f32 1.442695, %v2852_v29  ;;  %v2851_v57 = vsub.f32 %v2819_v31, %v2829_v13 }
 0xdfe   : > { %6889 = vpow2.f32 %v2861_v48  ;;  %v2859_v9 = vmul.f32 1.442695, %v2851_v57 }
 0xdff   : > { %v2838_v24 = vpop.xlane.xlu0 %2837 }
 0xe00   : > { %6891 = vpow2.f32 %v2859_v9  ;;  %v2854_v13 = vsub.f32 %v2822_v32, %v2838_v24 }
 0xe03   : > { %v2835_v1 = vpop.xlane.xlu0 %2834  ;;  %v2841_v31 = vpop.xlane.xlu1 %2840 }
 0xe04   : > { %v2853_v63 = vsub.f32 %v2821_v49, %v2835_v1  ;;  %v2855_v57 = vsub.f32 %v2823_v12, %v2841_v31 }
 0xe06   : > { %v2863_v48 = vmul.f32 1.442695, %v2853_v63 }
 0xe07   : > { %v2844_v29 = vpop.xlane.xlu0 %2843  ;;  %v2847_v9 = vpop.xlane.xlu1 %2846 }
 0xe08   : > { %v2856_v20 = vsub.f32 %v2824_v30, %v2844_v29  ;;  %6893 = vpow2.f32 %v2863_v48  ;;  %v2857_v8 = vsub.f32 %v2825_v50, %v2847_v9 }
 0xe0a   : > { %v2869_v14 = vmul.f32 1.442695, %v2856_v20  ;;  %v2871_v36 = vmul.f32 1.442695, %v2857_v8 }
 0xe0b   : > { %v8025_v2 = vpop.eup %6889  ;;  %v2850_v61 = vpop.xlane.xlu0 %2849 }
 0xe0c   : > { %v2878_v21 = vsel %vm692_vm2, %v8025_v2, 0.0  ;;  %v2858_v18 = vsub.f32 %v2826_v4, %v2850_v61  ;;  %v3102_v4 = vpop.permute.xlu1 %3101 }
 0xe0d   : > { %v8029_v58 = vpop.eup %6891  ;;  %2879 = vadd.xlane.f32.xlu0 %v2878_v21  ;;  %v2865_v21 = vmul.f32 1.442695, %v2854_v13 }
 0xe0e   : > { %v2875_v7 = vsel %vm692_vm2, %v8029_v58, 0.0  ;;  %v2873_v33 = vmul.f32 1.442695, %v2858_v18 }
 0xe0f   : > { %2876 = vadd.xlane.f32.xlu1 %v2875_v7  ;;  %v2867_v7 = vmul.f32 1.442695, %v2855_v57  ;;  %6895 = vpow2.f32 %v2865_v21  ;;  %v3104_v50 = vpop.permute.xlu0 %3103 }
 0xe11   : > { %6897 = vpow2.f32 %v2867_v7 }
 0xe12   : > { %6899 = vpow2.f32 %v2869_v14 }
 0xe13   : > { %6901 = vpow2.f32 %v2871_v36 }
 0xe14   : > { %6903 = vpow2.f32 %v2873_v33 }
 0xe15   : > { %v8037_v49 = vpop.eup %6893 }
 0xe16   : > { %v2881_v32 = vsel %vm692_vm2, %v8037_v49, 0.0 }
 0xe1c   : > { %v8039_v24 = vpop.eup %6895 }
 0xe1d   : > { %v2884_v20 = vsel %vm692_vm2, %v8039_v24, 0.0 }
 0xe1e   : > { %v8043_v12 = vpop.eup %6897 }
 0xe1f   : > { %v8047_v61 = vpop.eup %6899  ;;  %v2887_v8 = vsel %vm692_vm2, %v8043_v12, 0.0 }
 0xe20   : > { %3097 = vrot.lane.b32.xlu1 %v7146_v25, %s7026_s16  ;;  %v8051_v36 = vpop.eup %6901  ;;  %v2890_v33 = vsel %vm692_vm2, %v8047_v61, 0.0 }
 0xe21   : > { %v8055_v14 = vpop.eup %6903  ;;  %v2893_v18 = vsel %vm692_vm2, %v8051_v36, 0.0 }
 0xe22   : > { %v2896_v30 = vsel %vm692_vm2, %v8055_v14, 0.0 }
 0xe23   : > { %3099 = vrot.lane.b32.xlu0 %v7152_v27, %s7026_s16 }
 0xe42   : > { %2882 = vadd.xlane.f32.xlu0 %v2881_v32 }
 0xe44   : > { %2885 = vadd.xlane.f32.xlu1 %v2884_v20 }
 0xe46   : > { %2888 = vadd.xlane.f32.xlu0 %v2887_v8 }
 0xe48   : > { %2891 = vadd.xlane.f32.xlu1 %v2890_v33 }
 0xe4a   : > { %2894 = vadd.xlane.f32.xlu0 %v2893_v18 }
 0xe4c   : > { %2897 = vadd.xlane.f32.xlu1 %v2896_v30 }
 0xe5d   : > { %3093 = vrot.lane.b32.xlu1 %v7133_v15, %s7026_s16 }
 0xe60   : > { %3095 = vrot.lane.b32.xlu0 %v7156_v28, %s7026_s16  ;;  %s7037_s16 = smov 24  }
 0xe61   : > { %3079 = vrot.lane.b32.xlu1 %v7156_v28, %s7027_s17 }
 0xe64   : > { %3077 = vrot.lane.b32.xlu0 %v7133_v15, %s7027_s17 }
 0xe65   : > { %3083 = vrot.lane.b32.xlu1 %v7152_v27, %s7027_s17 }
 0xe68   : > { %3081 = vrot.lane.b32.xlu0 %v7146_v25, %s7027_s17 }
 0xe69   : > { %3087 = vrot.lane.b32.xlu1 %v7137_v19, %s7027_s17 }
 0xe6c   : > { %3085 = vrot.lane.b32.xlu0 %v7140_v22, %s7027_s17 }
 0xe6d   : > { %3091 = vrot.lane.b32.xlu1 %v7142_v23, %s7027_s17 }
 0xe70   : > { %3089 = vrot.lane.b32.xlu0 %v7148_v26, %s7027_s17  ;;  %s367_s17 = scalar_lea.vmem %s9339_s9, %s5904_s23 }
 0xe71   : > { %3365 = vrot.lane.b32.xlu1 %v7142_v23, %s7028_s18 }
 0xe74   : > { %3363 = vrot.lane.b32.xlu0 %v7148_v26, %s7028_s18 }
 0xe75   : > { %3361 = vrot.lane.b32.xlu1 %v7137_v19, %s7028_s18 }
 0xe78   : > { %3357 = vrot.lane.b32.xlu0 %v7152_v27, %s7028_s18 }
 0xe79   : > { %3359 = vrot.lane.b32.xlu1 %v7140_v22, %s7028_s18 }
 0xe7c   : > { %3353 = vrot.lane.b32.xlu0 %v7156_v28, %s7028_s18 }
 0xe7d   : > { %3355 = vrot.lane.b32.xlu1 %v7146_v25, %s7028_s18 }
 0xe80   : > { %3534 = vrot.lane.b32.xlu0 %v7142_v23, %s7029_s19 }
 0xe81   : > { %3351 = vrot.lane.b32.xlu1 %v7133_v15, %s7028_s18 }
 0xe85   : > { %3532 = vrot.lane.b32.xlu1 %v7148_v26, %s7029_s19 }
 0xe96   : > { %v2880_v1 = vpop.xlane.xlu0 %2879 }
 0xe97   : > { %6905 = vrcp.f32 %v2880_v1 }
 0xe98   : > { %v2877_v31 = vpop.xlane.xlu1 %2876 }
 0xe99   : > { %6907 = vrcp.f32 %v2877_v31 }
 0xea4   : > { %v6906_v63 = vpop.eup %6905 }
 0xea5   : > { %v2902_v29 = vmul.f32 %v6906_v63, %v8025_v2  ;;  %v3100_v2 = vpop.permute.xlu0 %3099 }
 0xea6   : > { %v6908_v13 = vpop.eup %6907 }
 0xea7   : > { %5810 = vst.msk [vmem:[%s7323_s20 + $0x148] sm:$0xff] %vm692_vm2, %v2902_v29  ;;  %v2900_v48 = vmul.f32 %v6908_v13, %v8029_v58  ;;  %v3098_v58 = vpop.permute.xlu1 %3097 }
 0xea9   : > { %5809 = vst.msk [vmem:[%s7323_s20 + $0x140] sm:$0xff] %vm692_vm2, %v2900_v48  ;;  %6531 = vmatprep.mubr.msk.f32.mxu1 %vm692_vm2, %v2900_v48 }
 0xeaa   : > { %6532 = vmatmul.mubr.msk.f32.vlgmr.msra.gmra.mxu1 %vm692_vm2, %v2902_v29 }
 0xeab   : > { %6544 = vmatpush3.xpose.msk.msra.mxu1 %vm9341_vm1, %v7991_v0 }
 0xeac   : > { %6545 = vmatprep.subr.msk.mxu1 %vm9341_vm1, %v8023_v3 }
 0xeaf   : > { %6546 = vmatpush3.xpose.msk.msra.mxu1 %vm9341_vm1, %v8023_v3 }
 0xeb0   : > { %6547 = vmatprep.subr.msk.mxu1 %vm9341_vm1, %v3104_v50 }
 0xeb3   : > { %6548 = vmatpush3.xpose.msk.msra.mxu1 %vm9341_vm1, %v3104_v50 }
 0xeb4   : > { %6549 = vmatprep.subr.msk.mxu1 %vm9341_vm1, %v3102_v4 }
 0xeb7   : > { %6550 = vmatpush3.xpose.msk.msra.mxu1 %vm9341_vm1, %v3102_v4 }
 0xeb8   : > { %6551 = vmatprep.subr.msk.mxu1 %vm9341_vm1, %v3100_v2 }
 0xebb   : > { %6552 = vmatpush3.xpose.msk.msra.mxu1 %vm9341_vm1, %v3100_v2 }
 0xebc   : > { %6553 = vmatprep.subr.msk.mxu1 %vm9341_vm1, %v3098_v58 }
 0xebf   : > { %6554 = vmatpush3.xpose.msk.msra.mxu1 %vm9341_vm1, %v3098_v58 }
 0xecb   : > { %v2883_v0 = vpop.xlane.xlu0 %2882 }
 0xecc   : > { %6909 = vrcp.f32 %v2883_v0 }
 0xecd   : > { %v2886_v3 = vpop.xlane.xlu1 %2885 }
 0xece   : > { %6911 = vrcp.f32 %v2886_v3 }
 0xecf   : > { %v2889_v57 = vpop.xlane.xlu0 %2888 }
 0xed0   : > { %6913 = vrcp.f32 %v2889_v57 }
 0xed1   : > { %v2892_v9 = vpop.xlane.xlu1 %2891 }
 0xed2   : > { %6915 = vrcp.f32 %v2892_v9 }
 0xed3   : > { %v2895_v21 = vpop.xlane.xlu0 %2894 }
 0xed4   : > { %6917 = vrcp.f32 %v2895_v21 }
 0xed5   : > { %v2898_v7 = vpop.xlane.xlu1 %2897 }
 0xed6   : > { %6919 = vrcp.f32 %v2898_v7 }
 0xed7   : > { %v3096_v32 = vpop.permute.xlu0 %3095 }
 0xed8   : > { %6555 = vmatprep.subr.msk.mxu1 %vm9341_vm1, %v3096_v32 }
 0xed9   : > { %v6910_v20 = vpop.eup %6909  ;;  %6556 = vmatpush3.xpose.msk.msra.mxu1 %vm9341_vm1, %v3096_v32  ;;  %v3094_v8 = vpop.permute.xlu1 %3093 }
 0xeda   : > { %6557 = vmatprep.subr.msk.mxu1 %vm9341_vm1, %v3094_v8  ;;  %v2904_v33 = vmul.f32 %v6910_v20, %v8037_v49 }
 0xedb   : > { %v6912_v18 = vpop.eup %6911  ;;  %v3078_v30 = vpop.permute.xlu0 %3077 }
 0xedc   : > { %5811 = vst.msk [vmem:[%s7323_s20 + $0x150] sm:$0xff] %vm692_vm2, %v2904_v33  ;;  %6534 = vmatprep.mubr.msk.f32.mxu1 %vm692_vm2, %v2904_v33  ;;  %v2906_v50 = vmul.f32 %v6912_v18, %v8039_v24 }
 0xedd   : > { %v6914_v4 = vpop.eup %6913  ;;  %6558 = vmatpush3.xpose.msk.msra.mxu1 %vm9341_vm1, %v3094_v8  ;;  %v3080_v1 = vpop.permute.xlu1 %3079 }
 0xede   : > { %5812 = vst.msk [vmem:[%s7323_s20 + $0x158] sm:$0xff] %vm692_vm2, %v2906_v50  ;;  %6535 = vmatmul.mubr.msk.f32.gmra.mxu1 %vm692_vm2, %v2906_v50  ;;  %v2908_v49 = vmul.f32 %v6914_v4, %v8043_v12 }
 0xedf   : > { %v6916_v31 = vpop.eup %6915  ;;  %v3082_v63 = vpop.permute.xlu0 %3081 }
 0xee0   : > { %5813 = vst.msk [vmem:[%s7323_s20 + $0x160] sm:$0xff] %vm692_vm2, %v2908_v49  ;;  %6537 = vmatprep.mubr.msk.f32.mxu1 %vm692_vm2, %v2908_v49  ;;  %v2910_v24 = vmul.f32 %v6916_v31, %v8047_v61 }
 0xee1   : > { %v6918_v29 = vpop.eup %6917  ;;  %v3084_v13 = vpop.permute.xlu1 %3083 }
 0xee2   : > { %5814 = vst.msk [vmem:[%s7323_s20 + $0x168] sm:$0xff] %vm692_vm2, %v2910_v24  ;;  %6538 = vmatmul.mubr.msk.f32.gmra.mxu1 %vm692_vm2, %v2910_v24  ;;  %v2912_v48 = vmul.f32 %v6918_v29, %v8051_v36 }
 0xee3   : > { %v6920_v2 = vpop.eup %6919  ;;  %v3086_v58 = vpop.permute.xlu0 %3085 }
 0xee4   : > { %5815 = vst.msk [vmem:[%s7323_s20 + $0x170] sm:$0xff] %vm692_vm2, %v2912_v48  ;;  %6540 = vmatprep.mubr.msk.f32.mxu1 %vm692_vm2, %v2912_v48  ;;  %v2914_v12 = vmul.f32 %v6920_v2, %v8055_v14 }
 0xee5   : > { %v3088_v0 = vpop.permute.xlu1 %3087 }
 0xee6   : > { %5816 = vst.msk [vmem:[%s7323_s20 + $0x178] sm:$0xff] %vm692_vm2, %v2914_v12  ;;  %6541 = vmatmul.mubr.msk.f32.gmra.mxu1 %vm692_vm2, %v2914_v12 }
 0xee7   : > { %v3090_v61 = vpop.permute.xlu0 %3089  ;;  %6559 = vmatprep.mubr.msk.f32.mxu1 %vm9341_vm1, %v3078_v30 }
 0xee9   : > { %v3092_v3 = vpop.permute.xlu1 %3091 }
 0xeea   : > { %6560 = vmatmul.mubr.msk.f32.vlgmr.msra.gmra.mxu1 %vm9341_vm1, %v3080_v1 }
 0xeeb   : > { %6562 = vmatprep.mubr.msk.f32.mxu1 %vm9341_vm1, %v3082_v63  ;;  %v3364_v36 = vpop.permute.xlu0 %3363 }
 0xeed   : > { %v3366_v57 = vpop.permute.xlu1 %3365 }
 0xeee   : > { %6563 = vmatmul.mubr.msk.f32.gmra.mxu1 %vm9341_vm1, %v3084_v13  ;;  %6571 = vmatprep.subr.mxu0 %v3366_v57 }
 0xeef   : > { %6565 = vmatprep.mubr.msk.f32.mxu1 %vm9341_vm1, %v3086_v58  ;;  %6572 = vmatpush3.msra.mxu0 %v3366_v57  ;;  %v3358_v9 = vpop.permute.xlu0 %3357 }
 0xef0   : > { %6573 = vmatprep.subr.mxu0 %v3364_v36 }
 0xef1   : > { %6574 = vmatpush3.msra.mxu0 %v3364_v36  ;;  %v3362_v14 = vpop.permute.xlu1 %3361 }
 0xef2   : > { %6566 = vmatmul.mubr.msk.f32.gmra.mxu1 %vm9341_vm1, %v3088_v0  ;;  %6575 = vmatprep.subr.mxu0 %v3362_v14 }
 0xef3   : > { %6568 = vmatprep.mubr.msk.f32.mxu1 %vm9341_vm1, %v3090_v61  ;;  %6576 = vmatpush3.msra.mxu0 %v3362_v14  ;;  %v3354_v7 = vpop.permute.xlu0 %3353 }
 0xef5   : > { %v3360_v21 = vpop.permute.xlu1 %3359 }
 0xef6   : > { %6569 = vmatmul.mubr.msk.f32.gmra.mxu1 %vm9341_vm1, %v3092_v3  ;;  %6577 = vmatprep.subr.mxu0 %v3360_v21 }
 0xef7   : > { %6578 = vmatpush3.msra.mxu0 %v3360_v21  ;;  %v8143_v8 = vpop.permute.xlu0 %3534 }
 0xef8   : > { %6579 = vmatprep.subr.mxu0 %v3358_v9 }
 0xef9   : > { %6580 = vmatpush3.msra.mxu0 %v3358_v9  ;;  %v3356_v32 = vpop.permute.xlu1 %3355 }
 0xefa   : > { %6581 = vmatprep.subr.mxu0 %v3356_v32 }
 0xefb   : > { %6582 = vmatpush3.msra.mxu0 %v3356_v32 }
 0xefc   : > { %6583 = vmatprep.subr.mxu0 %v3354_v7 }
 0xefd   : > { %6584 = vmatpush3.msra.mxu0 %v3354_v7  ;;  %v3352_v20 = vpop.permute.xlu1 %3351 }
 0xefe   : > { %6585 = vmatprep.subr.mxu0 %v3352_v20 }
 0xeff   : > { %6586 = vmatpush3.msra.mxu0 %v3352_v20 }
 0xf00   : > { %6599 = vmatprep.subr.msk.mxu0 %vm9341_vm1, %v8143_v8 }
 0xf6a   : > { %v8147_v33 = vpop.f32.mrf.mxu1 }
 0xf6b   : > { %9390 = vst [vmem:[#allocation42_spill] sm:$0xff] %v8147_v33 }
 0xf6c   : > { %v8149_v18 = vpop.f32.mrf.mxu1 }
 0xf6d   : > { %9391 = vst [vmem:[#allocation43_spill] sm:$0xff] %v8149_v18  ;;  %v4638_v18 = vrot.slane %v7196_v39, 1 }
 0xf9e   : > { %v8151_v30 = vpop.f32.mrf.mxu1 }
 0xf9f   : > { %9392 = vst [vmem:[#allocation44_spill] sm:$0xff] %v8151_v30 }
 0xfa0   : > { %v8153_v50 = vpop.f32.mrf.mxu1 }
 0xfa1   : > { %9393 = vst [vmem:[#allocation45_spill] sm:$0xff] %v8153_v50 }
 0xfa2   : > { %v8155_v4 = vpop.f32.mrf.mxu1 }
 0xfa3   : > { %9394 = vst [vmem:[#allocation46_spill] sm:$0xff] %v8155_v4 }
 0xfa4   : > { %v8157_v1 = vpop.f32.mrf.mxu1 }
 0xfa5   : > { %9395 = vst [vmem:[#allocation47_spill] sm:$0xff] %v8157_v1 }
 0xfa6   : > { %v8159_v49 = vpop.f32.mrf.mxu1 }
 0xfa7   : > { %9396 = vst [vmem:[#allocation48_spill] sm:$0xff] %v8159_v49 }
 0xfa8   : > { %v8161_v31 = vpop.f32.mrf.mxu1 }
 0xfa9   : > { %9397 = vst [vmem:[#allocation49_spill] sm:$0xff] %v8161_v31 }
 0xfaa   : > { %v6561_v63 = vpop.f32.mrf.mxu1 }
 0xfab   : > { %v3247_v24 = vmul.f32 0.5, %v6561_v63 }
 0xfac   : > { %v3207_v29 = vpop.f32.mrf.mxu1 }
 0xfad   : > { %v3246_v13 = vmul.f32 0.5, %v3207_v29  ;;  %v3257_v48 = vsel %vm692_vm2, %v3247_v24, -inf }
 0xfae   : > { %3258 = vmax.xlane.f32.xlu1 %v3257_v48  ;;  %v6564_v2 = vpop.f32.mrf.mxu1 }
 0xfaf   : > { %v3249_v58 = vmul.f32 0.5, %v6564_v2  ;;  %v3254_v12 = vsel %vm692_vm2, %v3246_v13, -inf }
 0xfb0   : > { %3255 = vmax.xlane.f32.xlu0 %v3254_v12  ;;  %v3217_v0 = vpop.f32.mrf.mxu1 }
 0xfb1   : > { %v3248_v3 = vmul.f32 0.5, %v3217_v0  ;;  %v3263_v36 = vsel %vm692_vm2, %v3249_v58, -inf  ;;  %v8175_v0 = vpop.permute.xlu1 %3532 }
 0xfb2   : > { %v6567_v61 = vpop.f32.mrf.mxu1 }
 0xfb3   : > { %v3251_v21 = vmul.f32 0.5, %v6567_v61  ;;  %v3260_v7 = vsel %vm692_vm2, %v3248_v3, -inf }
 0xfb4   : > { %3264 = vmax.xlane.f32.xlu0 %v3263_v36  ;;  %v3227_v57 = vpop.f32.mrf.mxu1 }
 0xfb5   : > { %v3250_v14 = vmul.f32 0.5, %v3227_v57  ;;  %v3269_v48 = vsel %vm692_vm2, %v3251_v21, -inf }
 0xfb6   : > { %v6570_v9 = vpop.f32.mrf.mxu1 }
 0xfb7   : > { %v3266_v32 = vsel %vm692_vm2, %v3250_v14, -inf  ;;  %v3253_v29 = vmul.f32 0.5, %v6570_v9 }
 0xfb8   : > { %3261 = vmax.xlane.f32.xlu0 %v3260_v7  ;;  %3267 = vmax.xlane.f32.xlu1 %v3266_v32  ;;  %v3237_v20 = vpop.f32.mrf.mxu1 }
 0xfb9   : > { %v3252_v63 = vmul.f32 0.5, %v3237_v20  ;;  %v3275_v12 = vsel %vm692_vm2, %v3253_v29, -inf }
 0xfbb   : > { %v3272_v2 = vsel %vm692_vm2, %v3252_v63, -inf }
 0xfbc   : > { %3270 = vmax.xlane.f32.xlu0 %v3269_v48  ;;  %3273 = vmax.xlane.f32.xlu1 %v3272_v2 }
 0xfc0   : > { %3276 = vmax.xlane.f32.xlu0 %v3275_v12 }
 0xfcd   : > { %3528 = vrot.lane.b32.xlu1 %v7140_v22, %s7029_s19 }
 0xfd6   : > { %3530 = vrot.lane.b32.xlu0 %v7137_v19, %s7029_s19 }
0x1037   : > { %v3259_v61 = vpop.xlane.xlu1 %3258 }
0x1038   : > { %v3279_v36 = vsub.f32 %v3247_v24, %v3259_v61 }
0x1039   : > { %v3256_v57 = vpop.xlane.xlu0 %3255 }
0x103a   : > { %v3288_v9 = vmul.f32 1.442695, %v3279_v36  ;;  %v3278_v7 = vsub.f32 %v3246_v13, %v3256_v57 }
0x103c   : > { %6921 = vpow2.f32 %v3288_v9  ;;  %v3286_v32 = vmul.f32 1.442695, %v3278_v7 }
0x103d   : > { %v3265_v49 = vpop.xlane.xlu0 %3264 }
0x103e   : > { %6923 = vpow2.f32 %v3286_v32  ;;  %v3281_v57 = vsub.f32 %v3249_v58, %v3265_v49 }
0x1041   : > { %v3262_v24 = vpop.xlane.xlu0 %3261  ;;  %v3268_v13 = vpop.xlane.xlu1 %3267 }
0x1042   : > { %v3280_v61 = vsub.f32 %v3248_v3, %v3262_v24  ;;  %v3282_v7 = vsub.f32 %v3250_v14, %v3268_v13 }
0x1044   : > { %v3290_v9 = vmul.f32 1.442695, %v3280_v61 }
0x1045   : > { %v3271_v36 = vpop.xlane.xlu0 %3270  ;;  %v3274_v32 = vpop.xlane.xlu1 %3273 }
0x1046   : > { %v3283_v31 = vsub.f32 %v3251_v21, %v3271_v36  ;;  %6925 = vpow2.f32 %v3290_v9  ;;  %v3284_v1 = vsub.f32 %v3252_v63, %v3274_v32 }
0x1048   : > { %v3296_v52 = vmul.f32 1.442695, %v3283_v31  ;;  %v3298_v30 = vmul.f32 1.442695, %v3284_v1 }
0x1049   : > { %v8177_v20 = vpop.eup %6921  ;;  %v3277_v4 = vpop.xlane.xlu0 %3276 }
0x104a   : > { %v3305_v48 = vsel %vm692_vm2, %v8177_v20, 0.0  ;;  %v3285_v17 = vsub.f32 %v3253_v29, %v3277_v4  ;;  %v3529_v29 = vpop.permute.xlu1 %3528 }
0x104b   : > { %v8181_v2 = vpop.eup %6923  ;;  %3306 = vadd.xlane.f32.xlu0 %v3305_v48  ;;  %v3292_v48 = vmul.f32 1.442695, %v3281_v57 }
0x104c   : > { %v3302_v12 = vsel %vm692_vm2, %v8181_v2, 0.0  ;;  %v3300_v50 = vmul.f32 1.442695, %v3285_v17 }
0x104d   : > { %3303 = vadd.xlane.f32.xlu1 %v3302_v12  ;;  %v3294_v12 = vmul.f32 1.442695, %v3282_v7  ;;  %6927 = vpow2.f32 %v3292_v48  ;;  %v3531_v63 = vpop.permute.xlu0 %3530 }
0x104f   : > { %6929 = vpow2.f32 %v3294_v12 }
0x1050   : > { %6931 = vpow2.f32 %v3296_v52 }
0x1051   : > { %6933 = vpow2.f32 %v3298_v30 }
0x1052   : > { %6935 = vpow2.f32 %v3300_v50 }
0x1053   : > { %v8189_v3 = vpop.eup %6925 }
0x1054   : > { %v3308_v58 = vsel %vm692_vm2, %v8189_v3, 0.0 }
0x105a   : > { %v8191_v49 = vpop.eup %6927 }
0x105b   : > { %v3311_v31 = vsel %vm692_vm2, %v8191_v49, 0.0 }
0x105c   : > { %v8195_v14 = vpop.eup %6929 }
0x105d   : > { %v8199_v4 = vpop.eup %6931  ;;  %v3314_v52 = vsel %vm692_vm2, %v8195_v14, 0.0 }
0x105e   : > { %3524 = vrot.lane.b32.xlu1 %v7146_v25, %s7029_s19  ;;  %v8203_v17 = vpop.eup %6933  ;;  %v3317_v30 = vsel %vm692_vm2, %v8199_v4, 0.0 }
0x105f   : > { %v8207_v50 = vpop.eup %6935  ;;  %v3320_v1 = vsel %vm692_vm2, %v8203_v17, 0.0 }
0x1060   : > { %v3323_v21 = vsel %vm692_vm2, %v8207_v50, 0.0 }
0x1061   : > { %3526 = vrot.lane.b32.xlu0 %v7152_v27, %s7029_s19 }
0x1080   : > { %3309 = vadd.xlane.f32.xlu0 %v3308_v58 }
0x1082   : > { %3312 = vadd.xlane.f32.xlu1 %v3311_v31 }
0x1084   : > { %3315 = vadd.xlane.f32.xlu0 %v3314_v52 }
0x1086   : > { %3318 = vadd.xlane.f32.xlu1 %v3317_v30 }
0x1088   : > { %3321 = vadd.xlane.f32.xlu0 %v3320_v1 }
0x108a   : > { %3324 = vadd.xlane.f32.xlu1 %v3323_v21 }
0x109b   : > { %3520 = vrot.lane.b32.xlu1 %v7133_v15, %s7029_s19 }
0x109e   : > { %3522 = vrot.lane.b32.xlu0 %v7156_v28, %s7029_s19 }
0x109f   : > { %3506 = vrot.lane.b32.xlu1 %v7156_v28, %s7030_s21 }
0x10a2   : > { %3504 = vrot.lane.b32.xlu0 %v7133_v15, %s7030_s21 }
0x10a3   : > { %3510 = vrot.lane.b32.xlu1 %v7152_v27, %s7030_s21 }
0x10a6   : > { %3508 = vrot.lane.b32.xlu0 %v7146_v25, %s7030_s21 }
0x10a7   : > { %3514 = vrot.lane.b32.xlu1 %v7137_v19, %s7030_s21 }
0x10aa   : > { %3512 = vrot.lane.b32.xlu0 %v7140_v22, %s7030_s21 }
0x10ab   : > { %3518 = vrot.lane.b32.xlu1 %v7142_v23, %s7030_s21 }
0x10ae   : > { %3516 = vrot.lane.b32.xlu0 %v7148_v26, %s7030_s21 }
0x10d4   : > { %v3307_v24 = vpop.xlane.xlu0 %3306 }
0x10d5   : > { %6937 = vrcp.f32 %v3307_v24 }
0x10d6   : > { %v3304_v13 = vpop.xlane.xlu1 %3303 }
0x10d7   : > { %6939 = vrcp.f32 %v3304_v13 }
0x10e2   : > { %v6938_v61 = vpop.eup %6937 }
0x10e3   : > { %v3329_v36 = vmul.f32 %v6938_v61, %v8177_v20  ;;  %v3527_v20 = vpop.permute.xlu0 %3526 }
0x10e4   : > { %v6940_v57 = vpop.eup %6939 }
0x10e5   : > { %5842 = vst.msk [vmem:[%s7323_s20 + $0x188] sm:$0xff] %vm692_vm2, %v3329_v36  ;;  %v3327_v9 = vmul.f32 %v6940_v57, %v8181_v2  ;;  %v3525_v2 = vpop.permute.xlu1 %3524 }
0x10e7   : > { %5841 = vst.msk [vmem:[%s7323_s20 + $0x180] sm:$0xff] %vm692_vm2, %v3327_v9  ;;  %6587 = vmatprep.mubr.msk.f32.mxu0 %vm692_vm2, %v3327_v9 }
0x10e8   : > { %6588 = vmatmul.mubr.msk.f32.vlgmr.msra.gmra.mxu0 %vm692_vm2, %v3329_v36 }
0x10e9   : > { %6600 = vmatpush3.xpose.msk.msra.mxu0 %vm9341_vm1, %v8143_v8 }
0x10ea   : > { %6601 = vmatprep.subr.msk.mxu0 %vm9341_vm1, %v8175_v0 }
0x10ed   : > { %6602 = vmatpush3.xpose.msk.msra.mxu0 %vm9341_vm1, %v8175_v0 }
0x10ee   : > { %6603 = vmatprep.subr.msk.mxu0 %vm9341_vm1, %v3531_v63 }
0x10f1   : > { %6604 = vmatpush3.xpose.msk.msra.mxu0 %vm9341_vm1, %v3531_v63 }
0x10f2   : > { %6605 = vmatprep.subr.msk.mxu0 %vm9341_vm1, %v3529_v29 }
0x10f5   : > { %6606 = vmatpush3.xpose.msk.msra.mxu0 %vm9341_vm1, %v3529_v29 }
0x10f6   : > { %6607 = vmatprep.subr.msk.mxu0 %vm9341_vm1, %v3527_v20 }
0x10f9   : > { %6608 = vmatpush3.xpose.msk.msra.mxu0 %vm9341_vm1, %v3527_v20 }
0x10fa   : > { %6609 = vmatprep.subr.msk.mxu0 %vm9341_vm1, %v3525_v2 }
0x10fd   : > { %6610 = vmatpush3.xpose.msk.msra.mxu0 %vm9341_vm1, %v3525_v2 }
0x1109   : > { %v3310_v8 = vpop.xlane.xlu0 %3309 }
0x110a   : > { %6941 = vrcp.f32 %v3310_v8 }
0x110b   : > { %v3313_v0 = vpop.xlane.xlu1 %3312 }
0x110c   : > { %6943 = vrcp.f32 %v3313_v0 }
0x110d   : > { %v3316_v7 = vpop.xlane.xlu0 %3315 }
0x110e   : > { %6945 = vrcp.f32 %v3316_v7 }
0x110f   : > { %v3319_v32 = vpop.xlane.xlu1 %3318 }
0x1110   : > { %6947 = vrcp.f32 %v3319_v32 }
0x1111   : > { %v3322_v48 = vpop.xlane.xlu0 %3321 }
0x1112   : > { %6949 = vrcp.f32 %v3322_v48 }
0x1113   : > { %v3325_v12 = vpop.xlane.xlu1 %3324 }
0x1114   : > { %6951 = vrcp.f32 %v3325_v12 }
0x1115   : > { %v3523_v58 = vpop.permute.xlu0 %3522 }
0x1116   : > { %6611 = vmatprep.subr.msk.mxu0 %vm9341_vm1, %v3523_v58 }
0x1117   : > { %v6942_v31 = vpop.eup %6941  ;;  %6612 = vmatpush3.xpose.msk.msra.mxu0 %vm9341_vm1, %v3523_v58  ;;  %v3521_v52 = vpop.permute.xlu1 %3520 }
0x1118   : > { %6613 = vmatprep.subr.msk.mxu0 %vm9341_vm1, %v3521_v52  ;;  %v3331_v30 = vmul.f32 %v6942_v31, %v8189_v3 }
0x1119   : > { %v6944_v1 = vpop.eup %6943  ;;  %v3505_v24 = vpop.permute.xlu0 %3504 }
0x111a   : > { %5843 = vst.msk [vmem:[%s7323_s20 + $0x190] sm:$0xff] %vm692_vm2, %v3331_v30  ;;  %6590 = vmatprep.mubr.msk.f32.mxu0 %vm692_vm2, %v3331_v30  ;;  %v3333_v21 = vmul.f32 %v6944_v1, %v8191_v49 }
0x111b   : > { %v6946_v63 = vpop.eup %6945  ;;  %6614 = vmatpush3.xpose.msk.msra.mxu0 %vm9341_vm1, %v3521_v52  ;;  %v3507_v57 = vpop.permute.xlu1 %3506 }
0x111c   : > { %5844 = vst.msk [vmem:[%s7323_s20 + $0x198] sm:$0xff] %vm692_vm2, %v3333_v21  ;;  %6591 = vmatmul.mubr.msk.f32.gmra.mxu0 %vm692_vm2, %v3333_v21  ;;  %v3335_v29 = vmul.f32 %v6946_v63, %v8195_v14 }
0x111d   : > { %v6948_v3 = vpop.eup %6947  ;;  %v3509_v9 = vpop.permute.xlu0 %3508 }
0x111e   : > { %5845 = vst.msk [vmem:[%s7323_s20 + $0x1a0] sm:$0xff] %vm692_vm2, %v3335_v29  ;;  %6593 = vmatprep.mubr.msk.f32.mxu0 %vm692_vm2, %v3335_v29  ;;  %v3337_v13 = vmul.f32 %v6948_v3, %v8199_v4 }
0x111f   : > { %v6950_v49 = vpop.eup %6949  ;;  %v3511_v4 = vpop.permute.xlu1 %3510 }
0x1120   : > { %5846 = vst.msk [vmem:[%s7323_s20 + $0x1a8] sm:$0xff] %vm692_vm2, %v3337_v13  ;;  %6594 = vmatmul.mubr.msk.f32.gmra.mxu0 %vm692_vm2, %v3337_v13  ;;  %v3339_v61 = vmul.f32 %v6950_v49, %v8203_v17 }
0x1121   : > { %v6952_v36 = vpop.eup %6951  ;;  %v3513_v17 = vpop.permute.xlu0 %3512 }
0x1122   : > { %5847 = vst.msk [vmem:[%s7323_s20 + $0x1b0] sm:$0xff] %vm692_vm2, %v3339_v61  ;;  %6596 = vmatprep.mubr.msk.f32.mxu0 %vm692_vm2, %v3339_v61  ;;  %v3341_v14 = vmul.f32 %v6952_v36, %v8207_v50 }
0x1123   : > { %v3515_v20 = vpop.permute.xlu1 %3514 }
0x1124   : > { %5848 = vst.msk [vmem:[%s7323_s20 + $0x1b8] sm:$0xff] %vm692_vm2, %v3341_v14  ;;  %6597 = vmatmul.mubr.msk.f32.gmra.mxu0 %vm692_vm2, %v3341_v14 }
0x1125   : > { %6615 = vmatprep.mubr.msk.f32.mxu0 %vm9341_vm1, %v3505_v24  ;;  %v3517_v2 = vpop.permute.xlu0 %3516 }
0x1127   : > { %v3519_v50 = vpop.permute.xlu1 %3518 }
0x1128   : > { %6616 = vmatmul.mubr.msk.f32.vlgmr.msra.gmra.mxu0 %vm9341_vm1, %v3507_v57 }
0x1129   : > { %6618 = vmatprep.mubr.msk.f32.mxu0 %vm9341_vm1, %v3509_v9 }
0x112c   : > { %6619 = vmatmul.mubr.msk.f32.gmra.mxu0 %vm9341_vm1, %v3511_v4 }
0x112d   : > { %6621 = vmatprep.mubr.msk.f32.mxu0 %vm9341_vm1, %v3513_v17 }
0x1130   : > { %6622 = vmatmul.mubr.msk.f32.gmra.mxu0 %vm9341_vm1, %v3515_v20 }
0x1131   : > { %6624 = vmatprep.mubr.msk.f32.mxu0 %vm9341_vm1, %v3517_v2 }
0x1134   : > { %6625 = vmatmul.mubr.msk.f32.gmra.mxu0 %vm9341_vm1, %v3519_v50 }
0x11a8   : > { %v8283_v8 = vpop.f32.mrf.mxu0 }
0x11a9   : > { %9398 = vst [vmem:[#allocation50_spill] sm:$0xff] %v8283_v8 }
0x11aa   : > { %v8285_v0 = vpop.f32.mrf.mxu0 }
0x11ab   : > { %9399 = vst [vmem:[#allocation51_spill] sm:$0xff] %v8285_v0  ;;  %v4637_v0 = vrot.slane %v7232_v45, 1 }
0x11dc   : > { %v8287_v7 = vpop.f32.mrf.mxu0 }
0x11dd   : > { %9400 = vst [vmem:[#allocation52_spill] sm:$0xff] %v8287_v7 }
0x11de   : > { %v8289_v32 = vpop.f32.mrf.mxu0 }
0x11df   : > { %9401 = vst [vmem:[#allocation53_spill] sm:$0xff] %v8289_v32 }
0x11e0   : > { %v8291_v48 = vpop.f32.mrf.mxu0 }
0x11e1   : > { %9402 = vst [vmem:[#allocation54_spill] sm:$0xff] %v8291_v48 }
0x11e2   : > { %v8293_v12 = vpop.f32.mrf.mxu0 }
0x11e3   : > { %9403 = vst [vmem:[#allocation55_spill] sm:$0xff] %v8293_v12 }
0x11e4   : > { %v8295_v58 = vpop.f32.mrf.mxu0 }
0x11e5   : > { %9404 = vst [vmem:[#allocation56_spill] sm:$0xff] %v8295_v58 }
0x11e6   : > { %v8297_v31 = vpop.f32.mrf.mxu0 }
0x11e7   : > { %9405 = vst [vmem:[#allocation57_spill] sm:$0xff] %v8297_v31 }
0x11e8   : > { %v6617_v52 = vpop.f32.mrf.mxu0 }
0x11e9   : > { %v3674_v30 = vmul.f32 0.5, %v6617_v52 }
0x11ea   : > { %v3634_v1 = vpop.f32.mrf.mxu0 }
0x11eb   : > { %v3673_v21 = vmul.f32 0.5, %v3634_v1  ;;  %v3684_v63 = vsel %vm692_vm2, %v3674_v30, -inf }
0x11ec   : > { %3685 = vmax.xlane.f32.xlu1 %v3684_v63  ;;  %v6620_v29 = vpop.f32.mrf.mxu0 }
0x11ed   : > { %v3681_v3 = vsel %vm692_vm2, %v3673_v21, -inf  ;;  %v3676_v61 = vmul.f32 0.5, %v6620_v29 }
0x11ee   : > { %3682 = vmax.xlane.f32.xlu0 %v3681_v3  ;;  %v3644_v24 = vpop.f32.mrf.mxu0 }
0x11ef   : > { %v3675_v13 = vmul.f32 0.5, %v3644_v24  ;;  %v3690_v4 = vsel %vm692_vm2, %v3676_v61, -inf }
0x11f0   : > { %v6623_v49 = vpop.f32.mrf.mxu0 }
0x11f1   : > { %v3687_v36 = vsel %vm692_vm2, %v3675_v13, -inf  ;;  %v3678_v9 = vmul.f32 0.5, %v6623_v49 }
0x11f2   : > { %3688 = vmax.xlane.f32.xlu0 %v3687_v36  ;;  %v3654_v57 = vpop.f32.mrf.mxu0 }
0x11f3   : > { %v3677_v14 = vmul.f32 0.5, %v3654_v57  ;;  %v3696_v50 = vsel %vm692_vm2, %v3678_v9, -inf }
0x11f4   : > { %v6626_v20 = vpop.f32.mrf.mxu0 }
0x11f5   : > { %v3693_v17 = vsel %vm692_vm2, %v3677_v14, -inf  ;;  %v3680_v2 = vmul.f32 0.5, %v6626_v20 }
0x11f6   : > { %3691 = vmax.xlane.f32.xlu0 %v3690_v4  ;;  %3694 = vmax.xlane.f32.xlu1 %v3693_v17  ;;  %v3664_v1 = vpop.f32.mrf.mxu0 }
0x11f7   : > { %v3702_v52 = vsel %vm692_vm2, %v3680_v2, -inf  ;;  %v8316_v63 = vmul.f32 0.5, %v3664_v1 }
0x11f9   : > { %v3699_v29 = vsel %vm692_vm2, %v8316_v63, -inf }
0x11fa   : > { %3697 = vmax.xlane.f32.xlu0 %v3696_v50 }
0x11fe   : > { %3703 = vmax.xlane.f32.xlu0 %v3702_v52 }
0x1207   : > { %3792 = vrot.lane.b32.xlu1 %v7142_v23, %s7031_s22 }
0x120b   : > { %3788 = vrot.lane.b32.xlu1 %v7137_v19, %s7031_s22 }
0x1214   : > { %3790 = vrot.lane.b32.xlu0 %v7148_v26, %s7031_s22 }
0x1218   : > { %3784 = vrot.lane.b32.xlu0 %v7152_v27, %s7031_s22 }
0x121c   : > { %3780 = vrot.lane.b32.xlu0 %v7156_v28, %s7031_s22 }
0x122f   : > { %3700 = vmax.xlane.f32.xlu1 %v3699_v29 }
0x1240   : > { %3786 = vrot.lane.b32.xlu1 %v7140_v22, %s7031_s22 }
0x1244   : > { %3782 = vrot.lane.b32.xlu1 %v7146_v25, %s7031_s22 }
0x1275   : > { %v3686_v3 = vpop.xlane.xlu1 %3685 }
0x1276   : > { %v3706_v24 = vsub.f32 %v3674_v30, %v3686_v3 }
0x1277   : > { %v3683_v49 = vpop.xlane.xlu0 %3682 }
0x1278   : > { %v3715_v36 = vmul.f32 1.442695, %v3706_v24  ;;  %v3705_v57 = vsub.f32 %v3673_v21, %v3683_v49 }
0x127a   : > { %6953 = vpow2.f32 %v3715_v36  ;;  %v3713_v4 = vmul.f32 1.442695, %v3705_v57 }
0x127b   : > { %v3689_v17 = vpop.xlane.xlu0 %3688 }
0x127c   : > { %6955 = vpow2.f32 %v3713_v4  ;;  %v3707_v20 = vsub.f32 %v3675_v13, %v3689_v17 }
0x127e   : > { %v3717_v50 = vmul.f32 1.442695, %v3707_v20 }
0x127f   : > { %v3692_v52 = vpop.xlane.xlu0 %3691  ;;  %v3695_v1 = vpop.xlane.xlu1 %3694 }
0x1280   : > { %6957 = vpow2.f32 %v3717_v50  ;;  %v3708_v29 = vsub.f32 %v3676_v61, %v3692_v52  ;;  %v3709_v58 = vsub.f32 %v3677_v14, %v3695_v1  ;;  %v4219_v52 = vlaneseq }
0x1282   : > { %v3719_v31 = vmul.f32 1.442695, %v3708_v29  ;;  %v3721_v48 = vmul.f32 1.442695, %v3709_v58  ;;  %v8352_v1 = vshrl.u32 %v4219_v52, 7 }
0x1283   : > { %v3698_v12 = vpop.xlane.xlu0 %3697  ;;  %v3793_v7 = vpop.permute.xlu1 %3792 }
0x1284   : > { %6959 = vpow2.f32 %v3719_v31  ;;  %v3710_v30 = vsub.f32 %v3678_v9, %v3698_v12  ;;  %6627 = vmatprep.subr.mxu0 %v3793_v7  ;;  %6675 = vmatprep.subr.mxu1 %v3793_v7  ;;  %v4840_v29 = vsub.s32 4, %v8352_v1  ;;  %vm4404_vm3 = vcmp.lt.s32.totalorder %v8352_v1, 1 }
0x1285   : > { %6961 = vpow2.f32 %v3721_v48  ;;  %6628 = vmatpush3.msra.mxu0 %v3793_v7  ;;  %6683 = vmatpush3.msra.mxu1 %v3793_v7  ;;  %vm4645_vm5 = vcmp.lt.s32.totalorder %v8352_v1, 7  ;;  %v8563_v62 = vsel %vm4404_vm3, %v4397_v51, %v4398_v16 }
0x1286   : > { %v3723_v21 = vmul.f32 1.442695, %v3710_v30  ;;  %v8358_v30 = vld [vmem:[%s9333_s3] sm:$0xff]  ;;  %v8597_v59 = vsel %vm4645_vm5, %v4638_v18, %v4639_v53 }
0x1287   : > { %v8324_v3 = vpop.eup %6953  ;;  %v3704_v13 = vpop.xlane.xlu0 %3703 }
0x1288   : > { %6963 = vpow2.f32 %v3723_v21  ;;  %v3712_v24 = vsub.f32 %v3680_v2, %v3704_v13  ;;  %v3732_v61 = vsel %vm692_vm2, %v8324_v3, 0.0  ;;  %v3789_v48 = vpop.permute.xlu1 %3788  ;;  %v4841_v21 = vrot.slane %v8358_v30, %v4840_v29 }
0x1289   : > { %v8328_v14 = vpop.eup %6955  ;;  %3733 = vadd.xlane.f32.xlu0 %v3732_v61 }
0x128a   : > { %v3727_v58 = vmul.f32 1.442695, %v3712_v24  ;;  %v3729_v12 = vsel %vm692_vm2, %v8328_v14, 0.0 }
0x128b   : > { %v3791_v31 = vpop.permute.xlu0 %3790  ;;  %3730 = vadd.xlane.f32.xlu1 %v3729_v12 }
0x128c   : > { %6965 = vpow2.f32 %v3727_v58  ;;  %6629 = vmatprep.subr.mxu0 %v3791_v31  ;;  %6676 = vmatprep.subr.mxu1 %v3791_v31 }
0x128d   : > { %v8332_v7 = vpop.eup %6957  ;;  %6630 = vmatpush3.msra.mxu0 %v3791_v31  ;;  %6684 = vmatpush3.msra.mxu1 %v3791_v31 }
0x128e   : > { %6631 = vmatprep.subr.mxu0 %v3789_v48  ;;  %6677 = vmatprep.subr.mxu1 %v3789_v48  ;;  %v3735_v9 = vsel %vm692_vm2, %v8332_v7, 0.0 }
0x128f   : > { %3736 = vadd.xlane.f32.xlu1 %v3735_v9  ;;  %6632 = vmatpush3.msra.mxu0 %v3789_v48  ;;  %v3785_v58 = vpop.permute.xlu0 %3784 }
0x1290   : > { %6685 = vmatpush3.msra.mxu1 %v3789_v48 }
0x1291   : > { %v8336_v2 = vpop.eup %6959 }
0x1292   : > { %v8338_v49 = vpop.eup %6961  ;;  %v3738_v36 = vsel %vm692_vm2, %v8336_v2, 0.0 }
0x1293   : > { %3739 = vadd.xlane.f32.xlu0 %v3738_v36  ;;  %v3741_v57 = vsel %vm692_vm2, %v8338_v49, 0.0  ;;  %v3781_v48 = vpop.permute.xlu0 %3780 }
0x1294   : > { %3742 = vadd.xlane.f32.xlu1 %v3741_v57 }
0x1295   : > { %v8344_v4 = vpop.eup %6963 }
0x1296   : > { %v3744_v17 = vsel %vm692_vm2, %v8344_v4, 0.0 }
0x1297   : > { %3745 = vadd.xlane.f32.xlu0 %v3744_v17 }
0x1299   : > { %v8348_v20 = vpop.eup %6965 }
0x129a   : > { %v3750_v50 = vsel %vm692_vm2, %v8348_v20, 0.0 }
0x129b   : > { %3751 = vadd.xlane.f32.xlu0 %v3750_v50 }
0x12b1   : > { %4843 = vrot.lane.b32.xlu0 %v4841_v21, %s7010_s30 }
0x12b8   : > { %v3701_v13 = vpop.xlane.xlu1 %3700 }
0x12b9   : > { %v3711_v24 = vsub.f32 %v8316_v63, %v3701_v13 }
0x12bb   : > { %v3725_v61 = vmul.f32 1.442695, %v3711_v24 }
0x12bc   : > { %v3787_v12 = vpop.permute.xlu1 %3786 }
0x12bd   : > { %6967 = vpow2.f32 %v3725_v61  ;;  %6633 = vmatprep.subr.mxu0 %v3787_v12  ;;  %6678 = vmatprep.subr.mxu1 %v3787_v12 }
0x12be   : > { %6634 = vmatpush3.msra.mxu0 %v3787_v12  ;;  %6686 = vmatpush3.msra.mxu1 %v3787_v12 }
0x12bf   : > { %6635 = vmatprep.subr.mxu0 %v3785_v58  ;;  %6679 = vmatprep.subr.mxu1 %v3785_v58 }
0x12c0   : > { %6636 = vmatpush3.msra.mxu0 %v3785_v58  ;;  %6687 = vmatpush3.msra.mxu1 %v3785_v58  ;;  %v3783_v31 = vpop.permute.xlu1 %3782 }
0x12c1   : > { %6637 = vmatprep.subr.mxu0 %v3783_v31  ;;  %6680 = vmatprep.subr.mxu1 %v3783_v31 }
0x12c2   : > { %6638 = vmatpush3.msra.mxu0 %v3783_v31  ;;  %6688 = vmatpush3.msra.mxu1 %v3783_v31 }
0x12c3   : > { %6639 = vmatprep.subr.mxu0 %v3781_v48  ;;  %6681 = vmatprep.subr.mxu1 %v3781_v48 }
0x12c4   : > { %6640 = vmatpush3.msra.mxu0 %v3781_v48  ;;  %6689 = vmatpush3.msra.mxu1 %v3781_v48 }
0x12ca   : > { %v8363_v63 = vpop.eup %6967 }
0x12cb   : > { %v3747_v9 = vsel %vm692_vm2, %v8363_v63, 0.0 }
0x12cc   : > { %3748 = vadd.xlane.f32.xlu1 %v3747_v9 }
0x12dd   : > { %3778 = vrot.lane.b32.xlu1 %v7133_v15, %s7031_s22 }
0x1312   : > { %v3734_v36 = vpop.xlane.xlu0 %3733 }
0x1313   : > { %6969 = vrcp.f32 %v3734_v36 }
0x1314   : > { %v3731_v57 = vpop.xlane.xlu1 %3730 }
0x1315   : > { %6971 = vrcp.f32 %v3731_v57 }
0x1318   : > { %v3737_v17 = vpop.xlane.xlu1 %3736 }
0x1319   : > { %6973 = vrcp.f32 %v3737_v17 }
0x131c   : > { %v3740_v50 = vpop.xlane.xlu0 %3739 }
0x131d   : > { %6975 = vrcp.f32 %v3740_v50  ;;  %v3743_v52 = vpop.xlane.xlu1 %3742 }
0x131e   : > { %6977 = vrcp.f32 %v3743_v52 }
0x1320   : > { %v6970_v29 = vpop.eup %6969  ;;  %v3746_v21 = vpop.xlane.xlu0 %3745 }
0x1321   : > { %v3756_v13 = vmul.f32 %v6970_v29, %v8324_v3  ;;  %6979 = vrcp.f32 %v3746_v21  ;;  %v4547_v21 = vsub.s32 1, %v8352_v1 }
0x1322   : > { %v6972_v24 = vpop.eup %6971 }
0x1323   : > { %5874 = vst.msk [vmem:[%s7323_s20 + $0x1c8] sm:$0xff] %vm692_vm2, %v3756_v13  ;;  %v3754_v61 = vmul.f32 %v6972_v24, %v8328_v14  ;;  %v4439_v24 = vsub.s32 0, %v8352_v1 }
0x1324   : > { %v3752_v58 = vpop.xlane.xlu0 %3751 }
0x1325   : > { %6981 = vrcp.f32 %v3752_v58  ;;  %5873 = vst.msk [vmem:[%s7323_s20 + $0x1c0] sm:$0xff] %vm692_vm2, %v3754_v61  ;;  %6643 = vmatprep.mubr.msk.f32.mxu0 %vm692_vm2, %v3754_v61  ;;  %v4680_v61 = vsub.s32 2, %v8352_v1  ;;  %v4764_v58 = vsub.s32 3, %v8352_v1 }
0x1326   : > { %v6974_v12 = vpop.eup %6973 }
0x1327   : > { %v3758_v31 = vmul.f32 %v6974_v12, %v8332_v7 }
0x1328   : > { %v4844_v48 = vpop.permute.xlu0 %4843 }
0x1329   : > { %5875 = vst.msk [vmem:[%s7323_s20 + $0x1d0] sm:$0xff] %vm692_vm2, %v3758_v31  ;;  %6646 = vmatprep.mubr.msk.f32.mxu1 %vm692_vm2, %v3758_v31  ;;  %v4847_v3 = vmul.f32 %v4844_v48, %v7156_v28  ;;  %v4846_v14 = vmul.f32 %v4844_v48, %v7133_v15  ;;  %v4849_v17 = vmul.f32 %v4844_v48, %v7152_v27  ;;  %v4960_v31 = vsub.s32 5, %v8352_v1 }
0x132a   : > { %v6976_v9 = vpop.eup %6975  ;;  %v4848_v28 = vmul.f32 %v4844_v48, %v7146_v25  ;;  %v4853_v27 = vmul.f32 %v4844_v48, %v7142_v23  ;;  %v4852_v29 = vmul.f32 %v4844_v48, %v7148_v26 }
0x132b   : > { %v6978_v36 = vpop.eup %6977  ;;  %v3760_v57 = vmul.f32 %v6976_v9, %v8336_v2  ;;  %4864 = vrot.lane.b32.xlu0 %v4847_v3, %s7010_s30  ;;  %4862 = vrot.lane.b32.xlu1 %v4846_v14, %s7010_s30  ;;  %v4851_v2 = vmul.f32 %v4844_v48, %v7137_v19  ;;  %v8428_v14 = vrot.slane %v8358_v30, %v4547_v21 }
0x132c   : > { %v3762_v7 = vmul.f32 %v6978_v36, %v8338_v49  ;;  %v4850_v49 = vmul.f32 %v4844_v48, %v7140_v22  ;;  %v5044_v48 = vsub.s32 6, %v8352_v1  ;;  %v4222_v36 = vadd.s32 16, %v8352_v1 }
0x132d   : > { %5876 = vst.msk [vmem:[%s7323_s20 + $0x1d8] sm:$0xff] %vm692_vm2, %v3760_v57  ;;  %v4549_v21 = vmul.f32 0.0, %v8428_v14  ;;  %v4551_v5 = vmul.f32 %v8428_v14, %v7196_v39  ;;  %v8590_v46 = vmul.f32 %v8428_v14, %v7206_v42 }
0x132e   : > { %v6980_v50 = vpop.eup %6979  ;;  %5877 = vst.msk [vmem:[%s7323_s20 + $0x1e0] sm:$0xff] %vm692_vm2, %v3762_v7 }
0x132f   : > { %4868 = vrot.lane.b32.xlu0 %v4849_v17, %s7010_s30  ;;  %4866 = vrot.lane.b32.xlu1 %v4848_v28, %s7010_s30  ;;  %v3764_v15 = vmul.f32 %v6980_v50, %v8344_v4  ;;  %v4221_v4 = vadd.s32 8, %v8352_v1  ;;  %v4224_v28 = vadd.s32 32, %v8352_v1  ;;  %v8442_v50 = vrot.slane %v8358_v30, %v4764_v58 }
0x1331   : > { %5878 = vst.msk [vmem:[%s7323_s20 + $0x1e8] sm:$0xff] %vm692_vm2, %v3764_v15  ;;  %v4239_v12 = vand.u32 7, %v4221_v4 }
0x1332   : > { %v6982_v52 = vpop.eup %6981 }
0x1333   : > { %4872 = vrot.lane.b32.xlu0 %v4851_v2, %s7010_s30  ;;  %4870 = vrot.lane.b32.xlu1 %v4850_v49, %s7010_s30  ;;  %v3768_v25 = vmul.f32 %v6982_v52, %v8348_v20  ;;  %v4223_v20 = vadd.s32 24, %v8352_v1  ;;  %v4227_v2 = vadd.s32 56, %v8352_v1  ;;  %v4226_v49 = vadd.s32 48, %v8352_v1 }
0x1334   : > { %v8447_v52 = vadd.s32 4294967295, %v4239_v12 }
0x1335   : > { %5880 = vst.msk [vmem:[%s7323_s20 + $0x1f8] sm:$0xff] %vm692_vm2, %v3768_v25  ;;  %v4253_v3 = vand.u32 7, %v4223_v20 }
0x1336   : > { %vm4333_vm4 = vcmp.ge.s32.totalorder %v8447_v52, 0 }
0x1337   : > { %4876 = vrot.lane.b32.xlu0 %v4853_v27, %s7010_s30  ;;  %4874 = vrot.lane.b32.xlu1 %v4852_v29, %s7010_s30  ;;  %v8453_v27 = vrot.slane %v8358_v30, %v5044_v48  ;;  %v8455_v29 = vadd.s32 4294967295, %v4253_v3 }
0x1339   : > { %vm4335_vm6 = vcmp.ge.s32.totalorder %v8455_v29, 0 }
0x1355   : > { %v3749_v19 = vpop.xlane.xlu1 %3748 }
0x1356   : > { %6983 = vrcp.f32 %v3749_v19  ;;  %v4357_v19 = vadd.s32 4294967287, %v4221_v4  ;;  %v4281_v4 = vand.u32 7, %v4227_v2 }
0x1358   : > { %vm4365_vm7 = vcmp.ge.s32.totalorder %v4357_v19, 0  ;;  %v8495_v32 = vadd.s32 4294967295, %v4281_v4  ;;  %v8497_v47 = vadd.s32 1, %v4281_v4  ;;  %v8515_v4 = vadd.s32 9, %v4226_v49 }
0x1359   : > { %v3779_v22 = vpop.permute.xlu1 %3778  ;;  %vm8542_vm1 = vmand %vm4333_vm4, %vm4365_vm7  ;;  %v8559_v19 = vmul.f32 %v8428_v14, %v7198_v40 }
0x135a   : > { %6641 = vmatprep.subr.mxu0 %v3779_v22  ;;  %6682 = vmatprep.subr.mxu1 %v3779_v22 }
0x135b   : > { %6642 = vmatpush3.msra.mxu0 %v3779_v22  ;;  %6690 = vmatpush3.msra.mxu1 %v3779_v22  ;;  %v8458_v22 = vadd.s32 1, %v4239_v12  ;;  %v8476_v12 = vadd.s32 4294967295, %v8352_v1  ;;  %9413 = vst [vmem:[#allocation62_spill] sm:$0xff] %v8559_v19 }
0x135c   : > { %6644 = vmatmul.mubr.msk.f32.vlgmr.msra.gmra.mxu0 %vm692_vm2, %v3756_v13  ;;  %6647 = vmatmul.mubr.msk.f32.vlgmr.msra.gmra.mxu1 %vm692_vm2, %v3760_v57  ;;  %v5125_v13 = vsub.s32 7, %v8352_v1  ;;  %v8435_v57 = vrot.slane %v8358_v30, %v4439_v24  ;;  %v4260_v24 = vand.u32 7, %v4224_v28 }
0x135d   : > { %6649 = vmatprep.mubr.msk.f32.mxu1 %vm692_vm2, %v3762_v7  ;;  %v8438_v7 = vrot.slane %v8358_v30, %v4680_v61  ;;  %9406 = vst [vmem:[#allocation58_spill] sm:$0xff] %v8458_v22  ;;  %v8469_v61 = vadd.s32 1, %v4253_v3  ;;  %vm4582_vm12 = vcmp.lt.s32.totalorder %v8458_v22, 8  ;;  %vm4706_vm14 = vcmp.ge.s32.totalorder %v8476_v12, 0 }
0x135e   : > { %v8431_v9 = vrot.slane %v8358_v30, %v5125_v13  ;;  %v4441_v20 = vmul.f32 0.0, %v8435_v57  ;;  %v8489_v28 = vadd.s32 4294967295, %v4260_v24  ;;  %v4550_v12 = vmul.f32 %v8428_v14, %v7232_v45 }
0x135f   : > { %9407 = vst [vmem:[#allocation59_spill] sm:$0xff] %v8469_v61  ;;  %vm9349_vm11 = vcmp.lt.s32.totalorder %v8469_v61, 8 }
0x1360   : > { %6650 = vmatmul.mubr.msk.f32.gmra.mxu1 %vm692_vm2, %v3764_v15  ;;  %v4232_v15 = vand.u32 7, %v8352_v1  ;;  %v8484_v3 = vadd.f32 %v4549_v21, %v4441_v20  ;;  %v8503_v20 = vadd.s32 1, %v4227_v2  ;;  %v8505_v21 = vadd.s32 7, %v4227_v2 }
0x1361   : > { %v4399_v2 = vrot.slane %v7192_v38, 7  ;;  %v8522_v34 = vmul.f32 %v8431_v9, %v7192_v38  ;;  %v8555_v56 = vmul.f32 %v8431_v9, %v7198_v40  ;;  %v8567_v55 = vmul.f32 %v8431_v9, %v7196_v39 }
0x1362   : > { %v8473_v58 = vadd.s32 4294967295, %v4232_v15 }
0x1363   : > { %v6984_v23 = vpop.eup %6983  ;;  %9408 = vst [vmem:[#allocation60_spill] sm:$0xff] %v8522_v34  ;;  %9412 = vst [vmem:[#allocation61_spill] sm:$0xff] %v8555_v56  ;;  %v4432_v34 = vsel %vm4335_vm6, %v8563_v62, 0.0 }
0x1364   : > { %v3766_v26 = vmul.f32 %v6984_v23, %v8363_v63  ;;  %v4225_v63 = vadd.s32 40, %v8352_v1  ;;  %v8461_v23 = vadd.s32 4294967289, %v8352_v1  ;;  %vm4332_vm13 = vcmp.ge.s32.totalorder %v8473_v58, 0  ;;  %9414 = vst [vmem:[#allocation63_spill] sm:$0xff] %v8567_v55 }
0x1365   : > { %v4552_v55 = vmul.f32 %v8428_v14, %v7218_v44  ;;  %vm8658_vm0 = vmand %vm4332_vm13, %vm4706_vm14 }
0x1366   : > { %5879 = vst.msk [vmem:[%s7323_s20 + $0x1f0] sm:$0xff] %vm692_vm2, %v3766_v26  ;;  %6652 = vmatprep.mubr.msk.f32.mxu1 %vm692_vm2, %v3766_v26  ;;  %v4267_v17 = vand.u32 7, %v4225_v63  ;;  %v4246_v26 = vand.u32 7, %v4222_v36  ;;  %v4274_v63 = vand.u32 7, %v4226_v49  ;;  %vm4605_vm8 = vcmp.ge.s32.totalorder %v8461_v23, 0  ;;  %s7038_s20 = smov 28  }
0x1367   : > { %6653 = vmatmul.mubr.msk.f32.gmra.mxu1 %vm692_vm2, %v3768_v25  ;;  %v8450_v25 = vrot.slane %v8358_v30, %v4960_v31  ;;  %v8467_v30 = vadd.s32 1, %v4232_v15  ;;  %v8493_v15 = vadd.s32 1, %v4260_v24  ;;  %v4641_v24 = vrot.slane %v7206_v42, 1 }
0x1368   : > { %v8465_v13 = vadd.s32 4294967295, %v4267_v17  ;;  %v8480_v31 = vadd.s32 1, %v4246_v26  ;;  %v8482_v48 = vadd.s32 1, %v4267_v17  ;;  %v8486_v36 = vadd.s32 4294967295, %v4246_v26 }
0x1369   : > { %vm4581_vm10 = vcmp.lt.s32.totalorder %v8467_v30, 8  ;;  %v8499_v17 = vadd.s32 4294967295, %v4274_v63  ;;  %v4400_v26 = vrot.slane %v7206_v42, 7  ;;  %v8507_v60 = vadd.s32 1, %v4274_v63 }
0x136a   : > { %vm4337_vm9 = vcmp.ge.s32.totalorder %v8465_v13, 0  ;;  %vm4586_vm15 = vcmp.lt.s32.totalorder %v8482_v48, 8  ;;  %v4640_v63 = vrot.slane %v7192_v38, 1  ;;  %vm4334_vm2 = vcmp.ge.s32.totalorder %v8486_v36, 0  ;;  %vm8603_vm7 = vmand %vm4581_vm10, %vm4605_vm8 }
0x136b   : > { %v8530_v49 = vmul.f32 %v8428_v14, %v7192_v38  ;;  %v8537_v33 = vsel %vm4404_vm3, %v4399_v2, %v4400_v26  ;;  %v9411_v38 = vrot.slane %v7186_v37, 7  ;;  %v8586_v54 = vsel %vm4404_vm3, %v4400_v26, %v9416_v11 }
0x136c   : > { %v8577_v41 = vsel %vm4645_vm5, %v4640_v63, %v4641_v24  ;;  %v5037_v35 = vsel %vm4335_vm6, %v8537_v33, 0.0  ;;  %v9419_v11 = vrot.slane %v7186_v37, 1  ;;  %v4434_v10 = vsel %vm4337_vm9, %v8537_v33, 0.0 }
0x136d   : > { %v8550_v8 = vsel %vm4404_vm3, %v9411_v38, %v4396_v6  ;;  %v8571_v38 = vmul.f32 %v8431_v9, %v7206_v42  ;;  %v4411_v26 = vsel %vm4404_vm3, %v4396_v6, %v4397_v51  ;;  %v8620_v23 = vmul.f32 %v8431_v9, %v7218_v44 }
0x136e   : > { %v4430_v39 = vsel %vm8542_vm1, %v8550_v8, 0.0  ;;  %v8611_v42 = vsel %vm4645_vm5, %v9419_v11, %v4637_v0  ;;  %vm4583_vm1 = vcmp.lt.s32.totalorder %v8480_v31, 8  ;;  %v9422_v11 = vrot.slane %v7198_v40, 1 }
0x136f   : > { %9415 = vst [vmem:[#allocation64_spill] sm:$0xff] %v8571_v38  ;;  %9420 = vst [vmem:[#allocation65_spill] sm:$0xff] %v8611_v42  ;;  %v8636_v51 = vsel %vm4645_vm5, %v4639_v53, %v4640_v63  ;;  %v4953_v6 = vsel %vm9349_vm11, %v8577_v41, 0.0  ;;  %vm4336_vm8 = vcmp.ge.s32.totalorder %v8489_v28, 0  ;;  %v4442_v19 = vmul.f32 %v8435_v57, %v4430_v39 }
0x1370   : > { %9421 = vst [vmem:[#allocation66_spill] sm:$0xff] %v8620_v23  ;;  %v8630_v38 = vsel %vm4645_vm5, %v4641_v24, %v9422_v11  ;;  %v8642_v23 = vmul.f32 %v8453_v27, %v5037_v35  ;;  %v4652_v24 = vsel %vm4645_vm5, %v4637_v0, %v4638_v18  ;;  %v4951_v44 = vsel %vm4582_vm12, %v8597_v59, 0.0 }
0x1371   : > { %9423 = vst [vmem:[#allocation67_spill] sm:$0xff] %v8630_v38  ;;  %v4670_v53 = vsel %vm8603_vm7, %v8611_v42, 0.0  ;;  %v4444_v63 = vmul.f32 %v8435_v57, %v4432_v34  ;;  %v4431_v18 = vsel %vm4334_vm2, %v4411_v26, 0.0  ;;  %v4446_v0 = vmul.f32 %v8435_v57, %v4434_v10 }
0x1372   : > { %9424 = vst [vmem:[#allocation68_spill] sm:$0xff] %v8642_v23  ;;  %v4675_v56 = vsel %vm4586_vm15, %v8630_v38, 0.0  ;;  %vm4339_vm7 = vcmp.ge.s32.totalorder %v8495_v32, 0  ;;  %v5035_v39 = vsel %vm4333_vm4, %v8563_v62, 0.0  ;;  %v4409_v34 = vsel %vm4404_vm3, %v4398_v16, %v4399_v2 }
0x1373   : > { %v4673_v10 = vsel %vm9349_vm11, %v8636_v51, 0.0  ;;  %v4671_v11 = vsel %vm4582_vm12, %v4652_v24, 0.0  ;;  %v4755_v23 = vsel %vm4333_vm4, %v4411_v26, 0.0  ;;  %v8685_v42 = vmul.f32 %v8450_v25, %v4951_v44 }
0x1374   : > { %v4682_v45 = vmul.f32 %v8438_v7, %v4670_v53  ;;  %vm4585_vm14 = vcmp.lt.s32.totalorder %v8493_v15, 8  ;;  %v4558_v38 = vadd.f32 %v4550_v12, %v4442_v19  ;;  %v4754_v16 = vsel %vm8658_vm0, %v8550_v8, 0.0 }
0x1375   : > { %v4950_v2 = vsel %vm4581_vm10, %v4652_v24, 0.0  ;;  %v4443_v61 = vmul.f32 %v8435_v57, %v4431_v18  ;;  %v8696_v52 = vmul.f32 %v8453_v27, %v5035_v39  ;;  %v5034_v44 = vsel %vm4332_vm13, %v4411_v26, 0.0 }
0x1376   : > { %v4560_v22 = vadd.f32 %v4552_v55, %v4444_v63  ;;  %v4402_v53 = vrot.slane %v7208_v43, 7  ;;  %v4683_v19 = vmul.f32 %v8438_v7, %v4671_v11  ;;  %v4767_v12 = vmul.f32 %v8442_v50, %v4755_v23 }
0x1377   : > { %v4685_v35 = vmul.f32 %v8438_v7, %v4673_v10  ;;  %v4757_v24 = vsel %vm4335_vm6, %v4409_v34, 0.0  ;;  %vm4588_vm0 = vcmp.lt.s32.totalorder %v8497_v47, 8  ;;  %vm4925_vm4 = vcmp.lt.s32.totalorder %v8503_v20, 64 }
0x1378   : > { %v4690_v18 = vadd.f32 %v4682_v45, %v8484_v3  ;;  %v4766_v58 = vmul.f32 %v8442_v50, %v4754_v16  ;;  %v8711_v55 = vmul.f32 %v8450_v25, %v4950_v2  ;;  %v4672_v26 = vsel %vm4583_vm1, %v8597_v59, 0.0 }
0x1379   : > { %vm5009_vm13 = vcmp.lt.s32.totalorder %v8505_v21, 64  ;;  %vm4338_vm11 = vcmp.ge.s32.totalorder %v8499_v17, 0  ;;  %v4691_v29 = vadd.f32 %v4683_v19, %v4558_v38  ;;  %v8719_v23 = vmul.f32 %v8453_v27, %v5034_v44 }
0x137a   : > { %v4559_v63 = vadd.f32 %v4551_v5, %v4443_v61  ;;  %v4433_v3 = vsel %vm4336_vm8, %v4409_v34, 0.0  ;;  %v4693_v39 = vadd.f32 %v4685_v35, %v4560_v22  ;;  %v4769_v10 = vmul.f32 %v8442_v50, %v4757_v24 }
0x137b   : > { %v9427_v11 = vrot.slane %v7198_v40, 7  ;;  %v4643_v16 = vrot.slane %v7208_v43, 1  ;;  %v8730_v2 = vmul.f32 %v8450_v25, %v4953_v6  ;;  %v4684_v38 = vmul.f32 %v8438_v7, %v4672_v26 }
0x137c   : > { %v4756_v5 = vsel %vm4334_vm2, %v8563_v62, 0.0  ;;  %v4562_v22 = vadd.f32 %v8590_v46, %v4446_v0  ;;  %v4774_v61 = vadd.f32 %v4766_v58, %v4690_v18  ;;  %v4952_v44 = vsel %vm4583_vm1, %v8636_v51, 0.0 }
0x137d   : > { %v4406_v45 = vsel %vm4404_vm3, %v9427_v11, %v4402_v53  ;;  %v5036_v19 = vsel %vm4334_vm2, %v4409_v34, 0.0  ;;  %v4445_v35 = vmul.f32 %v8435_v57, %v4433_v3  ;;  %vm4587_vm6 = vcmp.lt.s32.totalorder %v8507_v60, 8 }
0x137e   : > { %v4775_v6 = vadd.f32 %v4767_v12, %v4691_v29  ;;  %v4692_v24 = vadd.f32 %v4684_v38, %v4559_v63  ;;  %v4687_v26 = vmul.f32 %v8438_v7, %v4675_v56  ;;  %v4436_v62 = vsel %vm4339_vm7, %v4406_v45, 0.0 }
0x137f   : > { %v8747_v46 = vadd.f32 %v4769_v10, %v4693_v39  ;;  %v4768_v0 = vmul.f32 %v8442_v50, %v4756_v5  ;;  %v9428_v18 = vrot.slane %v7198_v40, 1  ;;  %v4759_v34 = vsel %vm4337_vm9, %v8586_v54, 0.0 }
0x1380   : > { %v8760_v12 = vmul.f32 %v8450_v25, %v4952_v44  ;;  %v8763_v56 = vmul.f32 %v8453_v27, %v5036_v19  ;;  %v4695_v58 = vadd.f32 %v4687_v26, %v4562_v22  ;;  %v4674_v29 = vsel %vm4585_vm14, %v8577_v41, 0.0 }
0x1381   : > { %v8754_v36 = vsel %vm4645_vm5, %v9428_v18, %v4643_v16  ;;  %v8770_v40 = vmul.f32 %v8431_v9, %v7208_v43  ;;  %v4561_v63 = vadd.f32 %v8530_v49, %v4445_v35  ;;  %v4448_v3 = vmul.f32 %v8435_v57, %v4436_v62 }
0x1382   : > { %v9429_v39 = vrot.slane %v7186_v37, 1  ;;  %v4776_v11 = vadd.f32 %v4768_v0, %v4692_v24  ;;  %v4771_v38 = vmul.f32 %v8442_v50, %v4759_v34  ;;  %v4955_v5 = vsel %vm4586_vm15, %v8754_v36, 0.0  ;;  %v9436_v34 = vld [vmem:[#allocation65_spill] sm:$0xff] }
0x1383   : > { %v5039_v22 = vsel %vm4337_vm9, %v4406_v45, 0.0  ;;  %v4686_v49 = vmul.f32 %v8438_v7, %v4674_v29  ;;  %v4758_v44 = vsel %vm4336_vm8, %v8537_v33, 0.0  ;;  %v9430_v19 = vrot.slane %v7186_v37, 7  ;;  %v9433_v33 = vld [vmem:[#allocation67_spill] sm:$0xff] }
0x1384   : > { %v8778_v10 = vsel %vm4645_vm5, %v4643_v16, %v9429_v39  ;;  %v4556_v35 = vmul.f32 %v8428_v14, %v7208_v43  ;;  %vm8800_vm5 = vmand %vm4588_vm0, %vm4925_vm4  ;;  %vm5173_vm9 = vcmp.lt.s32.totalorder %v8515_v4, 64  ;;  %v8805_v24 = vadd.f32 %v4771_v38, %v4695_v58 }
0x1385   : > { %v4405_v16 = vsel %vm4404_vm3, %v4402_v53, %v9430_v19  ;;  %v4954_v1 = vsel %vm4585_vm14, %v9433_v33, 0.0  ;;  %v4677_v43 = vsel %vm4588_vm0, %v8778_v10, 0.0  ;;  %vm8817_vm3 = vmand %vm4339_vm7, %vm5009_vm13  ;;  %v4435_v20 = vsel %vm4338_vm11, %v8586_v54, 0.0 }
0x1386   : > { %v8825_v53 = vmul.f32 %v8450_v25, %v4955_v5  ;;  %v4694_v26 = vadd.f32 %v4686_v49, %v4561_v63  ;;  %v5038_v47 = vsel %vm4336_vm8, %v8586_v54, 0.0  ;;  %v4564_v62 = vadd.f32 %v4556_v35, %v4448_v3 }
0x1387   : > { %v8831_v21 = vmul.f32 %v8453_v27, %v5039_v22  ;;  %v4770_v0 = vmul.f32 %v8442_v50, %v4758_v44  ;;  %v4761_v18 = vsel %vm4339_vm7, %v4405_v16, 0.0  ;;  %v4957_v58 = vsel %vm8800_vm5, %v9436_v34, 0.0 }
0x1388   : > { %v8840_v29 = vmul.f32 %v8450_v25, %v4954_v1  ;;  %v4689_v63 = vmul.f32 %v8438_v7, %v4677_v43  ;;  %v5041_v54 = vsel %vm8817_vm3, %v8550_v8, 0.0  ;;  %v4447_v28 = vmul.f32 %v8435_v57, %v4435_v20  ;;  %v9437_v1 = vld [vmem:[#allocation62_spill] sm:$0xff] }
0x1389   : > { %v8848_v3 = vmul.f32 %v8453_v27, %v5038_v47  ;;  %v4676_v32 = vsel %vm4587_vm6, %v8754_v36, 0.0  ;;  %v4760_v39 = vsel %vm4338_vm11, %v4406_v45, 0.0  ;;  %v4956_v38 = vsel %vm4587_vm6, %v8778_v10, 0.0 }
0x138a   : > { %v4778_v49 = vadd.f32 %v4770_v0, %v4694_v26  ;;  %v4697_v8 = vadd.f32 %v4689_v63, %v4564_v62  ;;  %v4773_v57 = vmul.f32 %v8442_v50, %v4761_v18  ;;  %v8860_v44 = vmul.f32 %v8450_v25, %v4957_v58  ;;  %v5889_v58 = vld [vmem:[%s9333_s3 + $0x8] ss:$0 sm:$0xff] }
0x138b   : > { %v8863_v13 = vmul.f32 %v8453_v27, %v5041_v54  ;;  %v5040_v45 = vsel %vm4338_vm11, %v4405_v16, 0.0  ;;  %v4563_v43 = vadd.f32 %v9437_v1, %v4447_v28  ;;  %v4688_v14 = vmul.f32 %v8438_v7, %v4676_v32  ;;  %v9447_v1 = vld [vmem:[#allocation60_spill] sm:$0xff] }
0x138c   : > { %v4772_v20 = vmul.f32 %v8442_v50, %v4760_v39  ;;  %v4968_v26 = vmul.f32 %v8450_v25, %v4956_v38  ;;  %v5199_v17 = vsel %vm4581_vm10, %v8597_v59, 0.0  ;;  %v4781_v18 = vadd.f32 %v4773_v57, %v4697_v8  ;;  %v9439_v50 = vld [vmem:[#allocation59_spill] sm:$0xff]  ;;  %vm8896_vm10 = vmand %vm4587_vm6, %vm5173_vm9 }
0x138d   : > { %v5052_v7 = vmul.f32 %v8453_v27, %v5040_v45  ;;  %vm9440_vm11 = vcmp.lt.s32.totalorder %v9439_v50, 8  ;;  %v5203_v38 = vsel %vm4585_vm14, %v8754_v36, 0.0  ;;  %v5205_v48 = vsel %vm8896_vm10, %v9436_v34, 0.0  ;;  %v9446_v36 = vld [vmem:[#allocation64_spill] sm:$0xff] }
0x138e   : > { %v5202_v25 = vsel %vm9440_vm11, %v9433_v33, 0.0  ;;  %v9444_v33 = vld [vmem:[#allocation63_spill] sm:$0xff] }
0x138f   : > { %v5214_v32 = vmul.f32 %v5889_v58, %v5202_v25 }
0x139d   : > { %v4865_v5 = vpop.permute.xlu0 %4864  ;;  %v4863_v22 = vpop.permute.xlu1 %4862 }
0x139e   : > { %v4887_v19 = vadd.f32 %v4865_v5, %v4775_v6  ;;  %v4886_v35 = vadd.f32 %v4863_v22, %v4774_v61  ;;  %v5200_v6 = vsel %vm4582_vm12, %v8636_v51, 0.0  ;;  %v5215_v61 = vmul.f32 %v5889_v58, %v5203_v38 }
0x139f   : > { %v5212_v31 = vmul.f32 %v5889_v58, %v5200_v6  ;;  %vm9448_vm12 = vcmask 261120  }
0x13a0   : > { %v4971_v47 = vadd.f32 %v8685_v42, %v4887_v19  ;;  %v4970_v62 = vadd.f32 %v8711_v55, %v4886_v35  ;;  %v5201_v42 = vsel %vm4583_vm1, %v8577_v41, 0.0  ;;  %v4696_v41 = vadd.f32 %v4688_v14, %v4563_v43  ;;  %vm9451_vm2 = vmmov %vm9448_vm12 }
0x13a1   : > { %v4869_v16 = vpop.permute.xlu0 %4868  ;;  %v4867_v0 = vpop.permute.xlu1 %4866  ;;  %v5213_v39 = vmul.f32 %v5889_v58, %v5201_v42  ;;  %v9450_v42 = vld [vmem:[#allocation61_spill] sm:$0xff]  ;;  %vm9452_vm1 = vmmov %vm9451_vm2 }
0x13a2   : > { %v5055_v55 = vadd.f32 %v8696_v52, %v4971_v47  ;;  %v5054_v51 = vadd.f32 %v8719_v23, %v4970_v62  ;;  %v4889_v30 = vadd.f32 %v4869_v16, %v8747_v46  ;;  %v4888_v59 = vadd.f32 %v4867_v0, %v4776_v11  ;;  %v9443_v46 = vld [vmem:[#allocation66_spill] sm:$0xff]  ;;  %vm9453_vm8 = vmmov %vm9452_vm1 }
0x13a3   : > { %v5211_v52 = vmul.f32 %v5889_v58, %v5199_v17  ;;  %v5204_v23 = vsel %vm4586_vm15, %v8778_v10, 0.0  ;;  %v9445_v10 = vld [vmem:[#allocation68_spill] sm:$0xff]  ;;  %v4780_v57 = vadd.f32 %v4772_v20, %v4696_v41  ;;  %vm9449_vm15 = vmmov %vm9448_vm12 }
0x13a4   : > { %v5136_v11 = vadd.f32 %v9443_v46, %v5055_v55  ;;  %v5135_v63 = vadd.f32 %v9444_v33, %v5054_v51  ;;  %v4973_v54 = vadd.f32 %v8730_v2, %v4889_v30  ;;  %v4972_v4 = vadd.f32 %v8760_v12, %v4888_v59  ;;  %v5890_v12 = vld [vmem:[%s9334_s4] ss:$0 sm:$0xff]  ;;  %vm9454_vm7 = vmmov %vm9452_vm1 }
0x13a5   : > { %v4873_v60 = vpop.permute.xlu0 %4872  ;;  %v4871_v28 = vpop.permute.xlu1 %4870  ;;  %v5216_v15 = vmul.f32 %v5889_v58, %v5204_v23  ;;  %v5218_v59 = vmul.f32 0.0, %v5889_v58  ;;  %v5217_v46 = vmul.f32 %v5889_v58, %v5205_v48  ;;  %vm9455_vm14 = vmmov %vm9452_vm1 }
0x13a6   : > { %v5057_v5 = vadd.f32 %v9445_v10, %v4973_v54  ;;  %v5056_v22 = vadd.f32 %v8763_v56, %v4972_v4  ;;  %v4891_v2 = vadd.f32 %v4873_v60, %v8805_v24  ;;  %v4890_v8 = vadd.f32 %v4871_v28, %v4778_v49  ;;  %vm9456_vm0 = vmmov %vm9452_vm1 }
0x13a7   : > { %v5220_v19 = vadd.f32 %v5212_v31, %v5136_v11  ;;  %v5219_v35 = vadd.f32 %v5211_v52, %v5135_v63  ;;  %v5134_v56 = vmul.f32 0.0, %v8431_v9  ;;  %vm9457_vm4 = vmmov %vm9456_vm0 }
0x13a8   : > { %v5138_v45 = vadd.f32 %v9446_v36, %v5057_v5  ;;  %v5137_v43 = vadd.f32 %v9447_v1, %v5056_v22  ;;  %v4975_v34 = vadd.f32 %v8825_v53, %v4891_v2  ;;  %v4974_v14 = vadd.f32 %v8840_v29, %v4890_v8  ;;  %vm9458_vm13 = vmmov %vm9456_vm0 }
0x13a9   : > { %v4877_v24 = vpop.permute.xlu0 %4876  ;;  %v4875_v49 = vpop.permute.xlu1 %4874  ;;  %v5235_v47 = vadd.f32 %v5890_v12, %v5220_v19  ;;  %v5234_v62 = vadd.f32 %v5890_v12, %v5219_v35  ;;  %vm9459_vm6 = vmmov %vm9456_vm0 }
0x13aa   : > { %v5059_v20 = vadd.f32 %v8831_v21, %v4975_v34  ;;  %v5058_v6 = vadd.f32 %v8848_v3, %v4974_v14  ;;  %v4893_v17 = vadd.f32 %v4877_v24, %v4781_v18  ;;  %v4892_v16 = vadd.f32 %v4875_v49, %v4780_v57  ;;  %vm9460_vm5 = vmmov %vm9456_vm0 }
0x13ab   : > { %v5245_v0 = vsel %vm9448_vm12, %v5235_v47, 0.0  ;;  %v5242_v50 = vsel %vm9449_vm15, %v5234_v62, 0.0  ;;  %v5222_v53 = vadd.f32 %v5214_v32, %v5138_v45  ;;  %v5221_v25 = vadd.f32 %v5213_v39, %v5137_v43  ;;  %vm9461_vm9 = vmmov %vm9456_vm0 }
0x13ac   : > { %v5140_v29 = vadd.f32 %v8770_v40, %v5059_v20  ;;  %v5139_v55 = vadd.f32 %v9450_v42, %v5058_v6  ;;  %v4977_v51 = vadd.f32 %v8860_v44, %v4893_v17  ;;  %v4976_v30 = vadd.f32 %v4968_v26, %v4892_v16  ;;  %5246 = vadd.xlane.f32.xlu0 %v5245_v0  ;;  %vm9462_vm3 = vmmov %vm9456_vm0 }
0x13ad   : > { %v5133_v21 = vmul.f32 %v8431_v9, %v7186_v37  ;;  %5243 = vadd.xlane.f32.xlu1 %v5242_v50  ;;  %v5237_v3 = vadd.f32 %v5890_v12, %v5222_v53  ;;  %v5236_v18 = vadd.f32 %v5890_v12, %v5221_v25  ;;  %vm9463_vm11 = vmmov %vm9456_vm0  ;;  %vm4163_vm12 = vcmask 64512  }
0x13ae   : > { %v5061_v27 = vadd.f32 %v8863_v13, %v4977_v51  ;;  %v5060_v41 = vadd.f32 %v5052_v7, %v4976_v30  ;;  %v5224_v31 = vadd.f32 %v5216_v15, %v5140_v29  ;;  %v5223_v52 = vadd.f32 %v5215_v61, %v5139_v55  ;;  %vm9464_vm10 = vmmov %vm9456_vm0  ;;  %v9465_v30 = vld [vmem:[#allocation10_spill] sm:$0xff] }
0x13af   : > { %v5251_v40 = vsel %vm9451_vm2, %v5237_v3, 0.0  ;;  %v5248_v23 = vsel %vm9452_vm1, %v5236_v18, 0.0  ;;  %vm9514_vm15 = vcmask 31744   ;;  %vm4172_vm1 = vcmask 97280  }
0x13b0   : > { %v5142_v44 = vadd.f32 %v5134_v56, %v5061_v27  ;;  %v5141_v26 = vadd.f32 %v5133_v21, %v5060_v41  ;;  %5249 = vadd.xlane.f32.xlu0 %v5248_v23  ;;  %v5239_v11 = vadd.f32 %v5890_v12, %v5224_v31  ;;  %v5238_v33 = vadd.f32 %v5890_v12, %v5223_v52  ;;  %v9466_v21 = vld [vmem:[#allocation19_spill] sm:$0xff]  ;;  %v9471_v41 = vld [vmem:[#allocation26_spill] sm:$0xff]  ;;  %v9473_v52 = vld [vmem:[#allocation13_spill] sm:$0xff] }
0x13b1   : > { %5252 = vadd.xlane.f32.xlu1 %v5251_v40  ;;  %v9470_v27 = vld [vmem:[#allocation35_spill] sm:$0xff]  ;;  %v9472_v31 = vld [vmem:[#allocation34_spill] sm:$0xff]  ;;  %v9474_v40 = vld [vmem:[#allocation12_spill] sm:$0xff] }
0x13b2   : > { %v5257_v37 = vsel %vm9453_vm8, %v5239_v11, 0.0  ;;  %v5254_v9 = vsel %vm9454_vm7, %v5238_v33, 0.0  ;;  %v5226_v63 = vadd.f32 %v5218_v59, %v5142_v44  ;;  %v5225_v13 = vadd.f32 %v5217_v46, %v5141_v26  ;;  %v9469_v59 = vld [vmem:[#allocation18_spill] sm:$0xff]  ;;  %v9475_v23 = vld [vmem:[#allocation43_spill] sm:$0xff]  ;;  %v9477_v44 = vld [vmem:[#allocation21_spill] sm:$0xff] }
0x13b3   : > { %v9476_v46 = vld [vmem:[#allocation42_spill] sm:$0xff]  ;;  %v9478_v26 = vld [vmem:[#allocation20_spill] sm:$0xff]  ;;  %vm9516_vm2 = vmmov %vm9514_vm15  ;;  %vm4181_vm8 = vcmask 130048   ;;  %vm4190_vm7 = vcmask 162816  }
0x13b4   : > { %5255 = vadd.xlane.f32.xlu0 %v5254_v9  ;;  %v5241_v7 = vadd.f32 %v5890_v12, %v5226_v63  ;;  %v5240_v54 = vadd.f32 %v5890_v12, %v5225_v13  ;;  %v9482_v9 = vld [vmem:[#allocation28_spill] sm:$0xff]  ;;  %v9483_v63 = vld [vmem:[#allocation37_spill] sm:$0xff] }
0x13b5   : > { %5258 = vadd.xlane.f32.xlu1 %v5257_v37  ;;  %v9481_v37 = vld [vmem:[#allocation29_spill] sm:$0xff]  ;;  %v9484_v13 = vld [vmem:[#allocation36_spill] sm:$0xff] }
0x13b6   : > { %v5263_v4 = vsel %vm9455_vm14, %v5241_v7, 0.0  ;;  %v5260_v58 = vsel %vm9456_vm0, %v5240_v54, 0.0  ;;  %vm9518_vm14 = vmmov %vm9516_vm2  ;;  %vm4199_vm0 = vcmask 195584  }
0x13b8   : > { %5261 = vadd.xlane.f32.xlu0 %v5260_v58  ;;  %v9488_v58 = vld [vmem:[#allocation44_spill] sm:$0xff] }
0x13b9   : > { %5264 = vadd.xlane.f32.xlu1 %v5263_v4  ;;  %v9487_v4 = vld [vmem:[#allocation45_spill] sm:$0xff] }
0x1435   : > { %v5247_v60 = vpop.xlane.xlu0 %5246 }
0x1436   : > { %v5268_v28 = vmul.f32 0.03125, %v5247_v60  ;;  %v5244_v32 = vpop.xlane.xlu1 %5243  ;;  %v9489_v60 = vld [vmem:[#allocation23_spill] sm:$0xff] }
0x1437   : > { %v5267_v39 = vmul.f32 0.03125, %v5244_v32  ;;  %v9491_v32 = vld [vmem:[#allocation53_spill] sm:$0xff] }
0x1438   : > { %v8940_v38 = vsub.f32 %v5235_v47, %v5268_v28  ;;  %v9490_v28 = vld [vmem:[#allocation22_spill] sm:$0xff] }
0x1439   : > { %v8942_v48 = vsub.f32 %v5234_v62, %v5267_v39  ;;  %v5250_v10 = vpop.xlane.xlu0 %5249  ;;  %v9492_v39 = vld [vmem:[#allocation52_spill] sm:$0xff] }
0x143a   : > { %v5269_v5 = vmul.f32 0.03125, %v5250_v10  ;;  %v5253_v22 = vpop.xlane.xlu1 %5252  ;;  %v5284_v2 = vmul.f32 %v8940_v38, %v8940_v38  ;;  %v9493_v10 = vld [vmem:[#allocation31_spill] sm:$0xff] }
0x143b   : > { %v5270_v8 = vmul.f32 0.03125, %v5253_v22  ;;  %v5283_v12 = vmul.f32 %v8942_v48, %v8942_v48  ;;  %v9495_v22 = vld [vmem:[#allocation39_spill] sm:$0xff] }
0x143c   : > { %v8948_v57 = vsub.f32 %v5236_v18, %v5269_v5  ;;  %v5294_v19 = vsel %vm9457_vm4, %v5284_v2, 0.0  ;;  %v9468_v18 = vld [vmem:[#allocation27_spill] sm:$0xff]  ;;  %v9494_v5 = vld [vmem:[#allocation30_spill] sm:$0xff]  ;;  %vm9520_vm4 = vmmov %vm9516_vm2 }
0x143d   : > { %v8951_v35 = vsub.f32 %v5237_v3, %v5270_v8  ;;  %5295 = vadd.xlane.f32.xlu1 %v5294_v19  ;;  %v5256_v15 = vpop.xlane.xlu0 %5255  ;;  %v5291_v36 = vsel %vm9458_vm13, %v5283_v12, 0.0  ;;  %v9467_v3 = vld [vmem:[#allocation11_spill] sm:$0xff]  ;;  %v9496_v2 = vld [vmem:[#allocation38_spill] sm:$0xff]  ;;  %v9497_v8 = vld [vmem:[#allocation17_spill] sm:$0xff]  ;;  %vm4208_vm13 = vcmask 228352  }
0x143e   : > { %v5271_v45 = vmul.f32 0.03125, %v5256_v15  ;;  %5292 = vadd.xlane.f32.xlu0 %v5291_v36  ;;  %v5259_v1 = vpop.xlane.xlu1 %5258  ;;  %v5285_v43 = vmul.f32 %v8948_v57, %v8948_v57  ;;  %v9498_v12 = vld [vmem:[#allocation16_spill] sm:$0xff]  ;;  %v9499_v19 = vld [vmem:[#allocation47_spill] sm:$0xff]  ;;  %v9500_v15 = vld [vmem:[#allocation46_spill] sm:$0xff] }
0x143f   : > { %v5272_v34 = vmul.f32 0.03125, %v5259_v1  ;;  %v5286_v14 = vmul.f32 %v8951_v35, %v8951_v35  ;;  %v9501_v36 = vld [vmem:[#allocation25_spill] sm:$0xff]  ;;  %v9503_v1 = vld [vmem:[#allocation55_spill] sm:$0xff] }
0x1440   : > { %v8958_v56 = vsub.f32 %v5238_v33, %v5271_v45  ;;  %v5297_v24 = vsel %vm9459_vm6, %v5285_v43, 0.0  ;;  %v9480_v33 = vld [vmem:[#allocation50_spill] sm:$0xff]  ;;  %v9502_v45 = vld [vmem:[#allocation24_spill] sm:$0xff]  ;;  %vm9522_vm6 = vmmov %vm9516_vm2 }
0x1441   : > { %v8961_v49 = vsub.f32 %v5239_v11, %v5272_v34  ;;  %v5262_v47 = vpop.xlane.xlu0 %5261  ;;  %v5300_v62 = vsel %vm9460_vm5, %v5286_v14, 0.0  ;;  %v9479_v11 = vld [vmem:[#allocation51_spill] sm:$0xff]  ;;  %v9504_v43 = vld [vmem:[#allocation54_spill] sm:$0xff]  ;;  %v9505_v34 = vld [vmem:[#allocation33_spill] sm:$0xff] }
0x1442   : > { %v5273_v61 = vmul.f32 0.03125, %v5262_v47  ;;  %5298 = vadd.xlane.f32.xlu0 %v5297_v24  ;;  %5301 = vadd.xlane.f32.xlu1 %v5300_v62  ;;  %v5265_v20 = vpop.xlane.xlu1 %5264  ;;  %v5287_v6 = vmul.f32 %v8958_v56, %v8958_v56  ;;  %v5388_v14 = vld [vmem:[%s9337_s7 + $0x18] sm:$0xff]  ;;  %v9506_v24 = vld [vmem:[#allocation32_spill] sm:$0xff]  ;;  %vm9523_vm5 = vmmov %vm9462_vm3 }
0x1443   : > { %v5274_v17 = vmul.f32 0.03125, %v5265_v20  ;;  %v5288_v16 = vmul.f32 %v8961_v49, %v8961_v49  ;;  %6655 = vmatprep.subr.mxu1 %v5388_v14  ;;  %v9507_v47 = vld [vmem:[#allocation41_spill] sm:$0xff]  ;;  %v5387_v62 = vld [vmem:[%s9337_s7 + $0x10] sm:$0xff]  ;;  %v6648_v20 = vpop.f32.mrf.mxu1 }
0x1444   : > { %v8968_v0 = vsub.f32 %v5240_v54, %v5273_v61  ;;  %v5303_v50 = vsel %vm9461_vm9, %v5287_v6, 0.0  ;;  %v9486_v54 = vld [vmem:[#allocation14_spill] sm:$0xff]  ;;  %6656 = vmatpush3.msra.mxu1 %v5388_v14  ;;  %v9508_v61 = vld [vmem:[#allocation49_spill] sm:$0xff]  ;;  %v9509_v6 = vld [vmem:[#allocation40_spill] sm:$0xff] }
0x1445   : > { %v8971_v53 = vsub.f32 %v5241_v7, %v5274_v17  ;;  %v5306_v25 = vsel %vm9462_vm3, %v5288_v16, 0.0  ;;  %v9485_v7 = vld [vmem:[#allocation15_spill] sm:$0xff]  ;;  %6657 = vmatprep.subr.mxu1 %v5387_v62  ;;  %v6645_v16 = vpop.f32.mrf.mxu0  ;;  %vm9525_vm9 = vmmov %vm9516_vm2 }
0x1446   : > { %5304 = vadd.xlane.f32.xlu0 %v5303_v50  ;;  %5307 = vadd.xlane.f32.xlu1 %v5306_v25  ;;  %v5289_v29 = vmul.f32 %v8968_v0, %v8968_v0  ;;  %v5386_v17 = vld [vmem:[%s9337_s7 + $0x8] sm:$0xff]  ;;  %v9510_v50 = vld [vmem:[#allocation57_spill] sm:$0xff]  ;;  %v3902_v25 = vpop.f32.mrf.mxu1 }
0x1447   : > { %v5290_v42 = vmul.f32 %v8971_v53, %v8971_v53  ;;  %6658 = vmatpush3.msra.mxu1 %v5387_v62 }
0x1448   : > { %v5309_v55 = vsel %vm9463_vm11, %v5289_v29, 0.0  ;;  %6659 = vmatprep.subr.mxu1 %v5386_v17  ;;  %v9511_v29 = vld [vmem:[#allocation48_spill] sm:$0xff]  ;;  %vm9527_vm11 = vmmov %vm9516_vm2 }
0x1449   : > { %v5312_v51 = vsel %vm9464_vm10, %v5290_v42, 0.0  ;;  %6660 = vmatpush3.msra.mxu1 %v5386_v17  ;;  %v5385_v42 = vld [vmem:[%s9337_s7] sm:$0xff]  ;;  %vm9528_vm10 = vmmov %vm9462_vm3 }
0x144a   : > { %5310 = vadd.xlane.f32.xlu0 %v5309_v55  ;;  %5313 = vadd.xlane.f32.xlu1 %v5312_v51  ;;  %v3892_v55 = vpop.f32.mrf.mxu0  ;;  %v6651_v51 = vpop.f32.mrf.mxu1 }
0x144b   : > { %6661 = vmatprep.subr.mxu1 %v5385_v42 }
0x144c   : > { %6662 = vmatpush3.msra.mxu1 %v5385_v42 }
0x145b   : > { %3941 = vrot.lane.b32.xlu1 %v9465_v30, %s7032_s28  ;;  %v3912_v30 = vpop.f32.mrf.mxu1 }
0x145f   : > { %3971 = vrot.lane.b32.xlu1 %v9466_v21, %s7033_s29  ;;  %v6654_v21 = vpop.f32.mrf.mxu1 }
0x1460   : > { %3939 = vrot.lane.b32.xlu0 %v9467_v3, %s7032_s28 }
0x1461   : > { %v3922_v3 = vpop.f32.mrf.mxu1 }
0x1463   : > { %4003 = vrot.lane.b32.xlu1 %v9468_v18, %s7034_s11 }
0x1464   : > { %3973 = vrot.lane.b32.xlu0 %v9469_v59, %s7033_s29 }
0x1467   : > { %4035 = vrot.lane.b32.xlu1 %v9470_v27, %s7035_s12  ;;  %v9512_v27 = vld [vmem:[#allocation56_spill] sm:$0xff] }
0x1468   : > { %4005 = vrot.lane.b32.xlu0 %v9471_v41, %s7034_s11 }
0x146b   : > { %4037 = vrot.lane.b32.xlu1 %v9472_v31, %s7035_s12 }
0x146c   : > { %3943 = vrot.lane.b32.xlu0 %v9473_v52, %s7032_s28 }
0x146f   : > { %3945 = vrot.lane.b32.xlu1 %v9474_v40, %s7032_s28 }
0x1470   : > { %4067 = vrot.lane.b32.xlu0 %v9475_v23, %s7036_s15 }
0x1473   : > { %4069 = vrot.lane.b32.xlu1 %v9476_v46, %s7036_s15 }
0x1474   : > { %3975 = vrot.lane.b32.xlu0 %v9477_v44, %s7033_s29 }
0x1477   : > { %3977 = vrot.lane.b32.xlu1 %v9478_v26, %s7033_s29 }
0x1478   : > { %4099 = vrot.lane.b32.xlu0 %v9479_v11, %s7037_s16  ;;  %v9513_v11 = vld [vmem:[#allocation3_spill] sm:$0xff] }
0x147b   : > { %4101 = vrot.lane.b32.xlu1 %v9480_v33, %s7037_s16 }
0x147c   : > { %4007 = vrot.lane.b32.xlu0 %v9481_v37, %s7034_s11  ;;  %v9515_v37 = vld [vmem:[#allocation2_spill] sm:$0xff] }
0x147f   : > { %4009 = vrot.lane.b32.xlu1 %v9482_v9, %s7034_s11 }
0x1480   : > { %4039 = vrot.lane.b32.xlu0 %v9483_v63, %s7035_s12 }
0x1483   : > { %4041 = vrot.lane.b32.xlu1 %v9484_v13, %s7035_s12 }
0x1484   : > { %3947 = vrot.lane.b32.xlu0 %v9485_v7, %s7032_s28 }
0x1487   : > { %3949 = vrot.lane.b32.xlu1 %v9486_v54, %s7032_s28 }
0x1488   : > { %4071 = vrot.lane.b32.xlu0 %v9487_v4, %s7036_s15 }
0x148b   : > { %4073 = vrot.lane.b32.xlu1 %v9488_v58, %s7036_s15 }
0x148c   : > { %3979 = vrot.lane.b32.xlu0 %v9489_v60, %s7033_s29 }
0x148f   : > { %3981 = vrot.lane.b32.xlu1 %v9490_v28, %s7033_s29 }
0x1490   : > { %4103 = vrot.lane.b32.xlu0 %v9491_v32, %s7037_s16 }
0x1493   : > { %4105 = vrot.lane.b32.xlu1 %v9492_v39, %s7037_s16 }
0x1494   : > { %4011 = vrot.lane.b32.xlu0 %v9493_v10, %s7034_s11 }
0x1497   : > { %4013 = vrot.lane.b32.xlu1 %v9494_v5, %s7034_s11 }
0x1498   : > { %4043 = vrot.lane.b32.xlu0 %v9495_v22, %s7035_s12 }
0x149b   : > { %4045 = vrot.lane.b32.xlu1 %v9496_v2, %s7035_s12 }
0x149c   : > { %3951 = vrot.lane.b32.xlu0 %v9497_v8, %s7032_s28 }
0x149f   : > { %3953 = vrot.lane.b32.xlu1 %v9498_v12, %s7032_s28  ;;  %v9517_v12 = vld [vmem:[#allocation5_spill] sm:$0xff] }
0x14a0   : > { %4075 = vrot.lane.b32.xlu0 %v9499_v19, %s7036_s15 }
0x14a3   : > { %4077 = vrot.lane.b32.xlu1 %v9500_v15, %s7036_s15 }
0x14a4   : > { %3983 = vrot.lane.b32.xlu0 %v9501_v36, %s7033_s29 }
0x14a7   : > { %3985 = vrot.lane.b32.xlu1 %v9502_v45, %s7033_s29 }
0x14a8   : > { %4107 = vrot.lane.b32.xlu0 %v9503_v1, %s7037_s16 }
0x14ab   : > { %4109 = vrot.lane.b32.xlu1 %v9504_v43, %s7037_s16 }
0x14ac   : > { %4015 = vrot.lane.b32.xlu0 %v9505_v34, %s7034_s11 }
0x14af   : > { %4017 = vrot.lane.b32.xlu1 %v9506_v24, %s7034_s11  ;;  %v9519_v24 = vld [vmem:[#allocation4_spill] sm:$0xff] }
0x14b0   : > { %4047 = vrot.lane.b32.xlu0 %v9507_v47, %s7035_s12 }
0x14b3   : > { %4079 = vrot.lane.b32.xlu1 %v9508_v61, %s7036_s15 }
0x14b4   : > { %4049 = vrot.lane.b32.xlu0 %v9509_v6, %s7035_s12 }
0x14b7   : > { %4111 = vrot.lane.b32.xlu1 %v9510_v50, %s7037_s16 }
0x14b8   : > { %4081 = vrot.lane.b32.xlu0 %v9511_v29, %s7036_s15 }
0x14bb   : > { %4133 = vrot.lane.b32.xlu1 %v6645_v16, %s7038_s20 }
0x14bc   : > { %4131 = vrot.lane.b32.xlu0 %v3892_v55, %s7038_s20 }
0x14bf   : > { %4137 = vrot.lane.b32.xlu1 %v6648_v20, %s7038_s20 }
0x14c0   : > { %4135 = vrot.lane.b32.xlu0 %v3902_v25, %s7038_s20 }
0x14c3   : > { %4141 = vrot.lane.b32.xlu1 %v6651_v51, %s7038_s20 }
0x14c4   : > { %4139 = vrot.lane.b32.xlu0 %v3912_v30, %s7038_s20 }
0x14c6   : > { %v9086_v18 = vpop.xlane.xlu1 %5295 }
0x14c7   : > { %v5293_v59 = vpop.xlane.xlu0 %5292  ;;  %4143 = vrot.lane.b32.xlu1 %v3922_v3, %s7038_s20 }
0x14c8   : > { %4113 = vrot.lane.b32.xlu0 %v9512_v27, %s7037_s16 }
0x14cb   : > { %v5299_v41 = vpop.xlane.xlu0 %5298  ;;  %v5302_v31 = vpop.xlane.xlu1 %5301 }
0x14cc   : > { %4145 = vrot.lane.b32.xlu0 %v6654_v21, %s7038_s20 }
0x14cf   : > { %v5305_v52 = vpop.xlane.xlu0 %5304  ;;  %v9090_v40 = vpop.xlane.xlu1 %5307 }
0x14d3   : > { %v9092_v23 = vpop.xlane.xlu0 %5310  ;;  %v9094_v46 = vpop.xlane.xlu1 %5313 }
0x14d7   : > { %v3940_v44 = vpop.permute.xlu0 %3939  ;;  %v3942_v26 = vpop.permute.xlu1 %3941 }
0x14d8   : > { %v4155_v33 = vsel %vm9514_vm15, %v9513_v11, %v3940_v44  ;;  %v4156_v9 = vsel %vm9516_vm2, %v9515_v37, %v3942_v26  ;;  %v5315_v11 = vmul.f32 0.03125, %v5293_v59  ;;  %vm9530_vm15 = vmmov %vm9516_vm2 }
0x14d9   : > { %vm9531_vm2 = vmmov %vm9462_vm3 }
0x14db   : > { %v3974_v63 = vpop.permute.xlu0 %3973  ;;  %v3972_v13 = vpop.permute.xlu1 %3971 }
0x14dc   : > { %v4165_v7 = vsel %vm4163_vm12, %v4156_v9, %v3974_v63  ;;  %v4164_v54 = vsel %vm4163_vm12, %v4155_v33, %v3972_v13  ;;  %v5316_v9 = vmul.f32 0.03125, %v9086_v18  ;;  %v5317_v63 = vmul.f32 0.03125, %v5299_v41 }
0x14dd   : > { %v5318_v13 = vmul.f32 0.03125, %v5302_v31 }
0x14df   : > { %v4006_v4 = vpop.permute.xlu0 %4005  ;;  %v4004_v58 = vpop.permute.xlu1 %4003 }
0x14e0   : > { %v4174_v60 = vsel %vm4172_vm1, %v4165_v7, %v4006_v4  ;;  %v4173_v28 = vsel %vm4172_vm1, %v4164_v54, %v4004_v58  ;;  %v5323_v7 = vadd.f32 1e-06, %v5315_v11  ;;  %v5319_v54 = vmul.f32 0.03125, %v5305_v52 }
0x14e1   : > { %v5321_v52 = vmul.f32 0.03125, %v9092_v23 }
0x14e2   : > { %6985 = vrsqrt.f32 %v5323_v7  ;;  %v5327_v59 = vadd.f32 1e-06, %v5319_v54 }
0x14e3   : > { %v3944_v32 = vpop.permute.xlu0 %3943  ;;  %v4036_v39 = vpop.permute.xlu1 %4035 }
0x14e4   : > { %v4182_v10 = vsel %vm4181_vm8, %v4173_v28, %v4036_v39  ;;  %v4157_v19 = vsel %vm9518_vm14, %v9517_v12, %v3944_v32  ;;  %v5325_v28 = vadd.f32 1e-06, %v5317_v63  ;;  %v5326_v32 = vadd.f32 1e-06, %v5318_v13  ;;  %vm9532_vm14 = vmmov %vm9531_vm2 }
0x14e5   : > { %v5320_v39 = vmul.f32 0.03125, %v9090_v40  ;;  %v5322_v40 = vmul.f32 0.03125, %v9094_v46 }
0x14e7   : > { %v4068_v5 = vpop.permute.xlu0 %4067  ;;  %v4038_v22 = vpop.permute.xlu1 %4037  ;;  %v5328_v18 = vadd.f32 1e-06, %v5320_v39  ;;  %v5330_v12 = vadd.f32 1e-06, %v5322_v40 }
0x14e8   : > { %v4191_v2 = vsel %vm4190_vm7, %v4182_v10, %v4068_v5  ;;  %v4183_v8 = vsel %vm4181_vm8, %v4174_v60, %v4038_v22  ;;  %v5324_v60 = vadd.f32 1e-06, %v5316_v9 }
0x14ea   : > { %6987 = vrsqrt.f32 %v5324_v60  ;;  %v9202_v60 = vld [vmem:[%s9336_s6] ss:$0 sm:$0xff] }
0x14eb   : > { %v3976_v15 = vpop.permute.xlu0 %3975  ;;  %v3946_v36 = vpop.permute.xlu1 %3945  ;;  %6989 = vrsqrt.f32 %v5325_v28 }
0x14ec   : > { %v4166_v45 = vsel %vm4163_vm12, %v4157_v19, %v3976_v15  ;;  %v4158_v47 = vsel %vm9520_vm4, %v9519_v24, %v3946_v36  ;;  %6991 = vrsqrt.f32 %v5326_v32 }
0x14ed   : > { %6993 = vrsqrt.f32 %v5327_v59 }
0x14ee   : > { %6995 = vrsqrt.f32 %v5328_v18 }
0x14ef   : > { %v4100_v1 = vpop.permute.xlu0 %4099  ;;  %v4070_v43 = vpop.permute.xlu1 %4069 }
0x14f0   : > { %v9111_v34 = vsel %vm4199_vm0, %v4191_v2, %v4100_v1  ;;  %v9114_v14 = vsel %vm4190_vm7, %v4183_v8, %v4070_v43  ;;  %v5329_v8 = vadd.f32 1e-06, %v5321_v52  ;;  %v6986_v36 = vpop.eup %6985 }
0x14f1   : > { %v5339_v46 = vmul.f32 %v6986_v36, %v8942_v48 }
0x14f2   : > { %6997 = vrsqrt.f32 %v5329_v8 }
0x14f3   : > { %v4008_v62 = vpop.permute.xlu0 %4007  ;;  %v3978_v61 = vpop.permute.xlu1 %3977  ;;  %6999 = vrsqrt.f32 %v5330_v12 }
0x14f4   : > { %v9119_v20 = vsel %vm4172_vm1, %v4166_v45, %v4008_v62  ;;  %v9122_v6 = vsel %vm4163_vm12, %v4158_v47, %v3978_v61  ;;  %v9188_v62 = vld [vmem:[%s9335_s5] ss:$0 sm:$0xff] }
0x14f5   : > { %v5354_v54 = vmul.f32 %v9188_v62, %v5339_v46 }
0x14f7   : > { %v9124_v17 = vpop.permute.xlu0 %4039  ;;  %v9126_v16 = vpop.permute.xlu1 %4101  ;;  %v5369_v32 = vadd.f32 %v9202_v60, %v5354_v54 }
0x14f8   : > { %v6988_v45 = vpop.eup %6987  ;;  %v4184_v52 = vsel %vm4181_vm8, %v9119_v20, %v9124_v17  ;;  %v4201_v20 = vsel %vm4199_vm0, %v9114_v14, %v9126_v16 }
0x14f9   : > { %v6990_v1 = vpop.eup %6989  ;;  %v5340_v11 = vmul.f32 %v6988_v45, %v8940_v38 }
0x14fa   : > { %v6992_v43 = vpop.eup %6991  ;;  %v5341_v61 = vmul.f32 %v6990_v1, %v8948_v57 }
0x14fb   : > { %v9128_v50 = vpop.permute.xlu0 %3947  ;;  %v9130_v25 = vpop.permute.xlu1 %4009  ;;  %v5342_v9 = vmul.f32 %v6992_v43, %v8951_v35  ;;  %v5355_v38 = vmul.f32 %v9188_v62, %v5340_v11 }
0x14fc   : > { %v6994_v47 = vpop.eup %6993  ;;  %v5356_v57 = vmul.f32 %v9188_v62, %v5341_v61  ;;  %v4176_v11 = vsel %vm4172_vm1, %v9122_v6, %v9130_v25 }
0x14fd   : > { %v6996_v63 = vpop.eup %6995  ;;  %v5343_v48 = vmul.f32 %v6994_v47, %v8958_v56  ;;  %v5357_v35 = vmul.f32 %v9188_v62, %v5342_v9  ;;  %v5370_v12 = vadd.f32 %v9202_v60, %v5355_v38 }
0x14fe   : > { %v5344_v28 = vmul.f32 %v6996_v63, %v8961_v49  ;;  %v5371_v8 = vadd.f32 %v9202_v60, %v5356_v57  ;;  %v9521_v49 = vld [vmem:[#allocation7_spill] sm:$0xff] }
0x14ff   : > { %v9132_v29 = vpop.permute.xlu0 %4071  ;;  %v9134_v42 = vpop.permute.xlu1 %4041  ;;  %v5358_v56 = vmul.f32 %v9188_v62, %v5343_v48  ;;  %v4159_v36 = vsel %vm9522_vm6, %v9521_v49, %v9128_v50  ;;  %v5372_v1 = vadd.f32 %v9202_v60, %v5357_v35  ;;  %v9524_v48 = vld [vmem:[#allocation6_spill] sm:$0xff] }
0x1500   : > { %v4193_v45 = vsel %vm4190_vm7, %v4184_v52, %v9132_v29  ;;  %v6998_v43 = vpop.eup %6997 }
0x1501   : > { %v5373_v29 = vadd.f32 %v9202_v60, %v5358_v56  ;;  %v7000_v61 = vpop.eup %6999 }
0x1503   : > { %v9136_v55 = vpop.permute.xlu0 %3979  ;;  %v9138_v51 = vpop.permute.xlu1 %3949 }
0x1504   : > { %v4168_v17 = vsel %vm4163_vm12, %v4159_v36, %v9136_v55  ;;  %v4160_v57 = vsel %vm9525_vm9, %v9524_v48, %v9138_v51 }
0x1507   : > { %v9140_v30 = vpop.permute.xlu0 %4103  ;;  %v9142_v21 = vpop.permute.xlu1 %4073 }
0x1508   : > { %v4202_v46 = vsel %vm4199_vm0, %v4193_v45, %v9140_v30  ;;  %v4185_v30 = vsel %vm4181_vm8, %v4176_v11, %v9134_v42 }
0x1509   : > { %v4194_v6 = vsel %vm4190_vm7, %v4185_v30, %v9142_v21  ;;  %v5346_v21 = vmul.f32 %v7000_v61, %v8971_v53 }
0x150b   : > { %v9144_v3 = vpop.permute.xlu0 %4011  ;;  %v9146_v27 = vpop.permute.xlu1 %3981 }
0x150c   : > { %v4177_v14 = vsel %vm4172_vm1, %v4168_v17, %v9144_v3  ;;  %v5345_v3 = vmul.f32 %v6998_v43, %v8968_v0  ;;  %v4169_v42 = vsel %vm4163_vm12, %v4160_v57, %v9146_v27  ;;  %v9526_v0 = vld [vmem:[#allocation8_spill] sm:$0xff] }
0x150f   : > { %v9148_v44 = vpop.permute.xlu0 %4043  ;;  %v9150_v26 = vpop.permute.xlu1 %4105 }
0x1510   : > { %v4186_v9 = vsel %vm4181_vm8, %v4177_v14, %v9148_v44  ;;  %v4203_v44 = vsel %vm4199_vm0, %v4194_v6, %v9150_v26 }
0x1513   : > { %v9152_v33 = vpop.permute.xlu0 %3951  ;;  %v9154_v37 = vpop.permute.xlu1 %4013 }
0x1517   : > { %v9157_v4 = vpop.permute.xlu0 %4075  ;;  %v9159_v58 = vpop.permute.xlu1 %4045 }
0x1518   : > { %v4195_v25 = vsel %vm4190_vm7, %v4186_v9, %v9157_v4  ;;  %v4178_v4 = vsel %vm4172_vm1, %v4169_v42, %v9154_v37  ;;  %v9529_v37 = vld [vmem:[#allocation9_spill] sm:$0xff] }
0x1519   : > { %v4161_v56 = vsel %vm9530_vm15, %v9529_v37, %v9152_v33  ;;  %v5361_v33 = vmul.f32 %v9188_v62, %v5346_v21 }
0x151b   : > { %v9162_v10 = vpop.permute.xlu0 %3983  ;;  %v9164_v5 = vpop.permute.xlu1 %3953 }
0x151f   : > { %v9166_v41 = vpop.permute.xlu0 %4107  ;;  %v9168_v31 = vpop.permute.xlu1 %4077 }
0x1520   : > { %v4204_v38 = vsel %vm4199_vm0, %v4195_v25, %v9166_v41  ;;  %v4187_v41 = vsel %vm4181_vm8, %v4178_v4, %v9159_v58  ;;  %v4170_v58 = vsel %vm4163_vm12, %v4161_v56, %v9162_v10 }
0x1523   : > { %v9172_v22 = vpop.permute.xlu0 %4015  ;;  %v9174_v2 = vpop.permute.xlu1 %3985 }
0x1527   : > { %v9176_v19 = vpop.permute.xlu0 %4047  ;;  %v9178_v15 = vpop.permute.xlu1 %4109 }
0x152b   : > { %v9180_v24 = vpop.permute.xlu0 %4049  ;;  %v9182_v23 = vpop.permute.xlu1 %4017 }
0x152f   : > { %v9193_v13 = vpop.permute.xlu0 %4081  ;;  %v9195_v7 = vpop.permute.xlu1 %4079 }
0x1533   : > { %v4132_v39 = vpop.permute.xlu0 %4131  ;;  %v9209_v59 = vpop.permute.xlu1 %4111 }
0x1534   : > { %v4209_v18 = vsel %vm4208_vm13, %v9111_v34, %v4132_v39  ;;  %v5359_v34 = vmul.f32 %v9188_v62, %v5344_v28  ;;  %v4162_v28 = vsel %vm9527_vm11, %v9526_v0, %v9164_v5  ;;  %v4196_v5 = vsel %vm4190_vm7, %v4187_v41, %v9168_v31 }
0x1535   : > { %v5377_v40 = vadd.f32 %v5369_v32, %v4209_v18  ;;  %v4171_v32 = vsel %vm4163_vm12, %v4162_v28, %v9174_v2  ;;  %v4205_v2 = vsel %vm4199_vm0, %v4196_v5, %v9178_v15  ;;  %v4179_v31 = vsel %vm4172_vm1, %v4170_v58, %v9172_v22  ;;  %vm9533_vm12 = vmmov %vm9531_vm2 }
0x1536   : > { %v4180_v18 = vsel %vm4172_vm1, %v4171_v32, %v9182_v23  ;;  %v5374_v52 = vadd.f32 %v9202_v60, %v5359_v34  ;;  %v4188_v10 = vsel %vm4181_vm8, %v4179_v31, %v9176_v19  ;;  %v5376_v34 = vadd.f32 %v9202_v60, %v5361_v33  ;;  %vm9534_vm1 = vmmov %vm9531_vm2 }
0x1537   : > { %v4136_v47 = vpop.permute.xlu0 %4135  ;;  %6663 = vmatprep.mubr.msk.f32.mxu1 %vm9523_vm5, %v5377_v40  ;;  %v4134_v50 = vpop.permute.xlu1 %4133  ;;  %v4189_v15 = vsel %vm4181_vm8, %v4180_v18, %v9180_v24  ;;  %vm9535_vm8 = vmmov %vm9534_vm1 }
0x1538   : > { %v4211_v16 = vsel %vm4208_vm13, %v4202_v46, %v4136_v47  ;;  %v4210_v55 = vsel %vm4208_vm13, %v4201_v20, %v4134_v50  ;;  %v4198_v36 = vsel %vm4190_vm7, %v4189_v15, %v9193_v13 }
0x1539   : > { %v5379_v63 = vadd.f32 %v5371_v8, %v4211_v16  ;;  %v5378_v54 = vadd.f32 %v5370_v12, %v4210_v55  ;;  %v5360_v12 = vmul.f32 %v9188_v62, %v5345_v3  ;;  %v4197_v62 = vsel %vm4190_vm7, %v4188_v10, %v9195_v7  ;;  %v5893_v7 = vld [vmem:[%s9338_s8] ss:$0 sm:$0xff]  ;;  %vm9536_vm7 = vmmov %vm9534_vm1 }
0x153a   : > { %v4206_v22 = vsel %vm4199_vm0, %v4197_v62, %v9209_v59 }
0x153b   : > { %v4140_v35 = vpop.permute.xlu0 %4139  ;;  %6664 = vmatmul.mubr.msk.f32.vlgmr.msra.gmra.mxu1 %vm9462_vm3, %v5378_v54  ;;  %v4138_v51 = vpop.permute.xlu1 %4137  ;;  %v5375_v19 = vadd.f32 %v9202_v60, %v5360_v12 }
0x153c   : > { %v4213_v27 = vsel %vm4208_vm13, %v4204_v38, %v4140_v35  ;;  %v4212_v26 = vsel %vm4208_vm13, %v4203_v44, %v4138_v51  ;;  %6666 = vmatprep.mubr.msk.f32.mxu1 %vm9528_vm10, %v5379_v63 }
0x153d   : > { %v5381_v53 = vadd.f32 %v5373_v29, %v4213_v27  ;;  %v5380_v39 = vadd.f32 %v5372_v1, %v4212_v26 }
0x153f   : > { %v4114_v40 = vpop.permute.xlu0 %4113  ;;  %6667 = vmatmul.mubr.msk.f32.gmra.mxu1 %vm9531_vm2, %v5380_v39  ;;  %v4142_v8 = vpop.permute.xlu1 %4141 }
0x1540   : > { %v4214_v23 = vsel %vm4208_vm13, %v4205_v2, %v4142_v8  ;;  %6669 = vmatprep.mubr.msk.f32.mxu1 %vm9532_vm14, %v5381_v53  ;;  %v4207_v45 = vsel %vm4199_vm0, %v4198_v36, %v4114_v40  ;;  %vm9537_vm0 = vmmov %vm9534_vm1 }
0x1541   : > { %v5382_v49 = vadd.f32 %v5374_v52, %v4214_v23  ;;  %vm9538_vm4 = vmmov %vm9537_vm0 }
0x1542   : > { %vm9540_vm6 = vmmov %vm9537_vm0 }
0x1543   : > { %v4146_v1 = vpop.permute.xlu0 %4145  ;;  %6670 = vmatmul.mubr.msk.f32.gmra.mxu1 %vm9533_vm12, %v5382_v49  ;;  %v4144_v24 = vpop.permute.xlu1 %4143  ;;  %vm9541_vm5 = vmmov %vm9537_vm0 }
0x1544   : > { %v4216_v43 = vsel %vm4208_vm13, %v4207_v45, %v4146_v1  ;;  %v4215_v13 = vsel %vm4208_vm13, %v4206_v22, %v4144_v24  ;;  %vm9539_vm13 = vmmov %vm9537_vm0 }
0x1545   : > { %v5384_v20 = vadd.f32 %v5376_v34, %v4216_v43  ;;  %v5383_v17 = vadd.f32 %v5375_v19, %v4215_v13  ;;  %vm9542_vm9 = vmmov %vm9537_vm0 }
0x1546   : > { %vm9543_vm3 = vmmov %vm9537_vm0 }
0x1547   : > { %6672 = vmatprep.mubr.msk.f32.mxu1 %vm9534_vm1, %v5383_v17 }
0x1548   : > { %6673 = vmatmul.mubr.msk.f32.gmra.mxu1 %vm9535_vm8, %v5384_v20 }
0x15fb   : > { %v6665_v60 = vpop.f32.mrf.mxu1 }
0x15fc   : > { %v5492_v59 = vadd.f32 %v6665_v60, %v5893_v7 }
0x15fd   : > { %v5486_v46 = vpop.f32.mrf.mxu1 }
0x15fe   : > { %5526 = vst.msk [vmem:[%s367_s17 + $0x8] sm:$0xff] %vm9536_vm7, %v5492_v59  ;;  %v5487_v47 = vadd.f32 %v5893_v7, %v5486_v46 }
0x15ff   : > { %v6668_v50 = vpop.f32.mrf.mxu1 }
0x1600   : > { %5525 = vst.msk [vmem:[%s367_s17] sm:$0xff] %vm9537_vm0, %v5487_v47  ;;  %v5502_v29 = vadd.f32 %v6668_v50, %v5893_v7 }
0x1601   : > { %v5496_v61 = vpop.f32.mrf.mxu1 }
0x1602   : > { %5528 = vst.msk [vmem:[%s367_s17 + $0x18] sm:$0xff] %vm9538_vm4, %v5502_v29  ;;  %v5497_v11 = vadd.f32 %v5893_v7, %v5496_v61 }
0x1603   : > { %v6671_v14 = vpop.f32.mrf.mxu1 }
0x1604   : > { %5527 = vst.msk [vmem:[%s367_s17 + $0x10] sm:$0xff] %vm9539_vm13, %v5497_v11  ;;  %v5512_v16 = vadd.f32 %v6671_v14, %v5893_v7 }
0x1605   : > { %v5506_v55 = vpop.f32.mrf.mxu1 }
0x1606   : > { %5530 = vst.msk [vmem:[%s367_s17 + $0x28] sm:$0xff] %vm9540_vm6, %v5512_v16  ;;  %v5507_v30 = vadd.f32 %v5893_v7, %v5506_v55 }
0x1608   : > { %5529 = vst.msk [vmem:[%s367_s17 + $0x20] sm:$0xff] %vm9541_vm5, %v5507_v30  ;;  %v6674_v9 = vpop.f32.mrf.mxu1 }
0x1609   : > { %v5522_v63 = vadd.f32 %v6674_v9, %v5893_v7 }
0x160a   : > { %v5516_v54 = vpop.f32.mrf.mxu1 }
0x160b   : > { %5532 = vst.msk [vmem:[%s367_s17 + $0x38] sm:$0xff] %vm9542_vm9, %v5522_v63  ;;  %v5517_v48 = vadd.f32 %v5893_v7, %v5516_v54 }
0x160d   : > { %5531 = vst.msk [vmem:[%s367_s17 + $0x30] sm:$0xff] %vm9543_vm3, %v5517_v48 }
0x160e PF: > { %s21_s13 = sadd.s32 1, %s7007_s13  }
0x160f   : > { %p18_p4 = scmp.ge.s32.totalorder %s21_s13, 4  }
0x1611   :  { %20 = sbr.rel (!%p18_p4) target bundleno = 1 (0x1), region = 105 }

</bundles_post_ra>
